<compile_context>
chip_gen: v6e
topology: v6e:2x2x1
jax: 0.10.0
libtpu: 0.0.40
codegen_flags: <defaults>
</compile_context>

<pallas_src>
import jax
import jax.numpy as jnp
from jax import lax
from jax.experimental import pallas as pl
from jax.experimental.pallas import tpu as pltpu


def lstm_head_kernel(x_ref,      # (T, Bt, D)   bf16
                     wih0_ref,   # (D, 4H)      bf16
                     whh0_ref,   # (H, 4H)      bf16
                     b0_ref,     # (1, 4H)      f32  (b_ih0 + b_hh0)
                     w1_ref,     # (2H, 4H)     bf16 ([Wih1; Whh1] stacked)
                     b1_ref,     # (1, 4H)      f32  (b_ih1 + b_hh1)
                     wfc_ref,    # (8, H)       f32  (row 0 = fc weight, rest 0)
                     bfc_ref,    # (1, 1)       f32
                     out_ref,    # (1, Bt)      f32  (batch in lanes)
                     gx_ref,     # scratch (T, Bt, 4H) f32
                     hcat_ref,   # scratch (Bt, 2H)    bf16
                     h0_ref, c0_ref, h1_ref, c1_ref):  # scratch (Bt, H) f32
    T, Bt, D = x_ref.shape
    H = whh0_ref.shape[0]

    # ---- Hoisted layer-0 input projection (no time dependence): one MXU
    # matmul with the bias folded in; parked in VMEM so it never occupies
    # vregs across the recurrence.
    xf = x_ref[...].reshape(T * Bt, D)
    gx = jnp.dot(xf, wih0_ref[...], preferred_element_type=jnp.float32) + b0_ref[...]
    gx_ref[...] = gx.reshape(T, Bt, 4 * H)

    def lstm_gates(g, c):
        i = jax.nn.sigmoid(g[:, 0:H])
        f = jax.nn.sigmoid(g[:, H:2 * H])
        gg = jnp.tanh(g[:, 2 * H:3 * H])
        o = jax.nn.sigmoid(g[:, 3 * H:4 * H])
        c_new = f * c + i * gg
        return o * jnp.tanh(c_new), c_new

    def layer1_step(h0_prev_bf):
        # Layer-1 step consuming h0(t-1) (passed in) and h1/c1 of the step
        # before that (refs). Fused [h0, h1] @ [Wih1; Whh1] built in place in
        # a VMEM slab (no per-step lane concatenate). Inter-layer dropout is
        # identity in eval mode.
        hcat_ref[:, 0:H] = h0_prev_bf
        hcat_ref[:, H:2 * H] = h1_ref[...].astype(jnp.bfloat16)
        g1 = (jnp.dot(hcat_ref[...], w1_ref[...],
                      preferred_element_type=jnp.float32) + b1_ref[...])
        h1_new, c1_new = lstm_gates(g1, c1_ref[...])
        h1_ref[...] = h1_new
        c1_ref[...] = c1_new
        return h1_new

    def layer0_step(t, h0_prev_bf):
        g0 = gx_ref[t] + jnp.dot(h0_prev_bf, whh0_ref[...],
                                 preferred_element_type=jnp.float32)
        h0_new, c0_new = lstm_gates(g0, c0_ref[...])
        h0_ref[...] = h0_new
        c0_ref[...] = c0_new

    # ---- Prologue: layer-0 at t=0 (h0(-1)=c0(-1)=0, recurrent matmul skipped).
    zeros = jnp.zeros((Bt, H), jnp.float32)
    h1_ref[...] = zeros
    c1_ref[...] = zeros
    h0_0, c0_0 = lstm_gates(gx_ref[0], zeros)
    h0_ref[...] = h0_0
    c0_ref[...] = c0_0

    # ---- Skewed wavefront: body(t) runs layer-1(t-1) and layer-0(t); the two
    # halves share only the h0(t-1) read, so the scheduler can overlap their
    # MXU issues and EUP sigmoid/tanh chains.
    def body(t, carry):
        h0_prev_bf = h0_ref[...].astype(jnp.bfloat16)   # h0(t-1)
        layer1_step(h0_prev_bf)                          # layer-1 at step t-1
        layer0_step(t, h0_prev_bf)                       # layer-0 at step t
        return carry

    lax.fori_loop(1, T, body, 0, unroll=True)

    # ---- Epilogue: layer-1 at the last step, then the fc head.
    h1_last = layer1_step(h0_ref[...].astype(jnp.bfloat16))

    # fc head, lane-dense: (8,H) x (Bt,H)^T -> (8,Bt); row 0 is the real
    # output (rows 1..7 of wfc are zero padding). Batch lives in lanes so the
    # final store is full-lane rather than a (Bt,1) masked partial store.
    scores = lax.dot_general(wfc_ref[...], h1_last,
                             dimension_numbers=(((1,), (1,)), ((), ())),
                             preferred_element_type=jnp.float32)
    out_ref[...] = scores[0:1, :] + bfc_ref[...]


def weather_forward(x, params):
    """x: (B, T, D) float32 -> (B, 1) float32 (eval-mode forward)."""
    B, T, D = x.shape
    H = params["whh0"].shape[0]

    # Batch tile: fill the MXU M dimension when the batch allows. Small
    # batches -> one tile rounded to the 8-sublane multiple; large batches ->
    # 256-row tiles (multiple of 128 keeps the lane-dense out block legal,
    # grid >= 2 shards across v7x's two TensorCores).
    # TODO(synk): prefer 128-row tiles on v5e (128-wide MXU, 16 MiB scoped VMEM).
    B8 = ((B + 7) // 8) * 8
    B_TILE = B8 if B8 <= 256 else 256
    B_pad = ((B8 + B_TILE - 1) // B_TILE) * B_TILE

    # Time-major and bf16 (x is only ever a bf16 MXU operand): halves x DMA bytes.
    x_tbd = jnp.transpose(x, (1, 0, 2)).astype(jnp.bfloat16)
    if B_pad != B:
        x_tbd = jnp.pad(x_tbd, ((0, 0), (0, B_pad - B), (0, 0)))

    def full(shape):
        n = len(shape)
        return pl.BlockSpec(shape, lambda b, _n=n: (0,) * _n)

    out = pl.pallas_call(
        lstm_head_kernel,
        out_shape=jax.ShapeDtypeStruct((1, B_pad), jnp.float32),
        grid_spec=pltpu.PrefetchScalarGridSpec(
            num_scalar_prefetch=0,
            grid=(B_pad // B_TILE,),
            in_specs=[
                pl.BlockSpec((T, B_TILE, D), lambda b: (0, b, 0)),  # x
                full((D, 4 * H)),        # wih0
                full((H, 4 * H)),        # whh0
                full((1, 4 * H)),        # b0
                full((2 * H, 4 * H)),    # w1 stacked
                full((1, 4 * H)),        # b1
                full((8, H)),            # wfc (row 0 real)
                full((1, 1)),            # bfc
            ],
            out_specs=pl.BlockSpec((1, B_TILE), lambda b: (0, b)),
            scratch_shapes=[
                pltpu.VMEM((T, B_TILE, 4 * H), jnp.float32),   # gx
                pltpu.VMEM((B_TILE, 2 * H), jnp.bfloat16),     # [h0, h1] slab
                pltpu.VMEM((B_TILE, H), jnp.float32),          # h0
                pltpu.VMEM((B_TILE, H), jnp.float32),          # c0
                pltpu.VMEM((B_TILE, H), jnp.float32),          # h1
                pltpu.VMEM((B_TILE, H), jnp.float32),          # c1
            ],
        ),
        compiler_params=pltpu.CompilerParams(
            dimension_semantics=("parallel",)),
    )(x_tbd, params["wih0"], params["whh0"], params["b0"],
      params["w1"], params["b1"], params["wfc"], params["bfc"])
    return out[0, :B][:, None]


def init_params(key, input_size, hidden_size):
    """Deterministic init matching PyTorch LSTM/Linear param shapes.

    Weights are pre-transposed / pre-stacked for the kernel and stored bf16
    (matmul operands); biases and the fc row stay f32.
    """
    H = hidden_size
    k = 1.0 / jnp.sqrt(jnp.float32(H))
    keys = jax.random.split(key, 10)
    u = lambda kk, shape: jax.random.uniform(kk, shape, jnp.float32, -k, k)

    # PyTorch stores W_ih: (4H, in), W_hh: (4H, H), b_ih/b_hh: (4H,)
    w_ih0 = u(keys[0], (4 * H, input_size))
    w_hh0 = u(keys[1], (4 * H, H))
    b_ih0 = u(keys[2], (4 * H,))
    b_hh0 = u(keys[3], (4 * H,))
    w_ih1 = u(keys[4], (4 * H, H))
    w_hh1 = u(keys[5], (4 * H, H))
    b_ih1 = u(keys[6], (4 * H,))
    b_hh1 = u(keys[7], (4 * H,))
    w_fc = u(keys[8], (1, H))
    b_fc = u(keys[9], (1,))

    return {
        "wih0": w_ih0.T.astype(jnp.bfloat16),                     # (D, 4H)
        "whh0": w_hh0.T.astype(jnp.bfloat16),                     # (H, 4H)
        "b0": (b_ih0 + b_hh0)[None, :],                           # (1, 4H) f32
        "w1": jnp.concatenate([w_ih1.T, w_hh1.T],
                              axis=0).astype(jnp.bfloat16),       # (2H, 4H)
        "b1": (b_ih1 + b_hh1)[None, :],                           # (1, 4H) f32
        "wfc": jnp.concatenate([w_fc, jnp.zeros((7, H), jnp.float32)],
                               axis=0),                           # (8, H) f32, row 0 real
        "bfc": b_fc[None, :],                                     # (1, 1)  f32
    }


def weather_ref(x, params):
    """Pure-JAX reference mirroring the kernel's bf16-operand / f32-accum math."""
    B, T, D = x.shape
    H = params["whh0"].shape[0]
    bf = lambda a: a.astype(jnp.bfloat16).astype(jnp.float32)

    wih0 = params["wih0"].astype(jnp.float32)
    whh0 = params["whh0"].astype(jnp.float32)
    w1 = params["w1"].astype(jnp.float32)

    def gates_to_hc(g, c):
        i = jax.nn.sigmoid(g[:, 0:H])
        f = jax.nn.sigmoid(g[:, H:2 * H])
        gg = jnp.tanh(g[:, 2 * H:3 * H])
        o = jax.nn.sigmoid(g[:, 3 * H:4 * H])
        c = f * c + i * gg
        return o * jnp.tanh(c), c

    h0 = c0 = h1 = c1 = jnp.zeros((B, H), jnp.float32)
    for t in range(T):
        xt = bf(x[:, t, :])
        g0 = xt @ wih0 + params["b0"] + bf(h0) @ whh0
        h0, c0 = gates_to_hc(g0, c0)
        hcat = bf(jnp.concatenate([h0, h1], axis=-1))
        g1 = hcat @ w1 + params["b1"]
        h1, c1 = gates_to_hc(g1, c1)
    return (jnp.sum(h1 * params["wfc"][0:1], axis=-1, keepdims=True)
            + params["bfc"])


if __name__ == "__main__":
    B, T = 2, 8
    input_size, hidden_size = 10, 128

    key = jax.random.PRNGKey(0)
    k_x, k_p = jax.random.split(key)
    x = jax.random.normal(k_x, (B, T, input_size), jnp.float32)
    params = init_params(k_p, input_size, hidden_size)

    out = jax.block_until_ready(weather_forward(x, params))
    ref = weather_ref(x, params)

    assert out.shape == (B, 1), out.shape
    assert jnp.allclose(out, ref, atol=2e-3, rtol=2e-3), (out, ref)
    print("KERNEL_OK")
</pallas_src>

<mosaic_0001>
module attributes {stable_mosaic.version = 11 : i64} {
  func.func @lstm_head_kernel(%arg0: i32, %arg1: memref<8x8x10xbf16, #tpu.memory_space<vmem>>, %arg2: memref<10x512xbf16, #tpu.memory_space<vmem>>, %arg3: memref<128x512xbf16, #tpu.memory_space<vmem>>, %arg4: memref<1x512xf32, #tpu.memory_space<vmem>>, %arg5: memref<256x512xbf16, #tpu.memory_space<vmem>>, %arg6: memref<1x512xf32, #tpu.memory_space<vmem>>, %arg7: memref<8x128xf32, #tpu.memory_space<vmem>>, %arg8: memref<1x1xf32, #tpu.memory_space<vmem>>, %arg9: memref<1x8xf32, #tpu.memory_space<vmem>>, %arg10: memref<8x8x512xf32, #tpu.memory_space<vmem>>, %arg11: memref<8x256xbf16, #tpu.memory_space<vmem>>, %arg12: memref<8x128xf32, #tpu.memory_space<vmem>>, %arg13: memref<8x128xf32, #tpu.memory_space<vmem>>, %arg14: memref<8x128xf32, #tpu.memory_space<vmem>>, %arg15: memref<8x128xf32, #tpu.memory_space<vmem>>) attributes {dimension_semantics = [#tpu.dimension_semantics<parallel>], iteration_bounds = array<i64: 1>, scalar_prefetch = 0 : i64, scratch_operands = 6 : i64, tpu.core_type = #tpu.core_type<tc>, window_params = [{transform_indices = @transform_0, window_bounds = array<i64: 8, 8, 10>}, {pipeline_mode = #tpu.pipeline_mode<synchronous>, transform_indices = @transform_1, window_bounds = array<i64: 10, 512>}, {pipeline_mode = #tpu.pipeline_mode<synchronous>, transform_indices = @transform_2, window_bounds = array<i64: 128, 512>}, {pipeline_mode = #tpu.pipeline_mode<synchronous>, transform_indices = @transform_3, window_bounds = array<i64: 1, 512>}, {pipeline_mode = #tpu.pipeline_mode<synchronous>, transform_indices = @transform_4, window_bounds = array<i64: 256, 512>}, {pipeline_mode = #tpu.pipeline_mode<synchronous>, transform_indices = @transform_5, window_bounds = array<i64: 1, 512>}, {pipeline_mode = #tpu.pipeline_mode<synchronous>, transform_indices = @transform_6, window_bounds = array<i64: 8, 128>}, {pipeline_mode = #tpu.pipeline_mode<synchronous>, transform_indices = @transform_7, window_bounds = array<i64: 1, 1>}, {transform_indices = @transform_8, window_bounds = array<i64: 1, 8>}]} {
    %c0 = arith.constant 0 : index
    %c0_0 = arith.constant 0 : index
    %c0_1 = arith.constant 0 : index
    %0 = vector.load %arg1[%c0, %c0_0, %c0_1] : memref<8x8x10xbf16, #tpu.memory_space<vmem>>, vector<8x8x10xbf16>
    %1 = vector.shape_cast %0 : vector<8x8x10xbf16> to vector<64x10xbf16>
    %c0_2 = arith.constant 0 : index
    %c0_3 = arith.constant 0 : index
    %2 = vector.load %arg2[%c0_2, %c0_3] : memref<10x512xbf16, #tpu.memory_space<vmem>>, vector<10x512xbf16>
    %cst = arith.constant dense<0.000000e+00> : vector<64x512xf32>
    %3 = tpu.matmul %1, %2, %cst {dimension_numbers = #tpu.dot_dimension_numbers<[1], [0], [0], [1], [0, 0, 1, 1], [], []>} : vector<64x10xbf16>, vector<10x512xbf16>, vector<64x512xf32> -> vector<64x512xf32>
    %c0_4 = arith.constant 0 : index
    %c0_5 = arith.constant 0 : index
    %4 = vector.load %arg4[%c0_4, %c0_5] : memref<1x512xf32, #tpu.memory_space<vmem>>, vector<1x512xf32>
    %5 = vector.broadcast %4 : vector<1x512xf32> to vector<64x512xf32>
    %6 = arith.addf %3, %5 : vector<64x512xf32>
    %7 = vector.shape_cast %6 : vector<64x512xf32> to vector<8x8x512xf32>
    %c0_6 = arith.constant 0 : index
    %c0_7 = arith.constant 0 : index
    %c0_8 = arith.constant 0 : index
    %8 = vector.load %arg10[%c0_6, %c0_7, %c0_8] : memref<8x8x512xf32, #tpu.memory_space<vmem>>, vector<8x8x512xf32>
    tpu.vector_store %arg10[%c0_6, %c0_7, %c0_8], %7 {strides = array<i32>} : memref<8x8x512xf32, #tpu.memory_space<vmem>>, vector<8x8x512xf32>,
    %cst_9 = arith.constant 0.000000e+00 : f32
    %9 = vector.broadcast %cst_9 : f32 to vector<8x128xf32>
    %c0_10 = arith.constant 0 : index
    %c0_11 = arith.constant 0 : index
    %10 = vector.load %arg14[%c0_10, %c0_11] : memref<8x128xf32, #tpu.memory_space<vmem>>, vector<8x128xf32>
    tpu.vector_store %arg14[%c0_10, %c0_11], %9 {strides = array<i32>} : memref<8x128xf32, #tpu.memory_space<vmem>>, vector<8x128xf32>,
    %c0_12 = arith.constant 0 : index
    %c0_13 = arith.constant 0 : index
    %11 = vector.load %arg15[%c0_12, %c0_13] : memref<8x128xf32, #tpu.memory_space<vmem>>, vector<8x128xf32>
    tpu.vector_store %arg15[%c0_12, %c0_13], %9 {strides = array<i32>} : memref<8x128xf32, #tpu.memory_space<vmem>>, vector<8x128xf32>,
    %c0_14 = arith.constant 0 : index
    %c0_15 = arith.constant 0 : index
    %c0_16 = arith.constant 0 : index
    %12 = vector.load %arg10[%c0_14, %c0_15, %c0_16] : memref<8x8x512xf32, #tpu.memory_space<vmem>>, vector<1x8x512xf32>
    %13 = vector.shape_cast %12 : vector<1x8x512xf32> to vector<8x512xf32>
    %14 = vector.extract_strided_slice %13 {offsets = [0, 0], sizes = [8, 128], strides = [1, 1]} : vector<8x512xf32> to vector<8x128xf32>
    %15 = arith.negf %14 : vector<8x128xf32>
    %16 = math.exp %15 : vector<8x128xf32>
    %cst_17 = arith.constant 1.000000e+00 : f32
    %17 = vector.broadcast %cst_17 : f32 to vector<8x128xf32>
    %18 = arith.addf %17, %16 : vector<8x128xf32>
    %19 = arith.divf %17, %18 : vector<8x128xf32>
    %20 = vector.extract_strided_slice %13 {offsets = [0, 128], sizes = [8, 128], strides = [1, 1]} : vector<8x512xf32> to vector<8x128xf32>
    %21 = arith.negf %20 : vector<8x128xf32>
    %22 = math.exp %21 : vector<8x128xf32>
    %cst_18 = arith.constant 1.000000e+00 : f32
    %23 = vector.broadcast %cst_18 : f32 to vector<8x128xf32>
    %24 = arith.addf %23, %22 : vector<8x128xf32>
    %25 = arith.divf %23, %24 : vector<8x128xf32>
    %26 = vector.extract_strided_slice %13 {offsets = [0, 256], sizes = [8, 128], strides = [1, 1]} : vector<8x512xf32> to vector<8x128xf32>
    %27 = math.tanh %26 : vector<8x128xf32>
    %28 = vector.extract_strided_slice %13 {offsets = [0, 384], sizes = [8, 128], strides = [1, 1]} : vector<8x512xf32> to vector<8x128xf32>
    %29 = arith.negf %28 : vector<8x128xf32>
    %30 = math.exp %29 : vector<8x128xf32>
    %cst_19 = arith.constant 1.000000e+00 : f32
    %31 = vector.broadcast %cst_19 : f32 to vector<8x128xf32>
    %32 = arith.addf %31, %30 : vector<8x128xf32>
    %33 = arith.divf %31, %32 : vector<8x128xf32>
    %34 = arith.mulf %25, %9 : vector<8x128xf32>
    %35 = arith.mulf %19, %27 : vector<8x128xf32>
    %36 = arith.addf %34, %35 : vector<8x128xf32>
    %37 = math.tanh %36 : vector<8x128xf32>
    %38 = arith.mulf %33, %37 : vector<8x128xf32>
    %c0_20 = arith.constant 0 : index
    %c0_21 = arith.constant 0 : index
    %39 = vector.load %arg12[%c0_20, %c0_21] : memref<8x128xf32, #tpu.memory_space<vmem>>, vector<8x128xf32>
    tpu.vector_store %arg12[%c0_20, %c0_21], %38 {strides = array<i32>} : memref<8x128xf32, #tpu.memory_space<vmem>>, vector<8x128xf32>,
    %c0_22 = arith.constant 0 : index
    %c0_23 = arith.constant 0 : index
    %40 = vector.load %arg13[%c0_22, %c0_23] : memref<8x128xf32, #tpu.memory_space<vmem>>, vector<8x128xf32>
    tpu.vector_store %arg13[%c0_22, %c0_23], %36 {strides = array<i32>} : memref<8x128xf32, #tpu.memory_space<vmem>>, vector<8x128xf32>,
    %c1_i32 = arith.constant 1 : i32
    %c0_24 = arith.constant 0 : index
    %c0_25 = arith.constant 0 : index
    %41 = vector.load %arg12[%c0_24, %c0_25] : memref<8x128xf32, #tpu.memory_space<vmem>>, vector<8x128xf32>
    %42 = arith.truncf %41 : vector<8x128xf32> to vector<8x128xbf16>
    %c0_26 = arith.constant 0 : index
    %c0_27 = arith.constant 0 : index
    %43 = vector.load %arg11[%c0_26, %c0_27] : memref<8x256xbf16, #tpu.memory_space<vmem>>, vector<8x128xbf16>
    tpu.vector_store %arg11[%c0_26, %c0_27], %42 {strides = array<i32>} : memref<8x256xbf16, #tpu.memory_space<vmem>>, vector<8x128xbf16>,
    %c0_28 = arith.constant 0 : index
    %c0_29 = arith.constant 0 : index
    %44 = vector.load %arg14[%c0_28, %c0_29] : memref<8x128xf32, #tpu.memory_space<vmem>>, vector<8x128xf32>
    %45 = arith.truncf %44 : vector<8x128xf32> to vector<8x128xbf16>
    %c0_30 = arith.constant 0 : index
    %c128 = arith.constant 128 : index
    %46 = vector.load %arg11[%c0_30, %c128] : memref<8x256xbf16, #tpu.memory_space<vmem>>, vector<8x128xbf16>
    tpu.vector_store %arg11[%c0_30, %c128], %45 {strides = array<i32>} : memref<8x256xbf16, #tpu.memory_space<vmem>>, vector<8x128xbf16>,
    %c0_31 = arith.constant 0 : index
    %c0_32 = arith.constant 0 : index
    %47 = vector.load %arg11[%c0_31, %c0_32] : memref<8x256xbf16, #tpu.memory_space<vmem>>, vector<8x256xbf16>
    %c0_33 = arith.constant 0 : index
    %c0_34 = arith.constant 0 : index
    %48 = vector.load %arg5[%c0_33, %c0_34] : memref<256x512xbf16, #tpu.memory_space<vmem>>, vector<256x512xbf16>
    %cst_35 = arith.constant dense<0.000000e+00> : vector<8x512xf32>
    %49 = tpu.matmul %47, %48, %cst_35 {dimension_numbers = #tpu.dot_dimension_numbers<[1], [0], [0], [1], [0, 0, 1, 1], [], []>} : vector<8x256xbf16>, vector<256x512xbf16>, vector<8x512xf32> -> vector<8x512xf32>
    %c0_36 = arith.constant 0 : index
    %c0_37 = arith.constant 0 : index
    %50 = vector.load %arg6[%c0_36, %c0_37] : memref<1x512xf32, #tpu.memory_space<vmem>>, vector<1x512xf32>
    %51 = vector.broadcast %50 : vector<1x512xf32> to vector<8x512xf32>
    %52 = arith.addf %49, %51 : vector<8x512xf32>
    %c0_38 = arith.constant 0 : index
    %c0_39 = arith.constant 0 : index
    %53 = vector.load %arg15[%c0_38, %c0_39] : memref<8x128xf32, #tpu.memory_space<vmem>>, vector<8x128xf32>
    %54 = vector.extract_strided_slice %52 {offsets = [0, 0], sizes = [8, 128], strides = [1, 1]} : vector<8x512xf32> to vector<8x128xf32>
    %55 = arith.negf %54 : vector<8x128xf32>
    %56 = math.exp %55 : vector<8x128xf32>
    %cst_40 = arith.constant 1.000000e+00 : f32
    %57 = vector.broadcast %cst_40 : f32 to vector<8x128xf32>
    %58 = arith.addf %57, %56 : vector<8x128xf32>
    %59 = arith.divf %57, %58 : vector<8x128xf32>
    %60 = vector.extract_strided_slice %52 {offsets = [0, 128], sizes = [8, 128], strides = [1, 1]} : vector<8x512xf32> to vector<8x128xf32>
    %61 = arith.negf %60 : vector<8x128xf32>
    %62 = math.exp %61 : vector<8x128xf32>
    %cst_41 = arith.constant 1.000000e+00 : f32
    %63 = vector.broadcast %cst_41 : f32 to vector<8x128xf32>
    %64 = arith.addf %63, %62 : vector<8x128xf32>
    %65 = arith.divf %63, %64 : vector<8x128xf32>
    %66 = vector.extract_strided_slice %52 {offsets = [0, 256], sizes = [8, 128], strides = [1, 1]} : vector<8x512xf32> to vector<8x128xf32>
    %67 = math.tanh %66 : vector<8x128xf32>
    %68 = vector.extract_strided_slice %52 {offsets = [0, 384], sizes = [8, 128], strides = [1, 1]} : vector<8x512xf32> to vector<8x128xf32>
    %69 = arith.negf %68 : vector<8x128xf32>
    %70 = math.exp %69 : vector<8x128xf32>
    %cst_42 = arith.constant 1.000000e+00 : f32
    %71 = vector.broadcast %cst_42 : f32 to vector<8x128xf32>
    %72 = arith.addf %71, %70 : vector<8x128xf32>
    %73 = arith.divf %71, %72 : vector<8x128xf32>
    %74 = arith.mulf %65, %53 : vector<8x128xf32>
    %75 = arith.mulf %59, %67 : vector<8x128xf32>
    %76 = arith.addf %74, %75 : vector<8x128xf32>
    %77 = math.tanh %76 : vector<8x128xf32>
    %78 = arith.mulf %73, %77 : vector<8x128xf32>
    %c0_43 = arith.constant 0 : index
    %c0_44 = arith.constant 0 : index
    %79 = vector.load %arg14[%c0_43, %c0_44] : memref<8x128xf32, #tpu.memory_space<vmem>>, vector<8x128xf32>
    tpu.vector_store %arg14[%c0_43, %c0_44], %78 {strides = array<i32>} : memref<8x128xf32, #tpu.memory_space<vmem>>, vector<8x128xf32>,
    %c0_45 = arith.constant 0 : index
    %c0_46 = arith.constant 0 : index
    %80 = vector.load %arg15[%c0_45, %c0_46] : memref<8x128xf32, #tpu.memory_space<vmem>>, vector<8x128xf32>
    tpu.vector_store %arg15[%c0_45, %c0_46], %76 {strides = array<i32>} : memref<8x128xf32, #tpu.memory_space<vmem>>, vector<8x128xf32>,
    %81 = arith.index_cast %c1_i32 : i32 to index
    %c0_47 = arith.constant 0 : index
    %c0_48 = arith.constant 0 : index
    %82 = vector.load %arg10[%81, %c0_47, %c0_48] : memref<8x8x512xf32, #tpu.memory_space<vmem>>, vector<1x8x512xf32>
    %83 = vector.shape_cast %82 : vector<1x8x512xf32> to vector<8x512xf32>
    %c0_49 = arith.constant 0 : index
    %c0_50 = arith.constant 0 : index
    %84 = vector.load %arg3[%c0_49, %c0_50] : memref<128x512xbf16, #tpu.memory_space<vmem>>, vector<128x512xbf16>
    %cst_51 = arith.constant dense<0.000000e+00> : vector<8x512xf32>
    %85 = tpu.matmul %42, %84, %cst_51 {dimension_numbers = #tpu.dot_dimension_numbers<[1], [0], [0], [1], [0, 0, 1, 1], [], []>} : vector<8x128xbf16>, vector<128x512xbf16>, vector<8x512xf32> -> vector<8x512xf32>
    %86 = arith.addf %83, %85 : vector<8x512xf32>
    %c0_52 = arith.constant 0 : index
    %c0_53 = arith.constant 0 : index
    %87 = vector.load %arg13[%c0_52, %c0_53] : memref<8x128xf32, #tpu.memory_space<vmem>>, vector<8x128xf32>
    %88 = vector.extract_strided_slice %86 {offsets = [0, 0], sizes = [8, 128], strides = [1, 1]} : vector<8x512xf32> to vector<8x128xf32>
    %89 = arith.negf %88 : vector<8x128xf32>
    %90 = math.exp %89 : vector<8x128xf32>
    %cst_54 = arith.constant 1.000000e+00 : f32
    %91 = vector.broadcast %cst_54 : f32 to vector<8x128xf32>
    %92 = arith.addf %91, %90 : vector<8x128xf32>
    %93 = arith.divf %91, %92 : vector<8x128xf32>
    %94 = vector.extract_strided_slice %86 {offsets = [0, 128], sizes = [8, 128], strides = [1, 1]} : vector<8x512xf32> to vector<8x128xf32>
    %95 = arith.negf %94 : vector<8x128xf32>
    %96 = math.exp %95 : vector<8x128xf32>
    %cst_55 = arith.constant 1.000000e+00 : f32
    %97 = vector.broadcast %cst_55 : f32 to vector<8x128xf32>
    %98 = arith.addf %97, %96 : vector<8x128xf32>
    %99 = arith.divf %97, %98 : vector<8x128xf32>
    %100 = vector.extract_strided_slice %86 {offsets = [0, 256], sizes = [8, 128], strides = [1, 1]} : vector<8x512xf32> to vector<8x128xf32>
    %101 = math.tanh %100 : vector<8x128xf32>
    %102 = vector.extract_strided_slice %86 {offsets = [0, 384], sizes = [8, 128], strides = [1, 1]} : vector<8x512xf32> to vector<8x128xf32>
    %103 = arith.negf %102 : vector<8x128xf32>
    %104 = math.exp %103 : vector<8x128xf32>
    %cst_56 = arith.constant 1.000000e+00 : f32
    %105 = vector.broadcast %cst_56 : f32 to vector<8x128xf32>
    %106 = arith.addf %105, %104 : vector<8x128xf32>
    %107 = arith.divf %105, %106 : vector<8x128xf32>
    %108 = arith.mulf %99, %87 : vector<8x128xf32>
    %109 = arith.mulf %93, %101 : vector<8x128xf32>
    %110 = arith.addf %108, %109 : vector<8x128xf32>
    %111 = math.tanh %110 : vector<8x128xf32>
    %112 = arith.mulf %107, %111 : vector<8x128xf32>
    %c0_57 = arith.constant 0 : index
    %c0_58 = arith.constant 0 : index
    %113 = vector.load %arg12[%c0_57, %c0_58] : memref<8x128xf32, #tpu.memory_space<vmem>>, vector<8x128xf32>
    tpu.vector_store %arg12[%c0_57, %c0_58], %112 {strides = array<i32>} : memref<8x128xf32, #tpu.memory_space<vmem>>, vector<8x128xf32>,
    %c0_59 = arith.constant 0 : index
    %c0_60 = arith.constant 0 : index
    %114 = vector.load %arg13[%c0_59, %c0_60] : memref<8x128xf32, #tpu.memory_space<vmem>>, vector<8x128xf32>
    tpu.vector_store %arg13[%c0_59, %c0_60], %110 {strides = array<i32>} : memref<8x128xf32, #tpu.memory_space<vmem>>, vector<8x128xf32>,
    %c2_i32 = arith.constant 2 : i32
    %c0_61 = arith.constant 0 : index
    %c0_62 = arith.constant 0 : index
    %115 = vector.load %arg12[%c0_61, %c0_62] : memref<8x128xf32, #tpu.memory_space<vmem>>, vector<8x128xf32>
    %116 = arith.truncf %115 : vector<8x128xf32> to vector<8x128xbf16>
    %c0_63 = arith.constant 0 : index
    %c0_64 = arith.constant 0 : index
    %117 = vector.load %arg11[%c0_63, %c0_64] : memref<8x256xbf16, #tpu.memory_space<vmem>>, vector<8x128xbf16>
    tpu.vector_store %arg11[%c0_63, %c0_64], %116 {strides = array<i32>} : memref<8x256xbf16, #tpu.memory_space<vmem>>, vector<8x128xbf16>,
    %c0_65 = arith.constant 0 : index
    %c0_66 = arith.constant 0 : index
    %118 = vector.load %arg14[%c0_65, %c0_66] : memref<8x128xf32, #tpu.memory_space<vmem>>, vector<8x128xf32>
    %119 = arith.truncf %118 : vector<8x128xf32> to vector<8x128xbf16>
    %c0_67 = arith.constant 0 : index
    %c128_68 = arith.constant 128 : index
    %120 = vector.load %arg11[%c0_67, %c128_68] : memref<8x256xbf16, #tpu.memory_space<vmem>>, vector<8x128xbf16>
    tpu.vector_store %arg11[%c0_67, %c128_68], %119 {strides = array<i32>} : memref<8x256xbf16, #tpu.memory_space<vmem>>, vector<8x128xbf16>,
    %c0_69 = arith.constant 0 : index
    %c0_70 = arith.constant 0 : index
    %121 = vector.load %arg11[%c0_69, %c0_70] : memref<8x256xbf16, #tpu.memory_space<vmem>>, vector<8x256xbf16>
    %c0_71 = arith.constant 0 : index
    %c0_72 = arith.constant 0 : index
    %122 = vector.load %arg5[%c0_71, %c0_72] : memref<256x512xbf16, #tpu.memory_space<vmem>>, vector<256x512xbf16>
    %cst_73 = arith.constant dense<0.000000e+00> : vector<8x512xf32>
    %123 = tpu.matmul %121, %122, %cst_73 {dimension_numbers = #tpu.dot_dimension_numbers<[1], [0], [0], [1], [0, 0, 1, 1], [], []>} : vector<8x256xbf16>, vector<256x512xbf16>, vector<8x512xf32> -> vector<8x512xf32>
    %c0_74 = arith.constant 0 : index
    %c0_75 = arith.constant 0 : index
    %124 = vector.load %arg6[%c0_74, %c0_75] : memref<1x512xf32, #tpu.memory_space<vmem>>, vector<1x512xf32>
    %125 = vector.broadcast %124 : vector<1x512xf32> to vector<8x512xf32>
    %126 = arith.addf %123, %125 : vector<8x512xf32>
    %c0_76 = arith.constant 0 : index
    %c0_77 = arith.constant 0 : index
    %127 = vector.load %arg15[%c0_76, %c0_77] : memref<8x128xf32, #tpu.memory_space<vmem>>, vector<8x128xf32>
    %128 = vector.extract_strided_slice %126 {offsets = [0, 0], sizes = [8, 128], strides = [1, 1]} : vector<8x512xf32> to vector<8x128xf32>
    %129 = arith.negf %128 : vector<8x128xf32>
    %130 = math.exp %129 : vector<8x128xf32>
    %cst_78 = arith.constant 1.000000e+00 : f32
    %131 = vector.broadcast %cst_78 : f32 to vector<8x128xf32>
    %132 = arith.addf %131, %130 : vector<8x128xf32>
    %133 = arith.divf %131, %132 : vector<8x128xf32>
    %134 = vector.extract_strided_slice %126 {offsets = [0, 128], sizes = [8, 128], strides = [1, 1]} : vector<8x512xf32> to vector<8x128xf32>
    %135 = arith.negf %134 : vector<8x128xf32>
    %136 = math.exp %135 : vector<8x128xf32>
    %cst_79 = arith.constant 1.000000e+00 : f32
    %137 = vector.broadcast %cst_79 : f32 to vector<8x128xf32>
    %138 = arith.addf %137, %136 : vector<8x128xf32>
    %139 = arith.divf %137, %138 : vector<8x128xf32>
    %140 = vector.extract_strided_slice %126 {offsets = [0, 256], sizes = [8, 128], strides = [1, 1]} : vector<8x512xf32> to vector<8x128xf32>
    %141 = math.tanh %140 : vector<8x128xf32>
    %142 = vector.extract_strided_slice %126 {offsets = [0, 384], sizes = [8, 128], strides = [1, 1]} : vector<8x512xf32> to vector<8x128xf32>
    %143 = arith.negf %142 : vector<8x128xf32>
    %144 = math.exp %143 : vector<8x128xf32>
    %cst_80 = arith.constant 1.000000e+00 : f32
    %145 = vector.broadcast %cst_80 : f32 to vector<8x128xf32>
    %146 = arith.addf %145, %144 : vector<8x128xf32>
    %147 = arith.divf %145, %146 : vector<8x128xf32>
    %148 = arith.mulf %139, %127 : vector<8x128xf32>
    %149 = arith.mulf %133, %141 : vector<8x128xf32>
    %150 = arith.addf %148, %149 : vector<8x128xf32>
    %151 = math.tanh %150 : vector<8x128xf32>
    %152 = arith.mulf %147, %151 : vector<8x128xf32>
    %c0_81 = arith.constant 0 : index
    %c0_82 = arith.constant 0 : index
    %153 = vector.load %arg14[%c0_81, %c0_82] : memref<8x128xf32, #tpu.memory_space<vmem>>, vector<8x128xf32>
    tpu.vector_store %arg14[%c0_81, %c0_82], %152 {strides = array<i32>} : memref<8x128xf32, #tpu.memory_space<vmem>>, vector<8x128xf32>,
    %c0_83 = arith.constant 0 : index
    %c0_84 = arith.constant 0 : index
    %154 = vector.load %arg15[%c0_83, %c0_84] : memref<8x128xf32, #tpu.memory_space<vmem>>, vector<8x128xf32>
    tpu.vector_store %arg15[%c0_83, %c0_84], %150 {strides = array<i32>} : memref<8x128xf32, #tpu.memory_space<vmem>>, vector<8x128xf32>,
    %155 = arith.index_cast %c2_i32 : i32 to index
    %c0_85 = arith.constant 0 : index
    %c0_86 = arith.constant 0 : index
    %156 = vector.load %arg10[%155, %c0_85, %c0_86] : memref<8x8x512xf32, #tpu.memory_space<vmem>>, vector<1x8x512xf32>
    %157 = vector.shape_cast %156 : vector<1x8x512xf32> to vector<8x512xf32>
    %c0_87 = arith.constant 0 : index
    %c0_88 = arith.constant 0 : index
    %158 = vector.load %arg3[%c0_87, %c0_88] : memref<128x512xbf16, #tpu.memory_space<vmem>>, vector<128x512xbf16>
    %cst_89 = arith.constant dense<0.000000e+00> : vector<8x512xf32>
    %159 = tpu.matmul %116, %158, %cst_89 {dimension_numbers = #tpu.dot_dimension_numbers<[1], [0], [0], [1], [0, 0, 1, 1], [], []>} : vector<8x128xbf16>, vector<128x512xbf16>, vector<8x512xf32> -> vector<8x512xf32>
    %160 = arith.addf %157, %159 : vector<8x512xf32>
    %c0_90 = arith.constant 0 : index
    %c0_91 = arith.constant 0 : index
    %161 = vector.load %arg13[%c0_90, %c0_91] : memref<8x128xf32, #tpu.memory_space<vmem>>, vector<8x128xf32>
    %162 = vector.extract_strided_slice %160 {offsets = [0, 0], sizes = [8, 128], strides = [1, 1]} : vector<8x512xf32> to vector<8x128xf32>
    %163 = arith.negf %162 : vector<8x128xf32>
    %164 = math.exp %163 : vector<8x128xf32>
    %cst_92 = arith.constant 1.000000e+00 : f32
    %165 = vector.broadcast %cst_92 : f32 to vector<8x128xf32>
    %166 = arith.addf %165, %164 : vector<8x128xf32>
    %167 = arith.divf %165, %166 : vector<8x128xf32>
    %168 = vector.extract_strided_slice %160 {offsets = [0, 128], sizes = [8, 128], strides = [1, 1]} : vector<8x512xf32> to vector<8x128xf32>
    %169 = arith.negf %168 : vector<8x128xf32>
    %170 = math.exp %169 : vector<8x128xf32>
    %cst_93 = arith.constant 1.000000e+00 : f32
    %171 = vector.broadcast %cst_93 : f32 to vector<8x128xf32>
    %172 = arith.addf %171, %170 : vector<8x128xf32>
    %173 = arith.divf %171, %172 : vector<8x128xf32>
    %174 = vector.extract_strided_slice %160 {offsets = [0, 256], sizes = [8, 128], strides = [1, 1]} : vector<8x512xf32> to vector<8x128xf32>
    %175 = math.tanh %174 : vector<8x128xf32>
    %176 = vector.extract_strided_slice %160 {offsets = [0, 384], sizes = [8, 128], strides = [1, 1]} : vector<8x512xf32> to vector<8x128xf32>
    %177 = arith.negf %176 : vector<8x128xf32>
    %178 = math.exp %177 : vector<8x128xf32>
    %cst_94 = arith.constant 1.000000e+00 : f32
    %179 = vector.broadcast %cst_94 : f32 to vector<8x128xf32>
    %180 = arith.addf %179, %178 : vector<8x128xf32>
    %181 = arith.divf %179, %180 : vector<8x128xf32>
    %182 = arith.mulf %173, %161 : vector<8x128xf32>
    %183 = arith.mulf %167, %175 : vector<8x128xf32>
    %184 = arith.addf %182, %183 : vector<8x128xf32>
    %185 = math.tanh %184 : vector<8x128xf32>
    %186 = arith.mulf %181, %185 : vector<8x128xf32>
    %c0_95 = arith.constant 0 : index
    %c0_96 = arith.constant 0 : index
    %187 = vector.load %arg12[%c0_95, %c0_96] : memref<8x128xf32, #tpu.memory_space<vmem>>, vector<8x128xf32>
    tpu.vector_store %arg12[%c0_95, %c0_96], %186 {strides = array<i32>} : memref<8x128xf32, #tpu.memory_space<vmem>>, vector<8x128xf32>,
    %c0_97 = arith.constant 0 : index
    %c0_98 = arith.constant 0 : index
    %188 = vector.load %arg13[%c0_97, %c0_98] : memref<8x128xf32, #tpu.memory_space<vmem>>, vector<8x128xf32>
    tpu.vector_store %arg13[%c0_97, %c0_98], %184 {strides = array<i32>} : memref<8x128xf32, #tpu.memory_space<vmem>>, vector<8x128xf32>,
    %c3_i32 = arith.constant 3 : i32
    %c0_99 = arith.constant 0 : index
    %c0_100 = arith.constant 0 : index
    %189 = vector.load %arg12[%c0_99, %c0_100] : memref<8x128xf32, #tpu.memory_space<vmem>>, vector<8x128xf32>
    %190 = arith.truncf %189 : vector<8x128xf32> to vector<8x128xbf16>
    %c0_101 = arith.constant 0 : index
    %c0_102 = arith.constant 0 : index
    %191 = vector.load %arg11[%c0_101, %c0_102] : memref<8x256xbf16, #tpu.memory_space<vmem>>, vector<8x128xbf16>
    tpu.vector_store %arg11[%c0_101, %c0_102], %190 {strides = array<i32>} : memref<8x256xbf16, #tpu.memory_space<vmem>>, vector<8x128xbf16>,
    %c0_103 = arith.constant 0 : index
    %c0_104 = arith.constant 0 : index
    %192 = vector.load %arg14[%c0_103, %c0_104] : memref<8x128xf32, #tpu.memory_space<vmem>>, vector<8x128xf32>
    %193 = arith.truncf %192 : vector<8x128xf32> to vector<8x128xbf16>
    %c0_105 = arith.constant 0 : index
    %c128_106 = arith.constant 128 : index
    %194 = vector.load %arg11[%c0_105, %c128_106] : memref<8x256xbf16, #tpu.memory_space<vmem>>, vector<8x128xbf16>
    tpu.vector_store %arg11[%c0_105, %c128_106], %193 {strides = array<i32>} : memref<8x256xbf16, #tpu.memory_space<vmem>>, vector<8x128xbf16>,
    %c0_107 = arith.constant 0 : index
    %c0_108 = arith.constant 0 : index
    %195 = vector.load %arg11[%c0_107, %c0_108] : memref<8x256xbf16, #tpu.memory_space<vmem>>, vector<8x256xbf16>
    %c0_109 = arith.constant 0 : index
    %c0_110 = arith.constant 0 : index
    %196 = vector.load %arg5[%c0_109, %c0_110] : memref<256x512xbf16, #tpu.memory_space<vmem>>, vector<256x512xbf16>
    %cst_111 = arith.constant dense<0.000000e+00> : vector<8x512xf32>
    %197 = tpu.matmul %195, %196, %cst_111 {dimension_numbers = #tpu.dot_dimension_numbers<[1], [0], [0], [1], [0, 0, 1, 1], [], []>} : vector<8x256xbf16>, vector<256x512xbf16>, vector<8x512xf32> -> vector<8x512xf32>
    %c0_112 = arith.constant 0 : index
    %c0_113 = arith.constant 0 : index
    %198 = vector.load %arg6[%c0_112, %c0_113] : memref<1x512xf32, #tpu.memory_space<vmem>>, vector<1x512xf32>
    %199 = vector.broadcast %198 : vector<1x512xf32> to vector<8x512xf32>
    %200 = arith.addf %197, %199 : vector<8x512xf32>
    %c0_114 = arith.constant 0 : index
    %c0_115 = arith.constant 0 : index
    %201 = vector.load %arg15[%c0_114, %c0_115] : memref<8x128xf32, #tpu.memory_space<vmem>>, vector<8x128xf32>
    %202 = vector.extract_strided_slice %200 {offsets = [0, 0], sizes = [8, 128], strides = [1, 1]} : vector<8x512xf32> to vector<8x128xf32>
    %203 = arith.negf %202 : vector<8x128xf32>
    %204 = math.exp %203 : vector<8x128xf32>
    %cst_116 = arith.constant 1.000000e+00 : f32
    %205 = vector.broadcast %cst_116 : f32 to vector<8x128xf32>
    %206 = arith.addf %205, %204 : vector<8x128xf32>
    %207 = arith.divf %205, %206 : vector<8x128xf32>
    %208 = vector.extract_strided_slice %200 {offsets = [0, 128], sizes = [8, 128], strides = [1, 1]} : vector<8x512xf32> to vector<8x128xf32>
    %209 = arith.negf %208 : vector<8x128xf32>
    %210 = math.exp %209 : vector<8x128xf32>
    %cst_117 = arith.constant 1.000000e+00 : f32
    %211 = vector.broadcast %cst_117 : f32 to vector<8x128xf32>
    %212 = arith.addf %211, %210 : vector<8x128xf32>
    %213 = arith.divf %211, %212 : vector<8x128xf32>
    %214 = vector.extract_strided_slice %200 {offsets = [0, 256], sizes = [8, 128], strides = [1, 1]} : vector<8x512xf32> to vector<8x128xf32>
    %215 = math.tanh %214 : vector<8x128xf32>
    %216 = vector.extract_strided_slice %200 {offsets = [0, 384], sizes = [8, 128], strides = [1, 1]} : vector<8x512xf32> to vector<8x128xf32>
    %217 = arith.negf %216 : vector<8x128xf32>
    %218 = math.exp %217 : vector<8x128xf32>
    %cst_118 = arith.constant 1.000000e+00 : f32
    %219 = vector.broadcast %cst_118 : f32 to vector<8x128xf32>
    %220 = arith.addf %219, %218 : vector<8x128xf32>
    %221 = arith.divf %219, %220 : vector<8x128xf32>
    %222 = arith.mulf %213, %201 : vector<8x128xf32>
    %223 = arith.mulf %207, %215 : vector<8x128xf32>
    %224 = arith.addf %222, %223 : vector<8x128xf32>
    %225 = math.tanh %224 : vector<8x128xf32>
    %226 = arith.mulf %221, %225 : vector<8x128xf32>
    %c0_119 = arith.constant 0 : index
    %c0_120 = arith.constant 0 : index
    %227 = vector.load %arg14[%c0_119, %c0_120] : memref<8x128xf32, #tpu.memory_space<vmem>>, vector<8x128xf32>
    tpu.vector_store %arg14[%c0_119, %c0_120], %226 {strides = array<i32>} : memref<8x128xf32, #tpu.memory_space<vmem>>, vector<8x128xf32>,
    %c0_121 = arith.constant 0 : index
    %c0_122 = arith.constant 0 : index
    %228 = vector.load %arg15[%c0_121, %c0_122] : memref<8x128xf32, #tpu.memory_space<vmem>>, vector<8x128xf32>
    tpu.vector_store %arg15[%c0_121, %c0_122], %224 {strides = array<i32>} : memref<8x128xf32, #tpu.memory_space<vmem>>, vector<8x128xf32>,
    %229 = arith.index_cast %c3_i32 : i32 to index
    %c0_123 = arith.constant 0 : index
    %c0_124 = arith.constant 0 : index
    %230 = vector.load %arg10[%229, %c0_123, %c0_124] : memref<8x8x512xf32, #tpu.memory_space<vmem>>, vector<1x8x512xf32>
    %231 = vector.shape_cast %230 : vector<1x8x512xf32> to vector<8x512xf32>
    %c0_125 = arith.constant 0 : index
    %c0_126 = arith.constant 0 : index
    %232 = vector.load %arg3[%c0_125, %c0_126] : memref<128x512xbf16, #tpu.memory_space<vmem>>, vector<128x512xbf16>
    %cst_127 = arith.constant dense<0.000000e+00> : vector<8x512xf32>
    %233 = tpu.matmul %190, %232, %cst_127 {dimension_numbers = #tpu.dot_dimension_numbers<[1], [0], [0], [1], [0, 0, 1, 1], [], []>} : vector<8x128xbf16>, vector<128x512xbf16>, vector<8x512xf32> -> vector<8x512xf32>
    %234 = arith.addf %231, %233 : vector<8x512xf32>
    %c0_128 = arith.constant 0 : index
    %c0_129 = arith.constant 0 : index
    %235 = vector.load %arg13[%c0_128, %c0_129] : memref<8x128xf32, #tpu.memory_space<vmem>>, vector<8x128xf32>
    %236 = vector.extract_strided_slice %234 {offsets = [0, 0], sizes = [8, 128], strides = [1, 1]} : vector<8x512xf32> to vector<8x128xf32>
    %237 = arith.negf %236 : vector<8x128xf32>
    %238 = math.exp %237 : vector<8x128xf32>
    %cst_130 = arith.constant 1.000000e+00 : f32
    %239 = vector.broadcast %cst_130 : f32 to vector<8x128xf32>
    %240 = arith.addf %239, %238 : vector<8x128xf32>
    %241 = arith.divf %239, %240 : vector<8x128xf32>
    %242 = vector.extract_strided_slice %234 {offsets = [0, 128], sizes = [8, 128], strides = [1, 1]} : vector<8x512xf32> to vector<8x128xf32>
    %243 = arith.negf %242 : vector<8x128xf32>
    %244 = math.exp %243 : vector<8x128xf32>
    %cst_131 = arith.constant 1.000000e+00 : f32
    %245 = vector.broadcast %cst_131 : f32 to vector<8x128xf32>
    %246 = arith.addf %245, %244 : vector<8x128xf32>
    %247 = arith.divf %245, %246 : vector<8x128xf32>
    %248 = vector.extract_strided_slice %234 {offsets = [0, 256], sizes = [8, 128], strides = [1, 1]} : vector<8x512xf32> to vector<8x128xf32>
    %249 = math.tanh %248 : vector<8x128xf32>
    %250 = vector.extract_strided_slice %234 {offsets = [0, 384], sizes = [8, 128], strides = [1, 1]} : vector<8x512xf32> to vector<8x128xf32>
    %251 = arith.negf %250 : vector<8x128xf32>
    %252 = math.exp %251 : vector<8x128xf32>
    %cst_132 = arith.constant 1.000000e+00 : f32
    %253 = vector.broadcast %cst_132 : f32 to vector<8x128xf32>
    %254 = arith.addf %253, %252 : vector<8x128xf32>
    %255 = arith.divf %253, %254 : vector<8x128xf32>
    %256 = arith.mulf %247, %235 : vector<8x128xf32>
    %257 = arith.mulf %241, %249 : vector<8x128xf32>
    %258 = arith.addf %256, %257 : vector<8x128xf32>
    %259 = math.tanh %258 : vector<8x128xf32>
    %260 = arith.mulf %255, %259 : vector<8x128xf32>
    %c0_133 = arith.constant 0 : index
    %c0_134 = arith.constant 0 : index
    %261 = vector.load %arg12[%c0_133, %c0_134] : memref<8x128xf32, #tpu.memory_space<vmem>>, vector<8x128xf32>
    tpu.vector_store %arg12[%c0_133, %c0_134], %260 {strides = array<i32>} : memref<8x128xf32, #tpu.memory_space<vmem>>, vector<8x128xf32>,
    %c0_135 = arith.constant 0 : index
    %c0_136 = arith.constant 0 : index
    %262 = vector.load %arg13[%c0_135, %c0_136] : memref<8x128xf32, #tpu.memory_space<vmem>>, vector<8x128xf32>
    tpu.vector_store %arg13[%c0_135, %c0_136], %258 {strides = array<i32>} : memref<8x128xf32, #tpu.memory_space<vmem>>, vector<8x128xf32>,
    %c4_i32 = arith.constant 4 : i32
    %c0_137 = arith.constant 0 : index
    %c0_138 = arith.constant 0 : index
    %263 = vector.load %arg12[%c0_137, %c0_138] : memref<8x128xf32, #tpu.memory_space<vmem>>, vector<8x128xf32>
    %264 = arith.truncf %263 : vector<8x128xf32> to vector<8x128xbf16>
    %c0_139 = arith.constant 0 : index
    %c0_140 = arith.constant 0 : index
    %265 = vector.load %arg11[%c0_139, %c0_140] : memref<8x256xbf16, #tpu.memory_space<vmem>>, vector<8x128xbf16>
    tpu.vector_store %arg11[%c0_139, %c0_140], %264 {strides = array<i32>} : memref<8x256xbf16, #tpu.memory_space<vmem>>, vector<8x128xbf16>,
    %c0_141 = arith.constant 0 : index
    %c0_142 = arith.constant 0 : index
    %266 = vector.load %arg14[%c0_141, %c0_142] : memref<8x128xf32, #tpu.memory_space<vmem>>, vector<8x128xf32>
    %267 = arith.truncf %266 : vector<8x128xf32> to vector<8x128xbf16>
    %c0_143 = arith.constant 0 : index
    %c128_144 = arith.constant 128 : index
    %268 = vector.load %arg11[%c0_143, %c128_144] : memref<8x256xbf16, #tpu.memory_space<vmem>>, vector<8x128xbf16>
    tpu.vector_store %arg11[%c0_143, %c128_144], %267 {strides = array<i32>} : memref<8x256xbf16, #tpu.memory_space<vmem>>, vector<8x128xbf16>,
    %c0_145 = arith.constant 0 : index
    %c0_146 = arith.constant 0 : index
    %269 = vector.load %arg11[%c0_145, %c0_146] : memref<8x256xbf16, #tpu.memory_space<vmem>>, vector<8x256xbf16>
    %c0_147 = arith.constant 0 : index
    %c0_148 = arith.constant 0 : index
    %270 = vector.load %arg5[%c0_147, %c0_148] : memref<256x512xbf16, #tpu.memory_space<vmem>>, vector<256x512xbf16>
    %cst_149 = arith.constant dense<0.000000e+00> : vector<8x512xf32>
    %271 = tpu.matmul %269, %270, %cst_149 {dimension_numbers = #tpu.dot_dimension_numbers<[1], [0], [0], [1], [0, 0, 1, 1], [], []>} : vector<8x256xbf16>, vector<256x512xbf16>, vector<8x512xf32> -> vector<8x512xf32>
    %c0_150 = arith.constant 0 : index
    %c0_151 = arith.constant 0 : index
    %272 = vector.load %arg6[%c0_150, %c0_151] : memref<1x512xf32, #tpu.memory_space<vmem>>, vector<1x512xf32>
    %273 = vector.broadcast %272 : vector<1x512xf32> to vector<8x512xf32>
    %274 = arith.addf %271, %273 : vector<8x512xf32>
    %c0_152 = arith.constant 0 : index
    %c0_153 = arith.constant 0 : index
    %275 = vector.load %arg15[%c0_152, %c0_153] : memref<8x128xf32, #tpu.memory_space<vmem>>, vector<8x128xf32>
    %276 = vector.extract_strided_slice %274 {offsets = [0, 0], sizes = [8, 128], strides = [1, 1]} : vector<8x512xf32> to vector<8x128xf32>
    %277 = arith.negf %276 : vector<8x128xf32>
    %278 = math.exp %277 : vector<8x128xf32>
    %cst_154 = arith.constant 1.000000e+00 : f32
    %279 = vector.broadcast %cst_154 : f32 to vector<8x128xf32>
    %280 = arith.addf %279, %278 : vector<8x128xf32>
    %281 = arith.divf %279, %280 : vector<8x128xf32>
    %282 = vector.extract_strided_slice %274 {offsets = [0, 128], sizes = [8, 128], strides = [1, 1]} : vector<8x512xf32> to vector<8x128xf32>
    %283 = arith.negf %282 : vector<8x128xf32>
    %284 = math.exp %283 : vector<8x128xf32>
    %cst_155 = arith.constant 1.000000e+00 : f32
    %285 = vector.broadcast %cst_155 : f32 to vector<8x128xf32>
    %286 = arith.addf %285, %284 : vector<8x128xf32>
    %287 = arith.divf %285, %286 : vector<8x128xf32>
    %288 = vector.extract_strided_slice %274 {offsets = [0, 256], sizes = [8, 128], strides = [1, 1]} : vector<8x512xf32> to vector<8x128xf32>
    %289 = math.tanh %288 : vector<8x128xf32>
    %290 = vector.extract_strided_slice %274 {offsets = [0, 384], sizes = [8, 128], strides = [1, 1]} : vector<8x512xf32> to vector<8x128xf32>
    %291 = arith.negf %290 : vector<8x128xf32>
    %292 = math.exp %291 : vector<8x128xf32>
    %cst_156 = arith.constant 1.000000e+00 : f32
    %293 = vector.broadcast %cst_156 : f32 to vector<8x128xf32>
    %294 = arith.addf %293, %292 : vector<8x128xf32>
    %295 = arith.divf %293, %294 : vector<8x128xf32>
    %296 = arith.mulf %287, %275 : vector<8x128xf32>
    %297 = arith.mulf %281, %289 : vector<8x128xf32>
    %298 = arith.addf %296, %297 : vector<8x128xf32>
    %299 = math.tanh %298 : vector<8x128xf32>
    %300 = arith.mulf %295, %299 : vector<8x128xf32>
    %c0_157 = arith.constant 0 : index
    %c0_158 = arith.constant 0 : index
    %301 = vector.load %arg14[%c0_157, %c0_158] : memref<8x128xf32, #tpu.memory_space<vmem>>, vector<8x128xf32>
    tpu.vector_store %arg14[%c0_157, %c0_158], %300 {strides = array<i32>} : memref<8x128xf32, #tpu.memory_space<vmem>>, vector<8x128xf32>,
    %c0_159 = arith.constant 0 : index
    %c0_160 = arith.constant 0 : index
    %302 = vector.load %arg15[%c0_159, %c0_160] : memref<8x128xf32, #tpu.memory_space<vmem>>, vector<8x128xf32>
    tpu.vector_store %arg15[%c0_159, %c0_160], %298 {strides = array<i32>} : memref<8x128xf32, #tpu.memory_space<vmem>>, vector<8x128xf32>,
    %303 = arith.index_cast %c4_i32 : i32 to index
    %c0_161 = arith.constant 0 : index
    %c0_162 = arith.constant 0 : index
    %304 = vector.load %arg10[%303, %c0_161, %c0_162] : memref<8x8x512xf32, #tpu.memory_space<vmem>>, vector<1x8x512xf32>
    %305 = vector.shape_cast %304 : vector<1x8x512xf32> to vector<8x512xf32>
    %c0_163 = arith.constant 0 : index
    %c0_164 = arith.constant 0 : index
    %306 = vector.load %arg3[%c0_163, %c0_164] : memref<128x512xbf16, #tpu.memory_space<vmem>>, vector<128x512xbf16>
    %cst_165 = arith.constant dense<0.000000e+00> : vector<8x512xf32>
    %307 = tpu.matmul %264, %306, %cst_165 {dimension_numbers = #tpu.dot_dimension_numbers<[1], [0], [0], [1], [0, 0, 1, 1], [], []>} : vector<8x128xbf16>, vector<128x512xbf16>, vector<8x512xf32> -> vector<8x512xf32>
    %308 = arith.addf %305, %307 : vector<8x512xf32>
    %c0_166 = arith.constant 0 : index
    %c0_167 = arith.constant 0 : index
    %309 = vector.load %arg13[%c0_166, %c0_167] : memref<8x128xf32, #tpu.memory_space<vmem>>, vector<8x128xf32>
    %310 = vector.extract_strided_slice %308 {offsets = [0, 0], sizes = [8, 128], strides = [1, 1]} : vector<8x512xf32> to vector<8x128xf32>
    %311 = arith.negf %310 : vector<8x128xf32>
    %312 = math.exp %311 : vector<8x128xf32>
    %cst_168 = arith.constant 1.000000e+00 : f32
    %313 = vector.broadcast %cst_168 : f32 to vector<8x128xf32>
    %314 = arith.addf %313, %312 : vector<8x128xf32>
    %315 = arith.divf %313, %314 : vector<8x128xf32>
    %316 = vector.extract_strided_slice %308 {offsets = [0, 128], sizes = [8, 128], strides = [1, 1]} : vector<8x512xf32> to vector<8x128xf32>
    %317 = arith.negf %316 : vector<8x128xf32>
    %318 = math.exp %317 : vector<8x128xf32>
    %cst_169 = arith.constant 1.000000e+00 : f32
    %319 = vector.broadcast %cst_169 : f32 to vector<8x128xf32>
    %320 = arith.addf %319, %318 : vector<8x128xf32>
    %321 = arith.divf %319, %320 : vector<8x128xf32>
    %322 = vector.extract_strided_slice %308 {offsets = [0, 256], sizes = [8, 128], strides = [1, 1]} : vector<8x512xf32> to vector<8x128xf32>
    %323 = math.tanh %322 : vector<8x128xf32>
    %324 = vector.extract_strided_slice %308 {offsets = [0, 384], sizes = [8, 128], strides = [1, 1]} : vector<8x512xf32> to vector<8x128xf32>
    %325 = arith.negf %324 : vector<8x128xf32>
    %326 = math.exp %325 : vector<8x128xf32>
    %cst_170 = arith.constant 1.000000e+00 : f32
    %327 = vector.broadcast %cst_170 : f32 to vector<8x128xf32>
    %328 = arith.addf %327, %326 : vector<8x128xf32>
    %329 = arith.divf %327, %328 : vector<8x128xf32>
    %330 = arith.mulf %321, %309 : vector<8x128xf32>
    %331 = arith.mulf %315, %323 : vector<8x128xf32>
    %332 = arith.addf %330, %331 : vector<8x128xf32>
    %333 = math.tanh %332 : vector<8x128xf32>
    %334 = arith.mulf %329, %333 : vector<8x128xf32>
    %c0_171 = arith.constant 0 : index
    %c0_172 = arith.constant 0 : index
    %335 = vector.load %arg12[%c0_171, %c0_172] : memref<8x128xf32, #tpu.memory_space<vmem>>, vector<8x128xf32>
    tpu.vector_store %arg12[%c0_171, %c0_172], %334 {strides = array<i32>} : memref<8x128xf32, #tpu.memory_space<vmem>>, vector<8x128xf32>,
    %c0_173 = arith.constant 0 : index
    %c0_174 = arith.constant 0 : index
    %336 = vector.load %arg13[%c0_173, %c0_174] : memref<8x128xf32, #tpu.memory_space<vmem>>, vector<8x128xf32>
    tpu.vector_store %arg13[%c0_173, %c0_174], %332 {strides = array<i32>} : memref<8x128xf32, #tpu.memory_space<vmem>>, vector<8x128xf32>,
    %c5_i32 = arith.constant 5 : i32
    %c0_175 = arith.constant 0 : index
    %c0_176 = arith.constant 0 : index
    %337 = vector.load %arg12[%c0_175, %c0_176] : memref<8x128xf32, #tpu.memory_space<vmem>>, vector<8x128xf32>
    %338 = arith.truncf %337 : vector<8x128xf32> to vector<8x128xbf16>
    %c0_177 = arith.constant 0 : index
    %c0_178 = arith.constant 0 : index
    %339 = vector.load %arg11[%c0_177, %c0_178] : memref<8x256xbf16, #tpu.memory_space<vmem>>, vector<8x128xbf16>
    tpu.vector_store %arg11[%c0_177, %c0_178], %338 {strides = array<i32>} : memref<8x256xbf16, #tpu.memory_space<vmem>>, vector<8x128xbf16>,
    %c0_179 = arith.constant 0 : index
    %c0_180 = arith.constant 0 : index
    %340 = vector.load %arg14[%c0_179, %c0_180] : memref<8x128xf32, #tpu.memory_space<vmem>>, vector<8x128xf32>
    %341 = arith.truncf %340 : vector<8x128xf32> to vector<8x128xbf16>
    %c0_181 = arith.constant 0 : index
    %c128_182 = arith.constant 128 : index
    %342 = vector.load %arg11[%c0_181, %c128_182] : memref<8x256xbf16, #tpu.memory_space<vmem>>, vector<8x128xbf16>
    tpu.vector_store %arg11[%c0_181, %c128_182], %341 {strides = array<i32>} : memref<8x256xbf16, #tpu.memory_space<vmem>>, vector<8x128xbf16>,
    %c0_183 = arith.constant 0 : index
    %c0_184 = arith.constant 0 : index
    %343 = vector.load %arg11[%c0_183, %c0_184] : memref<8x256xbf16, #tpu.memory_space<vmem>>, vector<8x256xbf16>
    %c0_185 = arith.constant 0 : index
    %c0_186 = arith.constant 0 : index
    %344 = vector.load %arg5[%c0_185, %c0_186] : memref<256x512xbf16, #tpu.memory_space<vmem>>, vector<256x512xbf16>
    %cst_187 = arith.constant dense<0.000000e+00> : vector<8x512xf32>
    %345 = tpu.matmul %343, %344, %cst_187 {dimension_numbers = #tpu.dot_dimension_numbers<[1], [0], [0], [1], [0, 0, 1, 1], [], []>} : vector<8x256xbf16>, vector<256x512xbf16>, vector<8x512xf32> -> vector<8x512xf32>
    %c0_188 = arith.constant 0 : index
    %c0_189 = arith.constant 0 : index
    %346 = vector.load %arg6[%c0_188, %c0_189] : memref<1x512xf32, #tpu.memory_space<vmem>>, vector<1x512xf32>
    %347 = vector.broadcast %346 : vector<1x512xf32> to vector<8x512xf32>
    %348 = arith.addf %345, %347 : vector<8x512xf32>
    %c0_190 = arith.constant 0 : index
    %c0_191 = arith.constant 0 : index
    %349 = vector.load %arg15[%c0_190, %c0_191] : memref<8x128xf32, #tpu.memory_space<vmem>>, vector<8x128xf32>
    %350 = vector.extract_strided_slice %348 {offsets = [0, 0], sizes = [8, 128], strides = [1, 1]} : vector<8x512xf32> to vector<8x128xf32>
    %351 = arith.negf %350 : vector<8x128xf32>
    %352 = math.exp %351 : vector<8x128xf32>
    %cst_192 = arith.constant 1.000000e+00 : f32
    %353 = vector.broadcast %cst_192 : f32 to vector<8x128xf32>
    %354 = arith.addf %353, %352 : vector<8x128xf32>
    %355 = arith.divf %353, %354 : vector<8x128xf32>
    %356 = vector.extract_strided_slice %348 {offsets = [0, 128], sizes = [8, 128], strides = [1, 1]} : vector<8x512xf32> to vector<8x128xf32>
    %357 = arith.negf %356 : vector<8x128xf32>
    %358 = math.exp %357 : vector<8x128xf32>
    %cst_193 = arith.constant 1.000000e+00 : f32
    %359 = vector.broadcast %cst_193 : f32 to vector<8x128xf32>
    %360 = arith.addf %359, %358 : vector<8x128xf32>
    %361 = arith.divf %359, %360 : vector<8x128xf32>
    %362 = vector.extract_strided_slice %348 {offsets = [0, 256], sizes = [8, 128], strides = [1, 1]} : vector<8x512xf32> to vector<8x128xf32>
    %363 = math.tanh %362 : vector<8x128xf32>
    %364 = vector.extract_strided_slice %348 {offsets = [0, 384], sizes = [8, 128], strides = [1, 1]} : vector<8x512xf32> to vector<8x128xf32>
    %365 = arith.negf %364 : vector<8x128xf32>
    %366 = math.exp %365 : vector<8x128xf32>
    %cst_194 = arith.constant 1.000000e+00 : f32
    %367 = vector.broadcast %cst_194 : f32 to vector<8x128xf32>
    %368 = arith.addf %367, %366 : vector<8x128xf32>
    %369 = arith.divf %367, %368 : vector<8x128xf32>
    %370 = arith.mulf %361, %349 : vector<8x128xf32>
    %371 = arith.mulf %355, %363 : vector<8x128xf32>
    %372 = arith.addf %370, %371 : vector<8x128xf32>
    %373 = math.tanh %372 : vector<8x128xf32>
    %374 = arith.mulf %369, %373 : vector<8x128xf32>
    %c0_195 = arith.constant 0 : index
    %c0_196 = arith.constant 0 : index
    %375 = vector.load %arg14[%c0_195, %c0_196] : memref<8x128xf32, #tpu.memory_space<vmem>>, vector<8x128xf32>
    tpu.vector_store %arg14[%c0_195, %c0_196], %374 {strides = array<i32>} : memref<8x128xf32, #tpu.memory_space<vmem>>, vector<8x128xf32>,
    %c0_197 = arith.constant 0 : index
    %c0_198 = arith.constant 0 : index
    %376 = vector.load %arg15[%c0_197, %c0_198] : memref<8x128xf32, #tpu.memory_space<vmem>>, vector<8x128xf32>
    tpu.vector_store %arg15[%c0_197, %c0_198], %372 {strides = array<i32>} : memref<8x128xf32, #tpu.memory_space<vmem>>, vector<8x128xf32>,
    %377 = arith.index_cast %c5_i32 : i32 to index
    %c0_199 = arith.constant 0 : index
    %c0_200 = arith.constant 0 : index
    %378 = vector.load %arg10[%377, %c0_199, %c0_200] : memref<8x8x512xf32, #tpu.memory_space<vmem>>, vector<1x8x512xf32>
    %379 = vector.shape_cast %378 : vector<1x8x512xf32> to vector<8x512xf32>
    %c0_201 = arith.constant 0 : index
    %c0_202 = arith.constant 0 : index
    %380 = vector.load %arg3[%c0_201, %c0_202] : memref<128x512xbf16, #tpu.memory_space<vmem>>, vector<128x512xbf16>
    %cst_203 = arith.constant dense<0.000000e+00> : vector<8x512xf32>
    %381 = tpu.matmul %338, %380, %cst_203 {dimension_numbers = #tpu.dot_dimension_numbers<[1], [0], [0], [1], [0, 0, 1, 1], [], []>} : vector<8x128xbf16>, vector<128x512xbf16>, vector<8x512xf32> -> vector<8x512xf32>
    %382 = arith.addf %379, %381 : vector<8x512xf32>
    %c0_204 = arith.constant 0 : index
    %c0_205 = arith.constant 0 : index
    %383 = vector.load %arg13[%c0_204, %c0_205] : memref<8x128xf32, #tpu.memory_space<vmem>>, vector<8x128xf32>
    %384 = vector.extract_strided_slice %382 {offsets = [0, 0], sizes = [8, 128], strides = [1, 1]} : vector<8x512xf32> to vector<8x128xf32>
    %385 = arith.negf %384 : vector<8x128xf32>
    %386 = math.exp %385 : vector<8x128xf32>
    %cst_206 = arith.constant 1.000000e+00 : f32
    %387 = vector.broadcast %cst_206 : f32 to vector<8x128xf32>
    %388 = arith.addf %387, %386 : vector<8x128xf32>
    %389 = arith.divf %387, %388 : vector<8x128xf32>
    %390 = vector.extract_strided_slice %382 {offsets = [0, 128], sizes = [8, 128], strides = [1, 1]} : vector<8x512xf32> to vector<8x128xf32>
    %391 = arith.negf %390 : vector<8x128xf32>
    %392 = math.exp %391 : vector<8x128xf32>
    %cst_207 = arith.constant 1.000000e+00 : f32
    %393 = vector.broadcast %cst_207 : f32 to vector<8x128xf32>
    %394 = arith.addf %393, %392 : vector<8x128xf32>
    %395 = arith.divf %393, %394 : vector<8x128xf32>
    %396 = vector.extract_strided_slice %382 {offsets = [0, 256], sizes = [8, 128], strides = [1, 1]} : vector<8x512xf32> to vector<8x128xf32>
    %397 = math.tanh %396 : vector<8x128xf32>
    %398 = vector.extract_strided_slice %382 {offsets = [0, 384], sizes = [8, 128], strides = [1, 1]} : vector<8x512xf32> to vector<8x128xf32>
    %399 = arith.negf %398 : vector<8x128xf32>
    %400 = math.exp %399 : vector<8x128xf32>
    %cst_208 = arith.constant 1.000000e+00 : f32
    %401 = vector.broadcast %cst_208 : f32 to vector<8x128xf32>
    %402 = arith.addf %401, %400 : vector<8x128xf32>
    %403 = arith.divf %401, %402 : vector<8x128xf32>
    %404 = arith.mulf %395, %383 : vector<8x128xf32>
    %405 = arith.mulf %389, %397 : vector<8x128xf32>
    %406 = arith.addf %404, %405 : vector<8x128xf32>
    %407 = math.tanh %406 : vector<8x128xf32>
    %408 = arith.mulf %403, %407 : vector<8x128xf32>
    %c0_209 = arith.constant 0 : index
    %c0_210 = arith.constant 0 : index
    %409 = vector.load %arg12[%c0_209, %c0_210] : memref<8x128xf32, #tpu.memory_space<vmem>>, vector<8x128xf32>
    tpu.vector_store %arg12[%c0_209, %c0_210], %408 {strides = array<i32>} : memref<8x128xf32, #tpu.memory_space<vmem>>, vector<8x128xf32>,
    %c0_211 = arith.constant 0 : index
    %c0_212 = arith.constant 0 : index
    %410 = vector.load %arg13[%c0_211, %c0_212] : memref<8x128xf32, #tpu.memory_space<vmem>>, vector<8x128xf32>
    tpu.vector_store %arg13[%c0_211, %c0_212], %406 {strides = array<i32>} : memref<8x128xf32, #tpu.memory_space<vmem>>, vector<8x128xf32>,
    %c6_i32 = arith.constant 6 : i32
    %c0_213 = arith.constant 0 : index
    %c0_214 = arith.constant 0 : index
    %411 = vector.load %arg12[%c0_213, %c0_214] : memref<8x128xf32, #tpu.memory_space<vmem>>, vector<8x128xf32>
    %412 = arith.truncf %411 : vector<8x128xf32> to vector<8x128xbf16>
    %c0_215 = arith.constant 0 : index
    %c0_216 = arith.constant 0 : index
    %413 = vector.load %arg11[%c0_215, %c0_216] : memref<8x256xbf16, #tpu.memory_space<vmem>>, vector<8x128xbf16>
    tpu.vector_store %arg11[%c0_215, %c0_216], %412 {strides = array<i32>} : memref<8x256xbf16, #tpu.memory_space<vmem>>, vector<8x128xbf16>,
    %c0_217 = arith.constant 0 : index
    %c0_218 = arith.constant 0 : index
    %414 = vector.load %arg14[%c0_217, %c0_218] : memref<8x128xf32, #tpu.memory_space<vmem>>, vector<8x128xf32>
    %415 = arith.truncf %414 : vector<8x128xf32> to vector<8x128xbf16>
    %c0_219 = arith.constant 0 : index
    %c128_220 = arith.constant 128 : index
    %416 = vector.load %arg11[%c0_219, %c128_220] : memref<8x256xbf16, #tpu.memory_space<vmem>>, vector<8x128xbf16>
    tpu.vector_store %arg11[%c0_219, %c128_220], %415 {strides = array<i32>} : memref<8x256xbf16, #tpu.memory_space<vmem>>, vector<8x128xbf16>,
    %c0_221 = arith.constant 0 : index
    %c0_222 = arith.constant 0 : index
    %417 = vector.load %arg11[%c0_221, %c0_222] : memref<8x256xbf16, #tpu.memory_space<vmem>>, vector<8x256xbf16>
    %c0_223 = arith.constant 0 : index
    %c0_224 = arith.constant 0 : index
    %418 = vector.load %arg5[%c0_223, %c0_224] : memref<256x512xbf16, #tpu.memory_space<vmem>>, vector<256x512xbf16>
    %cst_225 = arith.constant dense<0.000000e+00> : vector<8x512xf32>
    %419 = tpu.matmul %417, %418, %cst_225 {dimension_numbers = #tpu.dot_dimension_numbers<[1], [0], [0], [1], [0, 0, 1, 1], [], []>} : vector<8x256xbf16>, vector<256x512xbf16>, vector<8x512xf32> -> vector<8x512xf32>
    %c0_226 = arith.constant 0 : index
    %c0_227 = arith.constant 0 : index
    %420 = vector.load %arg6[%c0_226, %c0_227] : memref<1x512xf32, #tpu.memory_space<vmem>>, vector<1x512xf32>
    %421 = vector.broadcast %420 : vector<1x512xf32> to vector<8x512xf32>
    %422 = arith.addf %419, %421 : vector<8x512xf32>
    %c0_228 = arith.constant 0 : index
    %c0_229 = arith.constant 0 : index
    %423 = vector.load %arg15[%c0_228, %c0_229] : memref<8x128xf32, #tpu.memory_space<vmem>>, vector<8x128xf32>
    %424 = vector.extract_strided_slice %422 {offsets = [0, 0], sizes = [8, 128], strides = [1, 1]} : vector<8x512xf32> to vector<8x128xf32>
    %425 = arith.negf %424 : vector<8x128xf32>
    %426 = math.exp %425 : vector<8x128xf32>
    %cst_230 = arith.constant 1.000000e+00 : f32
    %427 = vector.broadcast %cst_230 : f32 to vector<8x128xf32>
    %428 = arith.addf %427, %426 : vector<8x128xf32>
    %429 = arith.divf %427, %428 : vector<8x128xf32>
    %430 = vector.extract_strided_slice %422 {offsets = [0, 128], sizes = [8, 128], strides = [1, 1]} : vector<8x512xf32> to vector<8x128xf32>
    %431 = arith.negf %430 : vector<8x128xf32>
    %432 = math.exp %431 : vector<8x128xf32>
    %cst_231 = arith.constant 1.000000e+00 : f32
    %433 = vector.broadcast %cst_231 : f32 to vector<8x128xf32>
    %434 = arith.addf %433, %432 : vector<8x128xf32>
    %435 = arith.divf %433, %434 : vector<8x128xf32>
    %436 = vector.extract_strided_slice %422 {offsets = [0, 256], sizes = [8, 128], strides = [1, 1]} : vector<8x512xf32> to vector<8x128xf32>
    %437 = math.tanh %436 : vector<8x128xf32>
    %438 = vector.extract_strided_slice %422 {offsets = [0, 384], sizes = [8, 128], strides = [1, 1]} : vector<8x512xf32> to vector<8x128xf32>
    %439 = arith.negf %438 : vector<8x128xf32>
    %440 = math.exp %439 : vector<8x128xf32>
    %cst_232 = arith.constant 1.000000e+00 : f32
    %441 = vector.broadcast %cst_232 : f32 to vector<8x128xf32>
    %442 = arith.addf %441, %440 : vector<8x128xf32>
    %443 = arith.divf %441, %442 : vector<8x128xf32>
    %444 = arith.mulf %435, %423 : vector<8x128xf32>
    %445 = arith.mulf %429, %437 : vector<8x128xf32>
    %446 = arith.addf %444, %445 : vector<8x128xf32>
    %447 = math.tanh %446 : vector<8x128xf32>
    %448 = arith.mulf %443, %447 : vector<8x128xf32>
    %c0_233 = arith.constant 0 : index
    %c0_234 = arith.constant 0 : index
    %449 = vector.load %arg14[%c0_233, %c0_234] : memref<8x128xf32, #tpu.memory_space<vmem>>, vector<8x128xf32>
    tpu.vector_store %arg14[%c0_233, %c0_234], %448 {strides = array<i32>} : memref<8x128xf32, #tpu.memory_space<vmem>>, vector<8x128xf32>,
    %c0_235 = arith.constant 0 : index
    %c0_236 = arith.constant 0 : index
    %450 = vector.load %arg15[%c0_235, %c0_236] : memref<8x128xf32, #tpu.memory_space<vmem>>, vector<8x128xf32>
    tpu.vector_store %arg15[%c0_235, %c0_236], %446 {strides = array<i32>} : memref<8x128xf32, #tpu.memory_space<vmem>>, vector<8x128xf32>,
    %451 = arith.index_cast %c6_i32 : i32 to index
    %c0_237 = arith.constant 0 : index
    %c0_238 = arith.constant 0 : index
    %452 = vector.load %arg10[%451, %c0_237, %c0_238] : memref<8x8x512xf32, #tpu.memory_space<vmem>>, vector<1x8x512xf32>
    %453 = vector.shape_cast %452 : vector<1x8x512xf32> to vector<8x512xf32>
    %c0_239 = arith.constant 0 : index
    %c0_240 = arith.constant 0 : index
    %454 = vector.load %arg3[%c0_239, %c0_240] : memref<128x512xbf16, #tpu.memory_space<vmem>>, vector<128x512xbf16>
    %cst_241 = arith.constant dense<0.000000e+00> : vector<8x512xf32>
    %455 = tpu.matmul %412, %454, %cst_241 {dimension_numbers = #tpu.dot_dimension_numbers<[1], [0], [0], [1], [0, 0, 1, 1], [], []>} : vector<8x128xbf16>, vector<128x512xbf16>, vector<8x512xf32> -> vector<8x512xf32>
    %456 = arith.addf %453, %455 : vector<8x512xf32>
    %c0_242 = arith.constant 0 : index
    %c0_243 = arith.constant 0 : index
    %457 = vector.load %arg13[%c0_242, %c0_243] : memref<8x128xf32, #tpu.memory_space<vmem>>, vector<8x128xf32>
    %458 = vector.extract_strided_slice %456 {offsets = [0, 0], sizes = [8, 128], strides = [1, 1]} : vector<8x512xf32> to vector<8x128xf32>
    %459 = arith.negf %458 : vector<8x128xf32>
    %460 = math.exp %459 : vector<8x128xf32>
    %cst_244 = arith.constant 1.000000e+00 : f32
    %461 = vector.broadcast %cst_244 : f32 to vector<8x128xf32>
    %462 = arith.addf %461, %460 : vector<8x128xf32>
    %463 = arith.divf %461, %462 : vector<8x128xf32>
    %464 = vector.extract_strided_slice %456 {offsets = [0, 128], sizes = [8, 128], strides = [1, 1]} : vector<8x512xf32> to vector<8x128xf32>
    %465 = arith.negf %464 : vector<8x128xf32>
    %466 = math.exp %465 : vector<8x128xf32>
    %cst_245 = arith.constant 1.000000e+00 : f32
    %467 = vector.broadcast %cst_245 : f32 to vector<8x128xf32>
    %468 = arith.addf %467, %466 : vector<8x128xf32>
    %469 = arith.divf %467, %468 : vector<8x128xf32>
    %470 = vector.extract_strided_slice %456 {offsets = [0, 256], sizes = [8, 128], strides = [1, 1]} : vector<8x512xf32> to vector<8x128xf32>
    %471 = math.tanh %470 : vector<8x128xf32>
    %472 = vector.extract_strided_slice %456 {offsets = [0, 384], sizes = [8, 128], strides = [1, 1]} : vector<8x512xf32> to vector<8x128xf32>
    %473 = arith.negf %472 : vector<8x128xf32>
    %474 = math.exp %473 : vector<8x128xf32>
    %cst_246 = arith.constant 1.000000e+00 : f32
    %475 = vector.broadcast %cst_246 : f32 to vector<8x128xf32>
    %476 = arith.addf %475, %474 : vector<8x128xf32>
    %477 = arith.divf %475, %476 : vector<8x128xf32>
    %478 = arith.mulf %469, %457 : vector<8x128xf32>
    %479 = arith.mulf %463, %471 : vector<8x128xf32>
    %480 = arith.addf %478, %479 : vector<8x128xf32>
    %481 = math.tanh %480 : vector<8x128xf32>
    %482 = arith.mulf %477, %481 : vector<8x128xf32>
    %c0_247 = arith.constant 0 : index
    %c0_248 = arith.constant 0 : index
    %483 = vector.load %arg12[%c0_247, %c0_248] : memref<8x128xf32, #tpu.memory_space<vmem>>, vector<8x128xf32>
    tpu.vector_store %arg12[%c0_247, %c0_248], %482 {strides = array<i32>} : memref<8x128xf32, #tpu.memory_space<vmem>>, vector<8x128xf32>,
    %c0_249 = arith.constant 0 : index
    %c0_250 = arith.constant 0 : index
    %484 = vector.load %arg13[%c0_249, %c0_250] : memref<8x128xf32, #tpu.memory_space<vmem>>, vector<8x128xf32>
    tpu.vector_store %arg13[%c0_249, %c0_250], %480 {strides = array<i32>} : memref<8x128xf32, #tpu.memory_space<vmem>>, vector<8x128xf32>,
    %c7_i32 = arith.constant 7 : i32
    %c0_251 = arith.constant 0 : index
    %c0_252 = arith.constant 0 : index
    %485 = vector.load %arg12[%c0_251, %c0_252] : memref<8x128xf32, #tpu.memory_space<vmem>>, vector<8x128xf32>
    %486 = arith.truncf %485 : vector<8x128xf32> to vector<8x128xbf16>
    %c0_253 = arith.constant 0 : index
    %c0_254 = arith.constant 0 : index
    %487 = vector.load %arg11[%c0_253, %c0_254] : memref<8x256xbf16, #tpu.memory_space<vmem>>, vector<8x128xbf16>
    tpu.vector_store %arg11[%c0_253, %c0_254], %486 {strides = array<i32>} : memref<8x256xbf16, #tpu.memory_space<vmem>>, vector<8x128xbf16>,
    %c0_255 = arith.constant 0 : index
    %c0_256 = arith.constant 0 : index
    %488 = vector.load %arg14[%c0_255, %c0_256] : memref<8x128xf32, #tpu.memory_space<vmem>>, vector<8x128xf32>
    %489 = arith.truncf %488 : vector<8x128xf32> to vector<8x128xbf16>
    %c0_257 = arith.constant 0 : index
    %c128_258 = arith.constant 128 : index
    %490 = vector.load %arg11[%c0_257, %c128_258] : memref<8x256xbf16, #tpu.memory_space<vmem>>, vector<8x128xbf16>
    tpu.vector_store %arg11[%c0_257, %c128_258], %489 {strides = array<i32>} : memref<8x256xbf16, #tpu.memory_space<vmem>>, vector<8x128xbf16>,
    %c0_259 = arith.constant 0 : index
    %c0_260 = arith.constant 0 : index
    %491 = vector.load %arg11[%c0_259, %c0_260] : memref<8x256xbf16, #tpu.memory_space<vmem>>, vector<8x256xbf16>
    %c0_261 = arith.constant 0 : index
    %c0_262 = arith.constant 0 : index
    %492 = vector.load %arg5[%c0_261, %c0_262] : memref<256x512xbf16, #tpu.memory_space<vmem>>, vector<256x512xbf16>
    %cst_263 = arith.constant dense<0.000000e+00> : vector<8x512xf32>
    %493 = tpu.matmul %491, %492, %cst_263 {dimension_numbers = #tpu.dot_dimension_numbers<[1], [0], [0], [1], [0, 0, 1, 1], [], []>} : vector<8x256xbf16>, vector<256x512xbf16>, vector<8x512xf32> -> vector<8x512xf32>
    %c0_264 = arith.constant 0 : index
    %c0_265 = arith.constant 0 : index
    %494 = vector.load %arg6[%c0_264, %c0_265] : memref<1x512xf32, #tpu.memory_space<vmem>>, vector<1x512xf32>
    %495 = vector.broadcast %494 : vector<1x512xf32> to vector<8x512xf32>
    %496 = arith.addf %493, %495 : vector<8x512xf32>
    %c0_266 = arith.constant 0 : index
    %c0_267 = arith.constant 0 : index
    %497 = vector.load %arg15[%c0_266, %c0_267] : memref<8x128xf32, #tpu.memory_space<vmem>>, vector<8x128xf32>
    %498 = vector.extract_strided_slice %496 {offsets = [0, 0], sizes = [8, 128], strides = [1, 1]} : vector<8x512xf32> to vector<8x128xf32>
    %499 = arith.negf %498 : vector<8x128xf32>
    %500 = math.exp %499 : vector<8x128xf32>
    %cst_268 = arith.constant 1.000000e+00 : f32
    %501 = vector.broadcast %cst_268 : f32 to vector<8x128xf32>
    %502 = arith.addf %501, %500 : vector<8x128xf32>
    %503 = arith.divf %501, %502 : vector<8x128xf32>
    %504 = vector.extract_strided_slice %496 {offsets = [0, 128], sizes = [8, 128], strides = [1, 1]} : vector<8x512xf32> to vector<8x128xf32>
    %505 = arith.negf %504 : vector<8x128xf32>
    %506 = math.exp %505 : vector<8x128xf32>
    %cst_269 = arith.constant 1.000000e+00 : f32
    %507 = vector.broadcast %cst_269 : f32 to vector<8x128xf32>
    %508 = arith.addf %507, %506 : vector<8x128xf32>
    %509 = arith.divf %507, %508 : vector<8x128xf32>
    %510 = vector.extract_strided_slice %496 {offsets = [0, 256], sizes = [8, 128], strides = [1, 1]} : vector<8x512xf32> to vector<8x128xf32>
    %511 = math.tanh %510 : vector<8x128xf32>
    %512 = vector.extract_strided_slice %496 {offsets = [0, 384], sizes = [8, 128], strides = [1, 1]} : vector<8x512xf32> to vector<8x128xf32>
    %513 = arith.negf %512 : vector<8x128xf32>
    %514 = math.exp %513 : vector<8x128xf32>
    %cst_270 = arith.constant 1.000000e+00 : f32
    %515 = vector.broadcast %cst_270 : f32 to vector<8x128xf32>
    %516 = arith.addf %515, %514 : vector<8x128xf32>
    %517 = arith.divf %515, %516 : vector<8x128xf32>
    %518 = arith.mulf %509, %497 : vector<8x128xf32>
    %519 = arith.mulf %503, %511 : vector<8x128xf32>
    %520 = arith.addf %518, %519 : vector<8x128xf32>
    %521 = math.tanh %520 : vector<8x128xf32>
    %522 = arith.mulf %517, %521 : vector<8x128xf32>
    %c0_271 = arith.constant 0 : index
    %c0_272 = arith.constant 0 : index
    %523 = vector.load %arg14[%c0_271, %c0_272] : memref<8x128xf32, #tpu.memory_space<vmem>>, vector<8x128xf32>
    tpu.vector_store %arg14[%c0_271, %c0_272], %522 {strides = array<i32>} : memref<8x128xf32, #tpu.memory_space<vmem>>, vector<8x128xf32>,
    %c0_273 = arith.constant 0 : index
    %c0_274 = arith.constant 0 : index
    %524 = vector.load %arg15[%c0_273, %c0_274] : memref<8x128xf32, #tpu.memory_space<vmem>>, vector<8x128xf32>
    tpu.vector_store %arg15[%c0_273, %c0_274], %520 {strides = array<i32>} : memref<8x128xf32, #tpu.memory_space<vmem>>, vector<8x128xf32>,
    %525 = arith.index_cast %c7_i32 : i32 to index
    %c0_275 = arith.constant 0 : index
    %c0_276 = arith.constant 0 : index
    %526 = vector.load %arg10[%525, %c0_275, %c0_276] : memref<8x8x512xf32, #tpu.memory_space<vmem>>, vector<1x8x512xf32>
    %527 = vector.shape_cast %526 : vector<1x8x512xf32> to vector<8x512xf32>
    %c0_277 = arith.constant 0 : index
    %c0_278 = arith.constant 0 : index
    %528 = vector.load %arg3[%c0_277, %c0_278] : memref<128x512xbf16, #tpu.memory_space<vmem>>, vector<128x512xbf16>
    %cst_279 = arith.constant dense<0.000000e+00> : vector<8x512xf32>
    %529 = tpu.matmul %486, %528, %cst_279 {dimension_numbers = #tpu.dot_dimension_numbers<[1], [0], [0], [1], [0, 0, 1, 1], [], []>} : vector<8x128xbf16>, vector<128x512xbf16>, vector<8x512xf32> -> vector<8x512xf32>
    %530 = arith.addf %527, %529 : vector<8x512xf32>
    %c0_280 = arith.constant 0 : index
    %c0_281 = arith.constant 0 : index
    %531 = vector.load %arg13[%c0_280, %c0_281] : memref<8x128xf32, #tpu.memory_space<vmem>>, vector<8x128xf32>
    %532 = vector.extract_strided_slice %530 {offsets = [0, 0], sizes = [8, 128], strides = [1, 1]} : vector<8x512xf32> to vector<8x128xf32>
    %533 = arith.negf %532 : vector<8x128xf32>
    %534 = math.exp %533 : vector<8x128xf32>
    %cst_282 = arith.constant 1.000000e+00 : f32
    %535 = vector.broadcast %cst_282 : f32 to vector<8x128xf32>
    %536 = arith.addf %535, %534 : vector<8x128xf32>
    %537 = arith.divf %535, %536 : vector<8x128xf32>
    %538 = vector.extract_strided_slice %530 {offsets = [0, 128], sizes = [8, 128], strides = [1, 1]} : vector<8x512xf32> to vector<8x128xf32>
    %539 = arith.negf %538 : vector<8x128xf32>
    %540 = math.exp %539 : vector<8x128xf32>
    %cst_283 = arith.constant 1.000000e+00 : f32
    %541 = vector.broadcast %cst_283 : f32 to vector<8x128xf32>
    %542 = arith.addf %541, %540 : vector<8x128xf32>
    %543 = arith.divf %541, %542 : vector<8x128xf32>
    %544 = vector.extract_strided_slice %530 {offsets = [0, 256], sizes = [8, 128], strides = [1, 1]} : vector<8x512xf32> to vector<8x128xf32>
    %545 = math.tanh %544 : vector<8x128xf32>
    %546 = vector.extract_strided_slice %530 {offsets = [0, 384], sizes = [8, 128], strides = [1, 1]} : vector<8x512xf32> to vector<8x128xf32>
    %547 = arith.negf %546 : vector<8x128xf32>
    %548 = math.exp %547 : vector<8x128xf32>
    %cst_284 = arith.constant 1.000000e+00 : f32
    %549 = vector.broadcast %cst_284 : f32 to vector<8x128xf32>
    %550 = arith.addf %549, %548 : vector<8x128xf32>
    %551 = arith.divf %549, %550 : vector<8x128xf32>
    %552 = arith.mulf %543, %531 : vector<8x128xf32>
    %553 = arith.mulf %537, %545 : vector<8x128xf32>
    %554 = arith.addf %552, %553 : vector<8x128xf32>
    %555 = math.tanh %554 : vector<8x128xf32>
    %556 = arith.mulf %551, %555 : vector<8x128xf32>
    %c0_285 = arith.constant 0 : index
    %c0_286 = arith.constant 0 : index
    %557 = vector.load %arg12[%c0_285, %c0_286] : memref<8x128xf32, #tpu.memory_space<vmem>>, vector<8x128xf32>
    tpu.vector_store %arg12[%c0_285, %c0_286], %556 {strides = array<i32>} : memref<8x128xf32, #tpu.memory_space<vmem>>, vector<8x128xf32>,
    %c0_287 = arith.constant 0 : index
    %c0_288 = arith.constant 0 : index
    %558 = vector.load %arg13[%c0_287, %c0_288] : memref<8x128xf32, #tpu.memory_space<vmem>>, vector<8x128xf32>
    tpu.vector_store %arg13[%c0_287, %c0_288], %554 {strides = array<i32>} : memref<8x128xf32, #tpu.memory_space<vmem>>, vector<8x128xf32>,
    %c7_i32_289 = arith.constant 7 : i32
    %c0_290 = arith.constant 0 : index
    %c0_291 = arith.constant 0 : index
    %559 = vector.load %arg12[%c0_290, %c0_291] : memref<8x128xf32, #tpu.memory_space<vmem>>, vector<8x128xf32>
    %560 = arith.truncf %559 : vector<8x128xf32> to vector<8x128xbf16>
    %c0_292 = arith.constant 0 : index
    %c0_293 = arith.constant 0 : index
    %561 = vector.load %arg11[%c0_292, %c0_293] : memref<8x256xbf16, #tpu.memory_space<vmem>>, vector<8x128xbf16>
    tpu.vector_store %arg11[%c0_292, %c0_293], %560 {strides = array<i32>} : memref<8x256xbf16, #tpu.memory_space<vmem>>, vector<8x128xbf16>,
    %c0_294 = arith.constant 0 : index
    %c0_295 = arith.constant 0 : index
    %562 = vector.load %arg14[%c0_294, %c0_295] : memref<8x128xf32, #tpu.memory_space<vmem>>, vector<8x128xf32>
    %563 = arith.truncf %562 : vector<8x128xf32> to vector<8x128xbf16>
    %c0_296 = arith.constant 0 : index
    %c128_297 = arith.constant 128 : index
    %564 = vector.load %arg11[%c0_296, %c128_297] : memref<8x256xbf16, #tpu.memory_space<vmem>>, vector<8x128xbf16>
    tpu.vector_store %arg11[%c0_296, %c128_297], %563 {strides = array<i32>} : memref<8x256xbf16, #tpu.memory_space<vmem>>, vector<8x128xbf16>,
    %c0_298 = arith.constant 0 : index
    %c0_299 = arith.constant 0 : index
    %565 = vector.load %arg11[%c0_298, %c0_299] : memref<8x256xbf16, #tpu.memory_space<vmem>>, vector<8x256xbf16>
    %c0_300 = arith.constant 0 : index
    %c0_301 = arith.constant 0 : index
    %566 = vector.load %arg5[%c0_300, %c0_301] : memref<256x512xbf16, #tpu.memory_space<vmem>>, vector<256x512xbf16>
    %cst_302 = arith.constant dense<0.000000e+00> : vector<8x512xf32>
    %567 = tpu.matmul %565, %566, %cst_302 {dimension_numbers = #tpu.dot_dimension_numbers<[1], [0], [0], [1], [0, 0, 1, 1], [], []>} : vector<8x256xbf16>, vector<256x512xbf16>, vector<8x512xf32> -> vector<8x512xf32>
    %c0_303 = arith.constant 0 : index
    %c0_304 = arith.constant 0 : index
    %568 = vector.load %arg6[%c0_303, %c0_304] : memref<1x512xf32, #tpu.memory_space<vmem>>, vector<1x512xf32>
    %569 = vector.broadcast %568 : vector<1x512xf32> to vector<8x512xf32>
    %570 = arith.addf %567, %569 : vector<8x512xf32>
    %c0_305 = arith.constant 0 : index
    %c0_306 = arith.constant 0 : index
    %571 = vector.load %arg15[%c0_305, %c0_306] : memref<8x128xf32, #tpu.memory_space<vmem>>, vector<8x128xf32>
    %572 = vector.extract_strided_slice %570 {offsets = [0, 0], sizes = [8, 128], strides = [1, 1]} : vector<8x512xf32> to vector<8x128xf32>
    %573 = arith.negf %572 : vector<8x128xf32>
    %574 = math.exp %573 : vector<8x128xf32>
    %cst_307 = arith.constant 1.000000e+00 : f32
    %575 = vector.broadcast %cst_307 : f32 to vector<8x128xf32>
    %576 = arith.addf %575, %574 : vector<8x128xf32>
    %577 = arith.divf %575, %576 : vector<8x128xf32>
    %578 = vector.extract_strided_slice %570 {offsets = [0, 128], sizes = [8, 128], strides = [1, 1]} : vector<8x512xf32> to vector<8x128xf32>
    %579 = arith.negf %578 : vector<8x128xf32>
    %580 = math.exp %579 : vector<8x128xf32>
    %cst_308 = arith.constant 1.000000e+00 : f32
    %581 = vector.broadcast %cst_308 : f32 to vector<8x128xf32>
    %582 = arith.addf %581, %580 : vector<8x128xf32>
    %583 = arith.divf %581, %582 : vector<8x128xf32>
    %584 = vector.extract_strided_slice %570 {offsets = [0, 256], sizes = [8, 128], strides = [1, 1]} : vector<8x512xf32> to vector<8x128xf32>
    %585 = math.tanh %584 : vector<8x128xf32>
    %586 = vector.extract_strided_slice %570 {offsets = [0, 384], sizes = [8, 128], strides = [1, 1]} : vector<8x512xf32> to vector<8x128xf32>
    %587 = arith.negf %586 : vector<8x128xf32>
    %588 = math.exp %587 : vector<8x128xf32>
    %cst_309 = arith.constant 1.000000e+00 : f32
    %589 = vector.broadcast %cst_309 : f32 to vector<8x128xf32>
    %590 = arith.addf %589, %588 : vector<8x128xf32>
    %591 = arith.divf %589, %590 : vector<8x128xf32>
    %592 = arith.mulf %583, %571 : vector<8x128xf32>
    %593 = arith.mulf %577, %585 : vector<8x128xf32>
    %594 = arith.addf %592, %593 : vector<8x128xf32>
    %595 = math.tanh %594 : vector<8x128xf32>
    %596 = arith.mulf %591, %595 : vector<8x128xf32>
    %c0_310 = arith.constant 0 : index
    %c0_311 = arith.constant 0 : index
    %597 = vector.load %arg14[%c0_310, %c0_311] : memref<8x128xf32, #tpu.memory_space<vmem>>, vector<8x128xf32>
    tpu.vector_store %arg14[%c0_310, %c0_311], %596 {strides = array<i32>} : memref<8x128xf32, #tpu.memory_space<vmem>>, vector<8x128xf32>,
    %c0_312 = arith.constant 0 : index
    %c0_313 = arith.constant 0 : index
    %598 = vector.load %arg15[%c0_312, %c0_313] : memref<8x128xf32, #tpu.memory_space<vmem>>, vector<8x128xf32>
    tpu.vector_store %arg15[%c0_312, %c0_313], %594 {strides = array<i32>} : memref<8x128xf32, #tpu.memory_space<vmem>>, vector<8x128xf32>,
    %c0_314 = arith.constant 0 : index
    %c0_315 = arith.constant 0 : index
    %599 = vector.load %arg7[%c0_314, %c0_315] : memref<8x128xf32, #tpu.memory_space<vmem>>, vector<8x128xf32>
    %cst_316 = arith.constant dense<0.000000e+00> : vector<8x8xf32>
    %600 = tpu.matmul %599, %596, %cst_316 {dimension_numbers = #tpu.dot_dimension_numbers<[1], [1], [0], [0], [0, 0, 1, 0], [], []>} : vector<8x128xf32>, vector<8x128xf32>, vector<8x8xf32> -> vector<8x8xf32>
    %601 = vector.extract_strided_slice %600 {offsets = [0, 0], sizes = [1, 8], strides = [1, 1]} : vector<8x8xf32> to vector<1x8xf32>
    %c0_317 = arith.constant 0 : index
    %c0_318 = arith.constant 0 : index
    %602 = vector.load %arg8[%c0_317, %c0_318] : memref<1x1xf32, #tpu.memory_space<vmem>>, vector<1x1xf32>
    %603 = vector.broadcast %602 : vector<1x1xf32> to vector<1x8xf32>
    %604 = arith.addf %601, %603 : vector<1x8xf32>
    %c0_319 = arith.constant 0 : index
    %c0_320 = arith.constant 0 : index
    %605 = vector.load %arg9[%c0_319, %c0_320] : memref<1x8xf32, #tpu.memory_space<vmem>>, vector<1x8xf32>
    tpu.vector_store %arg9[%c0_319, %c0_320], %604 {strides = array<i32>} : memref<1x8xf32, #tpu.memory_space<vmem>>, vector<1x8xf32>,
    return
  }
  func.func @transform_0(%arg0: i32) -> (i32, i32, i32) {
    %c0_i32 = arith.constant 0 : i32
    %c0_i32_0 = arith.constant 0 : i32
    %c0_i32_1 = arith.constant 0 : i32
    return %c0_i32, %arg0, %c0_i32_0 : i32, i32, i32
  }
  func.func @transform_1(%arg0: i32) -> (i32, i32) {
    %c0_i32 = arith.constant 0 : i32
    %c0_i32_0 = arith.constant 0 : i32
    %c0_i32_1 = arith.constant 0 : i32
    return %c0_i32, %c0_i32_0 : i32, i32
  }
  func.func @transform_2(%arg0: i32) -> (i32, i32) {
    %c0_i32 = arith.constant 0 : i32
    %c0_i32_0 = arith.constant 0 : i32
    %c0_i32_1 = arith.constant 0 : i32
    return %c0_i32, %c0_i32_0 : i32, i32
  }
  func.func @transform_3(%arg0: i32) -> (i32, i32) {
    %c0_i32 = arith.constant 0 : i32
    %c0_i32_0 = arith.constant 0 : i32
    %c0_i32_1 = arith.constant 0 : i32
    return %c0_i32, %c0_i32_0 : i32, i32
  }
  func.func @transform_4(%arg0: i32) -> (i32, i32) {
    %c0_i32 = arith.constant 0 : i32
    %c0_i32_0 = arith.constant 0 : i32
    %c0_i32_1 = arith.constant 0 : i32
    return %c0_i32, %c0_i32_0 : i32, i32
  }
  func.func @transform_5(%arg0: i32) -> (i32, i32) {
    %c0_i32 = arith.constant 0 : i32
    %c0_i32_0 = arith.constant 0 : i32
    %c0_i32_1 = arith.constant 0 : i32
    return %c0_i32, %c0_i32_0 : i32, i32
  }
  func.func @transform_6(%arg0: i32) -> (i32, i32) {
    %c0_i32 = arith.constant 0 : i32
    %c0_i32_0 = arith.constant 0 : i32
    %c0_i32_1 = arith.constant 0 : i32
    return %c0_i32, %c0_i32_0 : i32, i32
  }
  func.func @transform_7(%arg0: i32) -> (i32, i32) {
    %c0_i32 = arith.constant 0 : i32
    %c0_i32_0 = arith.constant 0 : i32
    %c0_i32_1 = arith.constant 0 : i32
    return %c0_i32, %c0_i32_0 : i32, i32
  }
  func.func @transform_8(%arg0: i32) -> (i32, i32) {
    %c0_i32 = arith.constant 0 : i32
    %c0_i32_0 = arith.constant 0 : i32
    return %c0_i32, %arg0 : i32, i32
  }
}

</mosaic_0001>

<bundles_post_ra>
// kernel: tpu_custom_call.1
= control target key start
LH: loop header
LB: loop body
LE: loop exit
PB: predicated region body
PF: predicated region fallthrough
CT: control target
= control target key end

     0   :  { %s10527_s0 = inlined_call_operand.hbm [shape: bf16[8,8,10], index: 0, kind: input, shape index: {}]   ;;  %s10528_s1 = inlined_call_operand.hbm [shape: bf16[10,512], index: 1, kind: input, shape index: {}]   ;;  %s10529_s2 = inlined_call_operand.hbm [shape: bf16[128,512], index: 2, kind: input, shape index: {}]   ;;  %s10530_s3 = inlined_call_operand.vmem [shape: f32[1,512], index: 3, kind: input, shape index: {}]   ;;  %s10531_s4 = inlined_call_operand.hbm [shape: bf16[256,512], index: 4, kind: input, shape index: {}]   ;;  %s10532_s5 = inlined_call_operand.hbm [shape: f32[1,512], index: 5, kind: input, shape index: {}]   ;;  %s10533_s6 = inlined_call_operand.vmem [shape: f32[8,128], index: 6, kind: input, shape index: {}]   ;;  %s10534_s7 = inlined_call_operand.<no memory space> [shape: f32[1,1], index: 7, kind: input, shape index: {}]   ;;  %s10535_s8 = inlined_call_operand.hbm [shape: f32[1,8], index: 8, kind: output, shape index: {}]  }
   0x1   :  { %v13_v0 = vstv %s10534_s7 }
   0x2   :  { %14 = vst [vmem:[#allocation8] sm:$0x1] %v13_v0 }
   0x3   :  { %15 = vsyncpa [#allocation10], 0 }
   0x4   :  { %16 = vsyncpa [#allocation13], 0 }
   0x5   :  { %17 = vsyncpa [#allocation16], 0 }
   0x6   :  { %18 = vsyncpa [#allocation11], 0  ;;  %s8782_s29 = smov [#allocation12]  }
   0x7   :  { %s36_s30 = sshll.u32 %s8782_s29, 4  ;;  %s37_s30 = int_to_ptr.vmem [resolvable:$true] %s36_s30 }
   0x8   :  { %s8662_s9 = scalar_lea.vmem %s37_s30, 512  ;;  %p8667_p1 = scmp.lt.s32.totalorder %s37_s30, %s37_s30 }
   0x9   :  { %p8663_p0 = scmp.ne.s32.totalorder %s37_s30, %s8662_s9  ;;  %p8668_p2 = scmp.lt.s32.totalorder %s8662_s9, %s8662_s9 }
   0xb   :  { %p8669_p3 = por %p8668_p2, %p8667_p1 }
   0xd   :  { %p8670_p4 = pnand %p8669_p3, %p8663_p0 }
   0xf   :  { %8673 = shalt.err (!%p8670_p4)
}
  0x10   :  { %s8783_s10 = smov 256   ;;  %s8784_s11 = smov 16  }
  0x11   :  { %42 = dma.hbm_to_vmem [thread:$0]  %s10528_s1, 512, %s37_s30, [#allocation13], %s8783_s10, %s8783_s10, %s8784_s11  }
  0x12   :  { %s8785_s13 = smov [#allocation15]   ;;  %s8786_s15 = smov [#allocation9]  }
  0x13   :  { %s62_s14 = sshll.u32 %s8785_s13, 4  ;;  %s24_s16 = sshll.u32 %s8786_s15, 4  ;;  %s63_s14 = int_to_ptr.vmem [resolvable:$true] %s62_s14  ;;  %s25_s16 = int_to_ptr.vmem [resolvable:$true] %s24_s16 }
  0x14   :  { %s8682_s17 = scalar_lea.vmem %s63_s14, 8192  ;;  %p8687_p6 = scmp.lt.s32.totalorder %s63_s14, %s63_s14 }
  0x15   :  { %p8683_p5 = scmp.ne.s32.totalorder %s63_s14, %s8682_s17  ;;  %p8688_p7 = scmp.lt.s32.totalorder %s8682_s17, %s8682_s17 }
  0x17   :  { %p8689_p8 = por %p8688_p7, %p8687_p6 }
  0x19   :  { %p8690_p9 = pnand %p8689_p8, %p8683_p5 }
  0x1b   :  { %8693 = shalt.err (!%p8690_p9)
}
  0x1c   :  { %68 = dma.hbm_to_vmem [thread:$0]  %s10531_s4, 8192, %s63_s14, [#allocation16], %s8783_s10, %s8783_s10, %s8784_s11  }
  0x1d   :  { %s8702_s1 = scalar_lea.vmem %s25_s16, 512  ;;  %p8707_p11 = scmp.lt.s32.totalorder %s25_s16, %s25_s16 }
  0x1e   :  { %p8703_p10 = scmp.ne.s32.totalorder %s25_s16, %s8702_s1  ;;  %p8708_p12 = scmp.lt.s32.totalorder %s8702_s1, %s8702_s1 }
  0x20   :  { %p8709_p13 = por %p8708_p12, %p8707_p11 }
  0x22   :  { %p8710_p0 = pnand %p8709_p13, %p8703_p10 }
  0x24   :  { %8713 = shalt.err (!%p8710_p0)
}
  0x25   :  { %s8787_s20 = smov 64   ;;  %s8788_s21 = smov 4  }
  0x26   :  { %30 = dma.hbm_to_vmem [thread:$0]  %s10527_s0, 512, %s25_s16, [#allocation10], %s8787_s20, %s8787_s20, %s8788_s21  }
  0x27   :  { %s8789_s24 = smov [#allocation14]   ;;  %s8790_s26 = smov [#allocation17]  }
  0x28   :  { %s48_s25 = sshll.u32 %s8789_s24, 4  ;;  %s75_s27 = sshll.u32 %s8790_s26, 4  ;;  %s49_s25 = int_to_ptr.vmem [resolvable:$true] %s48_s25  ;;  %s76_s27 = int_to_ptr.vmem [resolvable:$true] %s75_s27 }
  0x29   :  { %s8722_s4 = scalar_lea.vmem %s49_s25, 4096  ;;  %p8727_p2 = scmp.lt.s32.totalorder %s49_s25, %s49_s25 }
  0x2a   :  { %p8723_p1 = scmp.ne.s32.totalorder %s49_s25, %s8722_s4  ;;  %p8728_p3 = scmp.lt.s32.totalorder %s8722_s4, %s8722_s4 }
  0x2c   :  { %p8729_p4 = por %p8728_p3, %p8727_p2 }
  0x2e   :  { %p8730_p5 = pnand %p8729_p4, %p8723_p1 }
  0x30   :  { %8733 = shalt.err (!%p8730_p5)
}
  0x31   :  { %54 = dma.hbm_to_vmem [thread:$0]  %s10529_s2, 4096, %s49_s25, [#allocation13], %s8783_s10, %s8783_s10, %s8784_s11  }
  0x32   :  { %s8742_s0 = scalar_lea.vmem %s76_s27, 64  ;;  %p8747_p7 = scmp.lt.s32.totalorder %s76_s27, %s76_s27 }
  0x33   :  { %p8743_p6 = scmp.ne.s32.totalorder %s76_s27, %s8742_s0  ;;  %p8748_p8 = scmp.lt.s32.totalorder %s8742_s0, %s8742_s0 }
  0x35   :  { %p8749_p9 = por %p8748_p8, %p8747_p7 }
  0x37   :  { %p8750_p10 = pnand %p8749_p9, %p8743_p6 }
  0x39   :  { %8753 = shalt.err (!%p8750_p10)
}
  0x3a   :  { %78 = dma.hbm_to_vmem [thread:$0]  %s10532_s5, 64, %s76_s27, [#allocation16]  }
  0x3b   :  { %8774 = dma.done.wait [#allocation10], 512  }
  0x3c   :  { %8775 = vsyncadd [#allocation10], 4294966784 }
  0x3d   :  { %8776 = dma.done.wait [#allocation13], 4608  }
  0x3e   :  { %8777 = vsyncadd [#allocation13], 4294962688 }
  0x3f   :  { %8778 = dma.done.wait [#allocation16], 8256  }
  0x40   :  { %8779 = vsyncadd [#allocation16], 4294959040  ;;  %v10536_v1 = vmov 0   ;;  %vm182_vm0 = vcmask 1044480   ;;  %v7807_v4 = vld [vmem:[#allocation9] sm:$0xff]   ;;  %vm169_vm1 = vcmask 80896  }
  0x41   :  { %227 = vmatprep.mubr.bf16.mxu0 %v10536_v1  ;;  %300 = vmatprep.mubr.bf16.mxu1 %v10536_v1  ;;  %v7804_v2 = vld [vmem:[#allocation12 + $0x4] ss:$16 sps:$4 sm:$0x1f]   ;;  %v7806_v3 = vld [vmem:[#allocation12] ss:$16 sps:$4 sm:$0x1f]  }
  0x42   :  { %7803 = vset.pattern.permute.xlu0 %v10536_v1  ;;  %6916 = vmatprep.subr.msk.bf16.mxu0 %vm182_vm0, %v7804_v2  ;;  %v184_v5 = vsel %vm182_vm0, %v7806_v3, 0  ;;  %v7808_v6 = vld [vmem:[#allocation12 + $0xc] ss:$16 sps:$4 sm:$0x1f]   ;;  %v7811_v8 = vld [vmem:[#allocation15 + $0xe0] ss:$16 sps:$4 sm:$0xff]  }
  0x43   :  { %210 = vmatpush1.bf16.msra.mxu0 %v184_v5  ;;  %v7810_v7 = vld [vmem:[#allocation12 + $0x8] ss:$16 sps:$4 sm:$0x1f]   ;;  %6921 = vmatprep.subr.msk.bf16.mxu1 %vm182_vm0, %v7808_v6  ;;  %v7813_v9 = vld [vmem:[#allocation15 + $0xe4] ss:$16 sps:$4 sm:$0xff]   ;;  %vm8794_vm2 = vmmov 0  }
  0x44   :  { %v190_v10 = vsel %vm182_vm0, %v7810_v7, 0  ;;  %v7816_v11 = vld [vmem:[#allocation15 + $0xec] ss:$16 sps:$4 sm:$0xff]   ;;  %v7814_v12 = vld [vmem:[#allocation15 + $0xe8] ss:$16 sps:$4 sm:$0xff]   ;;  %825 = vmatprep.subr.bf16.mxu0 %v7813_v9  ;;  %v7878_v54 = vld [vmem:[#allocation9 + $0x10] sm:$0xff]  }
  0x45   :  { %283 = vmatpush1.bf16.msra.mxu1 %v190_v10  ;;  %v7819_v13 = vld [vmem:[#allocation15 + $0xc4] ss:$16 sps:$4 sm:$0xff]   ;;  %v7817_v14 = vld [vmem:[#allocation15 + $0xc0] ss:$16 sps:$4 sm:$0xff]   ;;  %v7822_v15 = vld [vmem:[#allocation15 + $0xcc] ss:$16 sps:$4 sm:$0xff]  }
  0x46   :  { %6917 = vmatmul.mubr.msk.bf16.vlgmr.msra.gmra.mxu0 %vm169_vm1, %v7807_v4  ;;  %866 = vmatprep.subr.bf16.mxu1 %v7816_v11  ;;  %v7820_v16 = vld [vmem:[#allocation15 + $0xc8] ss:$16 sps:$4 sm:$0xff]   ;;  %v8875_v17 = vld [vmem:[#allocation15 + $0xa4] ss:$16 sps:$4 sm:$0xff]   ;;  %v8877_v18 = vld [vmem:[#allocation15 + $0xac] ss:$16 sps:$4 sm:$0xff]  }
  0x47   :  { %826 = vmatpush1.bf16.msra.mxu0 %v7811_v8  ;;  %237 = vmatprep.mubr.bf16.mxu0 %v10536_v1  ;;  %v8879_v19 = vld [vmem:[#allocation15 + $0xa0] ss:$16 sps:$4 sm:$0xff]   ;;  %v8881_v20 = vld [vmem:[#allocation15 + $0xa8] ss:$16 sps:$4 sm:$0xff]   ;;  %v8887_v21 = vld [vmem:[#allocation15 + $0x84] ss:$16 sps:$4 sm:$0xff]  }
  0x48   :  { %6922 = vmatmul.mubr.msk.bf16.vlgmr.msra.gmra.mxu1 %vm169_vm1, %v7807_v4  ;;  %827 = vmatprep.subr.bf16.mxu0 %v7819_v13  ;;  %v8889_v22 = vld [vmem:[#allocation15 + $0x8c] ss:$16 sps:$4 sm:$0xff]   ;;  %v8891_v23 = vld [vmem:[#allocation15 + $0x80] ss:$16 sps:$4 sm:$0xff]   ;;  %v8893_v24 = vld [vmem:[#allocation15 + $0x88] ss:$16 sps:$4 sm:$0xff]  }
  0x49   :  { %867 = vmatpush1.bf16.msra.mxu1 %v7814_v12  ;;  %310 = vmatprep.mubr.bf16.mxu1 %v10536_v1  ;;  %v8899_v25 = vld [vmem:[#allocation15 + $0x64] ss:$16 sps:$4 sm:$0xff]   ;;  %v8901_v26 = vld [vmem:[#allocation15 + $0x6c] ss:$16 sps:$4 sm:$0xff]   ;;  %v8903_v27 = vld [vmem:[#allocation15 + $0x60] ss:$16 sps:$4 sm:$0xff]  }
  0x4a   :  { %868 = vmatprep.subr.bf16.mxu1 %v7822_v15  ;;  %v8905_v28 = vld [vmem:[#allocation15 + $0x68] ss:$16 sps:$4 sm:$0xff]   ;;  %v8911_v29 = vld [vmem:[#allocation15 + $0x44] ss:$16 sps:$4 sm:$0xff]   ;;  %v8913_v30 = vld [vmem:[#allocation15 + $0x4c] ss:$16 sps:$4 sm:$0xff]  }
  0x4b   :  { %828 = vmatpush1.bf16.msra.mxu0 %v7817_v14  ;;  %v8915_v31 = vld [vmem:[#allocation15 + $0x40] ss:$16 sps:$4 sm:$0xff]   ;;  %v8917_v32 = vld [vmem:[#allocation15 + $0x48] ss:$16 sps:$4 sm:$0xff]   ;;  %v8923_v33 = vld [vmem:[#allocation15 + $0x24] ss:$16 sps:$4 sm:$0xff]  }
  0x4c   :  { %829 = vmatprep.subr.bf16.mxu0 %v8875_v17  ;;  %v8925_v34 = vld [vmem:[#allocation15 + $0x2c] ss:$16 sps:$4 sm:$0xff]   ;;  %v8927_v35 = vld [vmem:[#allocation15 + $0x20] ss:$16 sps:$4 sm:$0xff]   ;;  %v8929_v36 = vld [vmem:[#allocation15 + $0x28] ss:$16 sps:$4 sm:$0xff]  }
  0x4d   :  { %869 = vmatpush1.bf16.msra.mxu1 %v7820_v16  ;;  %v8935_v37 = vld [vmem:[#allocation15 + $0x4] ss:$16 sps:$4 sm:$0xff]   ;;  %v8937_v38 = vld [vmem:[#allocation15 + $0xc] ss:$16 sps:$4 sm:$0xff]   ;;  %v8939_v39 = vld [vmem:[#allocation15] ss:$16 sps:$4 sm:$0xff]   ;;  %v113_v16 = vlaneseq }
  0x4e   :  { %870 = vmatprep.subr.bf16.mxu1 %v8877_v18  ;;  %v8941_v40 = vld [vmem:[#allocation15 + $0x8] ss:$16 sps:$4 sm:$0xff]   ;;  %v8947_v41 = vld [vmem:[#allocation15 + $0x1e4] ss:$16 sps:$4 sm:$0xff]   ;;  %v8949_v42 = vld [vmem:[#allocation15 + $0x1ec] ss:$16 sps:$4 sm:$0xff]  }
  0x4f   :  { %830 = vmatpush1.bf16.msra.mxu0 %v8879_v19  ;;  %v8951_v43 = vld [vmem:[#allocation15 + $0x1e0] ss:$16 sps:$4 sm:$0xff]   ;;  %v8953_v44 = vld [vmem:[#allocation15 + $0x1e8] ss:$16 sps:$4 sm:$0xff]   ;;  %v8959_v46 = vld [vmem:[#allocation15 + $0x1c4] ss:$16 sps:$4 sm:$0xff]  }
  0x50   :  { %831 = vmatprep.subr.bf16.mxu0 %v8887_v21  ;;  %v7865_v45 = vld [vmem:[#allocation9 + $0x8] sm:$0xff]   ;;  %v8964_v48 = vld [vmem:[#allocation15 + $0x1c0] ss:$16 sps:$4 sm:$0xff]   ;;  %v8973_v50 = vld [vmem:[#allocation15 + $0x1a4] ss:$16 sps:$4 sm:$0xff]   ;;  %v8792_v10 = vmov 0.0|0.0  }
  0x51   :  { %871 = vmatpush1.bf16.msra.mxu1 %v8881_v20  ;;  %v8961_v47 = vld [vmem:[#allocation15 + $0x1cc] ss:$16 sps:$4 sm:$0xff]   ;;  %6918 = vmatmul.mubr.msk.bf16.gmra.mxu0 %vm169_vm1, %v7865_v45  ;;  %v8966_v49 = vld [vmem:[#allocation15 + $0x1c8] ss:$16 sps:$4 sm:$0xff]   ;;  %v8979_v52 = vld [vmem:[#allocation15 + $0x1a0] ss:$16 sps:$4 sm:$0xff]  }
  0x52   :  { %872 = vmatprep.subr.bf16.mxu1 %v8889_v22  ;;  %6923 = vmatmul.mubr.msk.bf16.gmra.mxu1 %vm169_vm1, %v7865_v45  ;;  %v8975_v51 = vld [vmem:[#allocation15 + $0x1ac] ss:$16 sps:$4 sm:$0xff]   ;;  %v8981_v53 = vld [vmem:[#allocation15 + $0x1a8] ss:$16 sps:$4 sm:$0xff]   ;;  %v8987_v55 = vld [vmem:[#allocation15 + $0x184] ss:$16 sps:$4 sm:$0xff]  }
  0x53   :  { %832 = vmatpush1.bf16.msra.mxu0 %v8891_v23  ;;  %247 = vmatprep.mubr.bf16.mxu0 %v10536_v1  ;;  %v8989_v56 = vld [vmem:[#allocation15 + $0x18c] ss:$16 sps:$4 sm:$0xff]   ;;  %v8992_v57 = vld [vmem:[#allocation15 + $0x180] ss:$16 sps:$4 sm:$0xff]   ;;  %v8994_v58 = vld [vmem:[#allocation15 + $0x188] ss:$16 sps:$4 sm:$0xff]  }
  0x54   :  { %833 = vmatprep.subr.bf16.mxu0 %v8899_v25  ;;  %320 = vmatprep.mubr.bf16.mxu1 %v10536_v1  ;;  %v9001_v59 = vld [vmem:[#allocation15 + $0x164] ss:$16 sps:$4 sm:$0xff]   ;;  %v9003_v60 = vld [vmem:[#allocation15 + $0x16c] ss:$16 sps:$4 sm:$0xff]   ;;  %v9007_v61 = vld [vmem:[#allocation15 + $0x160] ss:$16 sps:$4 sm:$0xff]  }
  0x55   :  { %873 = vmatpush1.bf16.msra.mxu1 %v8893_v24  ;;  %v9009_v62 = vld [vmem:[#allocation15 + $0x168] ss:$16 sps:$4 sm:$0xff]   ;;  %v9013_v0 = vld [vmem:[#allocation15 + $0x144] ss:$16 sps:$4 sm:$0xff]   ;;  %v9017_v2 = vld [vmem:[#allocation15 + $0x140] ss:$16 sps:$4 sm:$0xff]  }
  0x56   :  { %874 = vmatprep.subr.bf16.mxu1 %v8901_v26  ;;  %v7891_v63 = vld [vmem:[#allocation9 + $0x18] sm:$0xff]   ;;  %10708 = vst [vmem:[#allocation23_spill] sm:$0xff] %v9017_v2  ;;  %v9024_v5 = vld [vmem:[#allocation15 + $0x124] ss:$16 sps:$4 sm:$0xff]   ;;  %v9030_v7 = vld [vmem:[#allocation15 + $0x120] ss:$16 sps:$4 sm:$0xff]  }
  0x57   :  { %834 = vmatpush1.bf16.msra.mxu0 %v8903_v27  ;;  %v9019_v3 = vld [vmem:[#allocation15 + $0x148] ss:$16 sps:$4 sm:$0xff]   ;;  %v9021_v4 = vld [vmem:[#allocation15 + $0x14c] ss:$16 sps:$4 sm:$0xff]   ;;  %10711 = vst [vmem:[#allocation26_spill] sm:$0xff] %v9024_v5  ;;  %10713 = vst [vmem:[#allocation28_spill] sm:$0xff] %v9030_v7 }
  0x58   :  { %835 = vmatprep.subr.bf16.mxu0 %v8911_v29  ;;  %10709 = vst [vmem:[#allocation24_spill] sm:$0xff] %v9019_v3  ;;  %10710 = vst [vmem:[#allocation25_spill] sm:$0xff] %v9021_v4  ;;  %v9026_v6 = vld [vmem:[#allocation15 + $0x12c] ss:$16 sps:$4 sm:$0xff]   ;;  %v9032_v8 = vld [vmem:[#allocation15 + $0x128] ss:$16 sps:$4 sm:$0xff]  }
  0x59   :  { %875 = vmatpush1.bf16.msra.mxu1 %v8905_v28  ;;  %6919 = vmatmul.mubr.msk.bf16.gmra.mxu0 %vm169_vm1, %v7878_v54  ;;  %10712 = vst [vmem:[#allocation27_spill] sm:$0xff] %v9026_v6  ;;  %10714 = vst [vmem:[#allocation29_spill] sm:$0xff] %v9032_v8  ;;  %v9035_v9 = vld [vmem:[#allocation15 + $0x104] ss:$16 sps:$4 sm:$0xff]   ;;  %v9039_v11 = vld [vmem:[#allocation15 + $0x10c] ss:$16 sps:$4 sm:$0xff]  }
  0x5a   :  { %876 = vmatprep.subr.bf16.mxu1 %v8913_v30  ;;  %6924 = vmatmul.mubr.msk.bf16.gmra.mxu1 %vm169_vm1, %v7878_v54  ;;  %10715 = vst [vmem:[#allocation30_spill] sm:$0xff] %v9035_v9  ;;  %10716 = vst [vmem:[#allocation31_spill] sm:$0xff] %v9039_v11  ;;  %v9043_v12 = vld [vmem:[#allocation15 + $0x100] ss:$16 sps:$4 sm:$0xff]   ;;  %v9045_v13 = vld [vmem:[#allocation15 + $0x108] ss:$16 sps:$4 sm:$0xff]  }
  0x5b   :  { %836 = vmatpush1.bf16.msra.mxu0 %v8915_v31  ;;  %257 = vmatprep.mubr.bf16.mxu0 %v10536_v1  ;;  %10717 = vst [vmem:[#allocation32_spill] sm:$0xff] %v9043_v12  ;;  %10718 = vst [vmem:[#allocation33_spill] sm:$0xff] %v9045_v13  ;;  %v9047_v14 = vld [vmem:[#allocation14 + $0xe4] ss:$16 sps:$4 sm:$0xff]   ;;  %v9049_v15 = vld [vmem:[#allocation14 + $0xec] ss:$16 sps:$4 sm:$0xff]  }
  0x5c   :  { %837 = vmatprep.subr.bf16.mxu0 %v8923_v33  ;;  %330 = vmatprep.mubr.bf16.mxu1 %v10536_v1  ;;  %10719 = vst [vmem:[#allocation34_spill] sm:$0xff] %v9047_v14  ;;  %10720 = vst [vmem:[#allocation35_spill] sm:$0xff] %v9049_v15  ;;  %v114_v45 = vshrl.u32 %v113_v16, 7  ;;  %s8795_s11 = smov [#allocation18]   ;;  %vm6889_vm3 = vcmask 57344  }
  0x5d   :  { %877 = vmatpush1.bf16.msra.mxu1 %v8917_v32  ;;  %s6897_s7 = sshll.u32 %s8795_s11, 4  ;;  %s6898_s7 = int_to_ptr.vmem [resolvable:$true] %s6897_s7 }
  0x5e   :  { %878 = vmatprep.subr.bf16.mxu1 %v8925_v34  ;;  %v9059_v54 = vsub.s32 0, %v114_v45  ;;  %s8754_s12 = scalar_lea.vmem %s6898_s7, 16  ;;  %s8758_s13 = scalar_lea.vmem %s6898_s7, 32 }
  0x5f   :  { %838 = vmatpush1.bf16.msra.mxu0 %v8927_v35  ;;  %p8755_p11 = scmp.ne.s32.totalorder %s6898_s7, %s8754_s12  ;;  %p8759_p12 = scmp.lt.s32.totalorder %s6898_s7, %s6898_s7 }
  0x60   :  { %839 = vmatprep.subr.bf16.mxu0 %v8935_v37  ;;  %10721 = vst [vmem:[#allocation36_spill] sm:$0xff] %v9059_v54  ;;  %p8760_p13 = scmp.lt.s32.totalorder %s8758_s13, %s8754_s12 }
  0x61   :  { %879 = vmatpush1.bf16.msra.mxu1 %v8929_v36  ;;  %6920 = vmatmul.mubr.msk.bf16.gmra.mxu0 %vm169_vm1, %v7891_v63 }
  0x62   :  { %880 = vmatprep.subr.bf16.mxu1 %v8937_v38  ;;  %6925 = vmatmul.mubr.msk.bf16.gmra.mxu1 %vm169_vm1, %v7891_v63  ;;  %v111_v63 = vld [vmem:[%s10530_s3] sm:$0xf]  ;;  %p8761_p0 = por %p8760_p13, %p8759_p12 }
  0x63   :  { %840 = vmatpush1.bf16.msra.mxu0 %v8939_v39  ;;  %857 = vmatprep.mubr.bf16.mxu0 %v8792_v10  ;;  %v9067_v1 = vrot.slane %v111_v63, %v9059_v54 }
  0x64   :  { %841 = vmatprep.subr.bf16.mxu0 %v8947_v41  ;;  %898 = vmatprep.mubr.bf16.mxu1 %v8792_v10  ;;  %v9064_v10 = vsub.s32 1, %v114_v45  ;;  %p8762_p1 = pnand %p8761_p0, %p8755_p11 }
  0x65   :  { %881 = vmatpush1.bf16.msra.mxu1 %v8941_v40  ;;  %10723 = vst [vmem:[#allocation38_spill] sm:$0xff] %v9067_v1 }
  0x66   :  { %882 = vmatprep.subr.bf16.mxu1 %v8949_v42  ;;  %10722 = vst [vmem:[#allocation37_spill] sm:$0xff] %v9064_v10 }
  0x67   :  { %842 = vmatpush2.bf16.msra.mxu0 %v8951_v43 }
  0x68   :  { %843 = vmatprep.subr.bf16.mxu0 %v8959_v46 }
  0x69   :  { %883 = vmatpush2.bf16.msra.mxu1 %v8953_v44 }
  0x6a   :  { %884 = vmatprep.subr.bf16.mxu1 %v8961_v47 }
  0x6b   :  { %844 = vmatpush2.bf16.msra.mxu0 %v8964_v48 }
  0x6c   :  { %845 = vmatprep.subr.bf16.mxu0 %v8973_v50 }
  0x6d   :  { %885 = vmatpush2.bf16.msra.mxu1 %v8966_v49 }
  0x6e   :  { %886 = vmatprep.subr.bf16.mxu1 %v8975_v51 }
  0x6f   :  { %846 = vmatpush2.bf16.msra.mxu0 %v8979_v52 }
  0x70   :  { %847 = vmatprep.subr.bf16.mxu0 %v8987_v55 }
  0x71   :  { %887 = vmatpush2.bf16.msra.mxu1 %v8981_v53 }
  0x72   :  { %888 = vmatprep.subr.bf16.mxu1 %v8989_v56 }
  0x73   :  { %848 = vmatpush2.bf16.msra.mxu0 %v8992_v57 }
  0x74   :  { %849 = vmatprep.subr.bf16.mxu0 %v9001_v59 }
  0x75   :  { %889 = vmatpush2.bf16.msra.mxu1 %v8994_v58 }
  0x76   :  { %890 = vmatprep.subr.bf16.mxu1 %v9003_v60 }
  0x77   :  { %850 = vmatpush2.bf16.msra.mxu0 %v9007_v61 }
  0x78   :  { %851 = vmatprep.subr.bf16.mxu0 %v9013_v0 }
  0x79   :  { %891 = vmatpush2.bf16.msra.mxu1 %v9009_v62 }
  0x7a   :  { %892 = vmatprep.subr.bf16.mxu1 %v9021_v4 }
  0x7b   :  { %852 = vmatpush2.bf16.msra.mxu0 %v9017_v2 }
  0x7c   :  { %853 = vmatprep.subr.bf16.mxu0 %v9024_v5 }
  0x7d   :  { %893 = vmatpush2.bf16.msra.mxu1 %v9019_v3 }
  0x7e   :  { %894 = vmatprep.subr.bf16.mxu1 %v9026_v6 }
  0x7f   :  { %854 = vmatpush2.bf16.msra.mxu0 %v9030_v7  ;;  %v9076_v7 = vsub.s32 2, %v114_v45 }
  0x80   :  { %855 = vmatprep.subr.bf16.mxu0 %v9035_v9  ;;  %v9074_v9 = vsub.s32 3, %v114_v45 }
  0x81   :  { %895 = vmatpush2.bf16.msra.mxu1 %v9032_v8  ;;  %10726 = vst [vmem:[#allocation41_spill] sm:$0xff] %v9076_v7 }
  0x82   :  { %896 = vmatprep.subr.bf16.mxu1 %v9039_v11  ;;  %10725 = vst [vmem:[#allocation40_spill] sm:$0xff] %v9074_v9  ;;  %v9079_v54 = vrot.slane %v111_v63, %v9074_v9 }
  0x83   :  { %856 = vmatpush2.bf16.msra.mxu0 %v9043_v12  ;;  %v9070_v12 = vrot.slane %v111_v63, %v9064_v10  ;;  %v9082_v10 = vrot.slane %v111_v63, %v9076_v7 }
  0x84   :  { %1131 = vmatprep.subr.bf16.mxu0 %v9047_v14 }
  0x85   :  { %897 = vmatpush2.bf16.msra.mxu1 %v9045_v13  ;;  %10724 = vst [vmem:[#allocation39_spill] sm:$0xff] %v9070_v12 }
  0x86   :  { %1172 = vmatprep.subr.bf16.mxu1 %v9049_v15 }
 0x106   :  { %v229_v13 = vpop.f32.mrf.mxu0 }
 0x107   :  { %v230_v14 = vadd.f32 %v229_v13, %v9067_v1 }
 0x108   :  { %v231_v15 = vpop.f32.mrf.mxu0  ;;  %v302_v6 = vpop.f32.mrf.mxu1 }
 0x109   :  { %v6926_v11 = vmul.f32 -1.442695, %v230_v14  ;;  %v232_v16 = vadd.f32 %v231_v15, %v9070_v12  ;;  %v303_v14 = vadd.f32 %v302_v6, %v9082_v10 }
 0x10a   :  { %v304_v5 = vpop.f32.mrf.mxu1 }
 0x10b   :  { %8390 = vpow2.f32 %v6926_v11  ;;  %v6927_v8 = vmul.f32 -1.442695, %v232_v16  ;;  %v305_v13 = vadd.f32 %v304_v5, %v9079_v54 }
 0x10d   :  { %8392 = vpow2.f32 %v6927_v8  ;;  %v6928_v15 = vmul.f32 -1.442695, %v305_v13  ;;  %v9089_v13 = vld [vmem:[#allocation14 + $0xe0] ss:$16 sps:$4 sm:$0xff]  }
 0x10e   :  { %8394 = vtanh.f32 %v303_v14 }
 0x10f   :  { %8396 = vpow2.f32 %v6928_v15  ;;  %v9095_v15 = vld [vmem:[#allocation14 + $0xc4] ss:$16 sps:$4 sm:$0xff]  }
 0x118   :  { %v8391_v12 = vpop.eup %8390 }
 0x119   :  { %v382_v1 = vadd.f32 1.0, %v8391_v12 }
 0x11a   :  { %v8393_v11 = vpop.eup %8392 }
 0x11b   :  { %8398 = vrcp.f32 %v382_v1  ;;  %v388_v8 = vadd.f32 1.0, %v8393_v11  ;;  %v8395_v45 = vpop.eup %8394  ;;  %v9091_v1 = vld [vmem:[#allocation14 + $0xe8] ss:$16 sps:$4 sm:$0xff]   ;;  %v9097_v11 = vld [vmem:[#allocation14 + $0xcc] ss:$16 sps:$4 sm:$0xff]  }
 0x11c   :  { %v8397_v16 = vpop.eup %8396 }
 0x11d   :  { %8400 = vrcp.f32 %v388_v8  ;;  %v395_v63 = vadd.f32 1.0, %v8397_v16  ;;  %v10730_v8 = vmov 0   ;;  %v9119_v16 = vld [vmem:[#allocation14 + $0xa8] ss:$16 sps:$4 sm:$0xff]  }
 0x11e   :  { %10732 = vst [vmem:[#allocation46_spill] sm:$0xff] %v9119_v16 }
 0x11f   :  { %8402 = vrcp.f32 %v395_v63  ;;  %v9123_v63 = vld [vmem:[#allocation14 + $0x84] ss:$16 sps:$4 sm:$0xff]  }
 0x120   :  { %10733 = vst [vmem:[#allocation47_spill] sm:$0xff] %v9123_v63 }
 0x128   :  { %v8399_v9 = vpop.eup %8398 }
 0x129   :  { %v399_v2 = vmul.f32 %v8399_v9, %v8395_v45  ;;  %v9111_v9 = vld [vmem:[#allocation14 + $0xac] ss:$16 sps:$4 sm:$0xff]   ;;  %v9117_v45 = vld [vmem:[#allocation14 + $0xa0] ss:$16 sps:$4 sm:$0xff]  }
 0x12a   :  { %v8401_v3 = vpop.eup %8400  ;;  %10729 = vst [vmem:[#allocation44_spill] sm:$0xff] %v9111_v9  ;;  %10731 = vst [vmem:[#allocation45_spill] sm:$0xff] %v9117_v45 }
 0x12b   :  { %v398_v7 = vmul.f32 0.0, %v8401_v3  ;;  %v9105_v3 = vld [vmem:[#allocation14 + $0xc8] ss:$16 sps:$4 sm:$0xff]  }
 0x12c   :  { %v8403_v5 = vpop.eup %8402  ;;  %10727 = vst [vmem:[#allocation42_spill] sm:$0xff] %v9105_v3 }
 0x12d   :  { %v9086_v4 = vadd.f32 %v399_v2, %v398_v7  ;;  %v9103_v2 = vld [vmem:[#allocation14 + $0xc0] ss:$16 sps:$4 sm:$0xff]   ;;  %v9109_v7 = vld [vmem:[#allocation14 + $0xa4] ss:$16 sps:$4 sm:$0xff]  }
 0x12e   :  { %10728 = vst [vmem:[#allocation43_spill] sm:$0xff] %v9109_v7 }
 0x12f   :  { %8404 = vtanh.f32 %v9086_v4 }
 0x13c   :  { %v8405_v6 = vpop.eup %8404 }
 0x13d   :  { %v402_v12 = vmul.f32 %v8405_v6, %v8403_v5  ;;  %v9125_v5 = vld [vmem:[#allocation14 + $0x8c] ss:$16 sps:$4 sm:$0xff]   ;;  %v9129_v6 = vld [vmem:[#allocation14 + $0x80] ss:$16 sps:$4 sm:$0xff]  }
 0x13e   :  { %10734 = vst [vmem:[#allocation48_spill] sm:$0xff] %v9125_v5  ;;  %10735 = vst [vmem:[#allocation49_spill] sm:$0xff] %v9129_v6 }
 0x13f   :  { %v9093_v14 = vpack.c.bf16 %v402_v12, %v402_v12  ;;  %v9131_v12 = vld [vmem:[#allocation14 + $0x88] ss:$16 sps:$4 sm:$0xff]  }
 0x140   :  { %10736 = vst [vmem:[#allocation50_spill] sm:$0xff] %v9131_v12 }
 0x141   :  { %858 = vmatmul.mubr.bf16.vlgmr.msra.gmra.mxu0 %v9093_v14  ;;  %899 = vmatmul.mubr.bf16.vlgmr.msra.gmra.mxu1 %v9093_v14 }
 0x142   :  { %1132 = vmatpush1.bf16.msra.mxu0 %v9089_v13  ;;  %1173 = vmatpush1.bf16.msra.mxu1 %v9091_v1 }
 0x143   :  { %1133 = vmatprep.subr.bf16.mxu0 %v9095_v15  ;;  %1174 = vmatprep.subr.bf16.mxu1 %v9097_v11 }
 0x144   :  { %1163 = vmatprep.mubr.bf16.mxu0 %v10730_v8  ;;  %1204 = vmatprep.mubr.bf16.mxu1 %v10730_v8 }
 0x146   :  { %1134 = vmatpush1.bf16.msra.mxu0 %v9103_v2  ;;  %1175 = vmatpush1.bf16.msra.mxu1 %v9105_v3  ;;  %v9135_v3 = vld [vmem:[#allocation14 + $0x64] ss:$16 sps:$4 sm:$0xff]  }
 0x147   :  { %1135 = vmatprep.subr.bf16.mxu0 %v9109_v7  ;;  %1176 = vmatprep.subr.bf16.mxu1 %v9111_v9  ;;  %10737 = vst [vmem:[#allocation51_spill] sm:$0xff] %v9135_v3  ;;  %v9137_v7 = vld [vmem:[#allocation14 + $0x6c] ss:$16 sps:$4 sm:$0xff]   ;;  %v9141_v9 = vld [vmem:[#allocation14 + $0x60] ss:$16 sps:$4 sm:$0xff]  }
 0x148   :  { %10738 = vst [vmem:[#allocation52_spill] sm:$0xff] %v9137_v7  ;;  %10739 = vst [vmem:[#allocation53_spill] sm:$0xff] %v9141_v9 }
 0x14a   :  { %1136 = vmatpush1.bf16.msra.mxu0 %v9117_v45  ;;  %1177 = vmatpush1.bf16.msra.mxu1 %v9119_v16  ;;  %v9143_v45 = vld [vmem:[#allocation14 + $0x68] ss:$16 sps:$4 sm:$0xff]   ;;  %v9147_v16 = vld [vmem:[#allocation14 + $0x44] ss:$16 sps:$4 sm:$0xff]  }
 0x14b   :  { %1137 = vmatprep.subr.bf16.mxu0 %v9123_v63  ;;  %1178 = vmatprep.subr.bf16.mxu1 %v9125_v5  ;;  %10740 = vst [vmem:[#allocation54_spill] sm:$0xff] %v9143_v45  ;;  %10741 = vst [vmem:[#allocation55_spill] sm:$0xff] %v9147_v16  ;;  %v9149_v63 = vld [vmem:[#allocation14 + $0x4c] ss:$16 sps:$4 sm:$0xff]   ;;  %v9153_v5 = vld [vmem:[#allocation14 + $0x40] ss:$16 sps:$4 sm:$0xff]  }
 0x14c   :  { %10742 = vst [vmem:[#allocation56_spill] sm:$0xff] %v9149_v63  ;;  %10743 = vst [vmem:[#allocation57_spill] sm:$0xff] %v9153_v5 }
 0x14e   :  { %1138 = vmatpush1.bf16.msra.mxu0 %v9129_v6  ;;  %1179 = vmatpush1.bf16.msra.mxu1 %v9131_v12  ;;  %v9155_v6 = vld [vmem:[#allocation14 + $0x48] ss:$16 sps:$4 sm:$0xff]   ;;  %v9159_v12 = vld [vmem:[#allocation14 + $0x24] ss:$16 sps:$4 sm:$0xff]  }
 0x14f   :  { %1139 = vmatprep.subr.bf16.mxu0 %v9135_v3  ;;  %1180 = vmatprep.subr.bf16.mxu1 %v9137_v7  ;;  %10744 = vst [vmem:[#allocation58_spill] sm:$0xff] %v9155_v6  ;;  %10745 = vst [vmem:[#allocation59_spill] sm:$0xff] %v9159_v12  ;;  %v9161_v3 = vld [vmem:[#allocation14 + $0x2c] ss:$16 sps:$4 sm:$0xff]   ;;  %v9165_v7 = vld [vmem:[#allocation14 + $0x20] ss:$16 sps:$4 sm:$0xff]  }
 0x150   :  { %10746 = vst [vmem:[#allocation60_spill] sm:$0xff] %v9161_v3  ;;  %10747 = vst [vmem:[#allocation61_spill] sm:$0xff] %v9165_v7 }
 0x152   :  { %1140 = vmatpush1.bf16.msra.mxu0 %v9141_v9  ;;  %1181 = vmatpush1.bf16.msra.mxu1 %v9143_v45  ;;  %v9167_v9 = vld [vmem:[#allocation14 + $0x28] ss:$16 sps:$4 sm:$0xff]   ;;  %v9171_v45 = vld [vmem:[#allocation14 + $0x4] ss:$16 sps:$4 sm:$0xff]  }
 0x153   :  { %1141 = vmatprep.subr.bf16.mxu0 %v9147_v16  ;;  %1182 = vmatprep.subr.bf16.mxu1 %v9149_v63  ;;  %10748 = vst [vmem:[#allocation62_spill] sm:$0xff] %v9167_v9  ;;  %10749 = vst [vmem:[#allocation63_spill] sm:$0xff] %v9171_v45  ;;  %v9173_v16 = vld [vmem:[#allocation14 + $0xc] ss:$16 sps:$4 sm:$0xff]   ;;  %v9177_v63 = vld [vmem:[#allocation14] ss:$16 sps:$4 sm:$0xff]  }
 0x154   :  { %10750 = vst [vmem:[#allocation64_spill] sm:$0xff] %v9173_v16  ;;  %10751 = vst [vmem:[#allocation65_spill] sm:$0xff] %v9177_v63 }
 0x156   :  { %1142 = vmatpush1.bf16.msra.mxu0 %v9153_v5  ;;  %1183 = vmatpush1.bf16.msra.mxu1 %v9155_v6  ;;  %v9179_v5 = vld [vmem:[#allocation14 + $0x8] ss:$16 sps:$4 sm:$0xff]   ;;  %v8650_v6 = vld [vmem:[#allocation15 + $0xc4] ss:$16 sps:$4 sm:$0xff]  }
 0x157   :  { %1143 = vmatprep.subr.bf16.mxu0 %v9159_v12  ;;  %1184 = vmatprep.subr.bf16.mxu1 %v9161_v3  ;;  %v8646_v3 = vld [vmem:[#allocation15 + $0xe4] ss:$16 sps:$4 sm:$0xff]   ;;  %v8647_v12 = vld [vmem:[#allocation15 + $0xec] ss:$16 sps:$4 sm:$0xff]  }
 0x15a   :  { %1144 = vmatpush1.bf16.msra.mxu0 %v9165_v7  ;;  %1185 = vmatpush1.bf16.msra.mxu1 %v9167_v9  ;;  %v8648_v9 = vld [vmem:[#allocation15 + $0xe0] ss:$16 sps:$4 sm:$0xff]   ;;  %v8649_v7 = vld [vmem:[#allocation15 + $0xe8] ss:$16 sps:$4 sm:$0xff]  }
 0x15b   :  { %1145 = vmatprep.subr.bf16.mxu0 %v9171_v45  ;;  %1186 = vmatprep.subr.bf16.mxu1 %v9173_v16  ;;  %v8651_v45 = vld [vmem:[#allocation15 + $0xcc] ss:$16 sps:$4 sm:$0xff]   ;;  %v8652_v16 = vld [vmem:[#allocation15 + $0xc0] ss:$16 sps:$4 sm:$0xff]  }
 0x15e   :  { %1146 = vmatpush1.bf16.msra.mxu0 %v9177_v63  ;;  %1187 = vmatpush1.bf16.msra.mxu1 %v9179_v5  ;;  %v8653_v63 = vld [vmem:[#allocation15 + $0xc8] ss:$16 sps:$4 sm:$0xff]  }
 0x15f   :  { %1664 = vmatprep.subr.bf16.mxu0 %v8646_v3  ;;  %1705 = vmatprep.subr.bf16.mxu1 %v8647_v12 }
 0x161   :  { %1164 = vmatmul.mubr.bf16.vlgmr.msra.gmra.mxu0 %v9093_v14  ;;  %1205 = vmatmul.mubr.bf16.vlgmr.msra.gmra.mxu1 %v9093_v14 }
 0x162   :  { %1665 = vmatpush1.bf16.msra.mxu0 %v8648_v9  ;;  %1706 = vmatpush1.bf16.msra.mxu1 %v8649_v7 }
 0x163   :  { %1666 = vmatprep.subr.bf16.mxu0 %v8650_v6  ;;  %1707 = vmatprep.subr.bf16.mxu1 %v8651_v45 }
 0x166   :  { %1667 = vmatpush1.bf16.msra.mxu0 %v8652_v16  ;;  %1708 = vmatpush1.bf16.msra.mxu1 %v8653_v63 }
 0x167   :  { %1668 = vmatprep.subr.bf16.mxu0 %v8875_v17  ;;  %1709 = vmatprep.subr.bf16.mxu1 %v8877_v18  ;;  %v10752_v17 = vld [vmem:[#allocation25_spill] sm:$0xff]  ;;  %v10753_v18 = vld [vmem:[#allocation23_spill] sm:$0xff] }
 0x16a   :  { %1669 = vmatpush1.bf16.msra.mxu0 %v8879_v19  ;;  %1710 = vmatpush1.bf16.msra.mxu1 %v8881_v20  ;;  %v10754_v19 = vld [vmem:[#allocation24_spill] sm:$0xff]  ;;  %v10755_v20 = vld [vmem:[#allocation26_spill] sm:$0xff] }
 0x16b   :  { %1670 = vmatprep.subr.bf16.mxu0 %v8887_v21  ;;  %1711 = vmatprep.subr.bf16.mxu1 %v8889_v22  ;;  %v10756_v21 = vld [vmem:[#allocation27_spill] sm:$0xff]  ;;  %v10757_v22 = vld [vmem:[#allocation28_spill] sm:$0xff] }
 0x16e   :  { %1671 = vmatpush1.bf16.msra.mxu0 %v8891_v23  ;;  %1712 = vmatpush1.bf16.msra.mxu1 %v8893_v24  ;;  %v10758_v23 = vld [vmem:[#allocation29_spill] sm:$0xff]  ;;  %v10759_v24 = vld [vmem:[#allocation30_spill] sm:$0xff] }
 0x16f   :  { %1672 = vmatprep.subr.bf16.mxu0 %v8899_v25  ;;  %1713 = vmatprep.subr.bf16.mxu1 %v8901_v26  ;;  %v10760_v25 = vld [vmem:[#allocation31_spill] sm:$0xff]  ;;  %v10761_v26 = vld [vmem:[#allocation32_spill] sm:$0xff] }
 0x172   :  { %1673 = vmatpush1.bf16.msra.mxu0 %v8903_v27  ;;  %1714 = vmatpush1.bf16.msra.mxu1 %v8905_v28  ;;  %v10762_v27 = vld [vmem:[#allocation33_spill] sm:$0xff]  ;;  %v10763_v28 = vld [vmem:[#allocation34_spill] sm:$0xff] }
 0x173   :  { %1674 = vmatprep.subr.bf16.mxu0 %v8911_v29  ;;  %1715 = vmatprep.subr.bf16.mxu1 %v8913_v30  ;;  %v10764_v29 = vld [vmem:[#allocation35_spill] sm:$0xff]  ;;  %v9245_v30 = vpop.f32.mrf.mxu1 }
 0x176   :  { %1675 = vmatpush1.bf16.msra.mxu0 %v8915_v31  ;;  %1716 = vmatpush1.bf16.msra.mxu1 %v8917_v32  ;;  %v233_v31 = vpop.f32.mrf.mxu0  ;;  %v9247_v32 = vpop.f32.mrf.mxu1 }
 0x177   :  { %1676 = vmatprep.subr.bf16.mxu0 %v8923_v33  ;;  %1717 = vmatprep.subr.bf16.mxu1 %v8925_v34 }
 0x178   :  { %v235_v33 = vpop.f32.mrf.mxu0  ;;  %v9249_v34 = vpop.f32.mrf.mxu1 }
 0x17a   :  { %1677 = vmatpush1.bf16.msra.mxu0 %v8927_v35  ;;  %1718 = vmatpush1.bf16.msra.mxu1 %v8929_v36  ;;  %v9251_v35 = vpop.f32.mrf.mxu0  ;;  %v9253_v36 = vpop.f32.mrf.mxu1 }
 0x17b   :  { %1678 = vmatprep.subr.bf16.mxu0 %v8935_v37  ;;  %1719 = vmatprep.subr.bf16.mxu1 %v8937_v38 }
 0x17c   :  { %v9255_v37 = vpop.f32.mrf.mxu0  ;;  %v9257_v38 = vpop.f32.mrf.mxu1 }
 0x17d   :  { %10765 = vst [vmem:[#allocation25_spill] sm:$0xff] %v9257_v38  ;;  %v9480_v38 = vld [vmem:[#allocation15 + $0x18c] ss:$16 sps:$4 sm:$0xff]  }
 0x17e   :  { %1679 = vmatpush1.bf16.msra.mxu0 %v8939_v39  ;;  %1720 = vmatpush1.bf16.msra.mxu1 %v8941_v40  ;;  %v9259_v39 = vpop.f32.mrf.mxu0  ;;  %v9261_v40 = vpop.f32.mrf.mxu1 }
 0x17f   :  { %1680 = vmatprep.subr.bf16.mxu0 %v8947_v41  ;;  %1721 = vmatprep.subr.bf16.mxu1 %v8949_v42  ;;  %10766 = vst [vmem:[#allocation23_spill] sm:$0xff] %v9259_v39  ;;  %10767 = vst [vmem:[#allocation24_spill] sm:$0xff] %v9261_v40  ;;  %v9482_v40 = vld [vmem:[#allocation15 + $0x180] ss:$16 sps:$4 sm:$0xff]   ;;  %v9488_v39 = vld [vmem:[#allocation15 + $0x164] ss:$16 sps:$4 sm:$0xff]  }
 0x180   :  { %v9263_v41 = vpop.f32.mrf.mxu0  ;;  %v9265_v42 = vpop.f32.mrf.mxu1 }
 0x181   :  { %10768 = vst [vmem:[#allocation26_spill] sm:$0xff] %v9263_v41  ;;  %10769 = vst [vmem:[#allocation27_spill] sm:$0xff] %v9265_v42  ;;  %v9468_v42 = vld [vmem:[#allocation15 + $0x1ac] ss:$16 sps:$4 sm:$0xff]   ;;  %v9484_v41 = vld [vmem:[#allocation15 + $0x188] ss:$16 sps:$4 sm:$0xff]  }
 0x182   :  { %1681 = vmatpush2.bf16.msra.mxu0 %v8951_v43  ;;  %1722 = vmatpush2.bf16.msra.mxu1 %v8953_v44  ;;  %v9267_v43 = vpop.f32.mrf.mxu0  ;;  %v9269_v44 = vpop.f32.mrf.mxu1 }
 0x183   :  { %1682 = vmatprep.subr.bf16.mxu0 %v8959_v46  ;;  %1723 = vmatprep.subr.bf16.mxu1 %v8961_v47  ;;  %10770 = vst [vmem:[#allocation28_spill] sm:$0xff] %v9267_v43  ;;  %10771 = vst [vmem:[#allocation29_spill] sm:$0xff] %v9269_v44  ;;  %v9470_v44 = vld [vmem:[#allocation15 + $0x1a0] ss:$16 sps:$4 sm:$0xff]   ;;  %v9478_v43 = vld [vmem:[#allocation15 + $0x184] ss:$16 sps:$4 sm:$0xff]  }
 0x184   :  { %v9271_v46 = vpop.f32.mrf.mxu0  ;;  %v9273_v47 = vpop.f32.mrf.mxu1 }
 0x185   :  { %10772 = vst [vmem:[#allocation30_spill] sm:$0xff] %v9271_v46  ;;  %10773 = vst [vmem:[#allocation31_spill] sm:$0xff] %v9273_v47  ;;  %v9456_v47 = vld [vmem:[#allocation15 + $0x1cc] ss:$16 sps:$4 sm:$0xff]   ;;  %v9472_v46 = vld [vmem:[#allocation15 + $0x1a8] ss:$16 sps:$4 sm:$0xff]  }
 0x186   :  { %1683 = vmatpush2.bf16.msra.mxu0 %v8964_v48  ;;  %1724 = vmatpush2.bf16.msra.mxu1 %v8966_v49  ;;  %v9275_v48 = vpop.f32.mrf.mxu0  ;;  %v9277_v49 = vpop.f32.mrf.mxu1 }
 0x187   :  { %1684 = vmatprep.subr.bf16.mxu0 %v8973_v50  ;;  %1725 = vmatprep.subr.bf16.mxu1 %v8975_v51  ;;  %10774 = vst [vmem:[#allocation32_spill] sm:$0xff] %v9275_v48  ;;  %10775 = vst [vmem:[#allocation33_spill] sm:$0xff] %v9277_v49  ;;  %v9458_v49 = vld [vmem:[#allocation15 + $0x1c0] ss:$16 sps:$4 sm:$0xff]   ;;  %v9466_v48 = vld [vmem:[#allocation15 + $0x1a4] ss:$16 sps:$4 sm:$0xff]  }
 0x188   :  { %v9279_v50 = vpop.f32.mrf.mxu0  ;;  %v9281_v51 = vpop.f32.mrf.mxu1 }
 0x189   :  { %10776 = vst [vmem:[#allocation34_spill] sm:$0xff] %v9279_v50  ;;  %10777 = vst [vmem:[#allocation35_spill] sm:$0xff] %v9281_v51  ;;  %v9444_v51 = vld [vmem:[#allocation15 + $0x1ec] ss:$16 sps:$4 sm:$0xff]   ;;  %v9460_v50 = vld [vmem:[#allocation15 + $0x1c8] ss:$16 sps:$4 sm:$0xff]  }
 0x18a   :  { %1685 = vmatpush2.bf16.msra.mxu0 %v8979_v52  ;;  %1726 = vmatpush2.bf16.msra.mxu1 %v8981_v53  ;;  %v9283_v52 = vpop.f32.mrf.mxu0  ;;  %v9285_v53 = vpop.f32.mrf.mxu1 }
 0x18b   :  { %1686 = vmatprep.subr.bf16.mxu0 %v8987_v55  ;;  %1727 = vmatprep.subr.bf16.mxu1 %v8989_v56  ;;  %10778 = vst [vmem:[#allocation66_spill] sm:$0xff] %v9283_v52  ;;  %10779 = vst [vmem:[#allocation67_spill] sm:$0xff] %v9285_v53  ;;  %v9446_v53 = vld [vmem:[#allocation15 + $0x1e0] ss:$16 sps:$4 sm:$0xff]   ;;  %v9454_v52 = vld [vmem:[#allocation15 + $0x1c4] ss:$16 sps:$4 sm:$0xff]  }
 0x18c   :  { %v9287_v55 = vpop.f32.mrf.mxu0  ;;  %v9289_v56 = vpop.f32.mrf.mxu1 }
 0x18d   :  { %10780 = vst [vmem:[#allocation68_spill] sm:$0xff] %v9287_v55  ;;  %10781 = vst [vmem:[#allocation69_spill] sm:$0xff] %v9289_v56  ;;  %v9448_v55 = vld [vmem:[#allocation15 + $0x1e8] ss:$16 sps:$4 sm:$0xff]  }
 0x18e   :  { %1687 = vmatpush2.bf16.msra.mxu0 %v8992_v57  ;;  %1728 = vmatpush2.bf16.msra.mxu1 %v8994_v58  ;;  %v9291_v57 = vpop.f32.mrf.mxu0  ;;  %v476_v58 = vld [vmem:[#allocation17] sm:$0xf] }
 0x18f   :  { %1688 = vmatprep.subr.bf16.mxu0 %v9001_v59  ;;  %1729 = vmatprep.subr.bf16.mxu1 %v9003_v60  ;;  %10782 = vst [vmem:[#allocation70_spill] sm:$0xff] %v9291_v57  ;;  %v9293_v59 = vpop.f32.mrf.mxu1  ;;  %v10784_v60 = vld [vmem:[#allocation36_spill] sm:$0xff] }
 0x190   :  { %10783 = vst [vmem:[#allocation71_spill] sm:$0xff] %v9293_v59  ;;  %v9434_v59 = vld [vmem:[#allocation15] ss:$16 sps:$4 sm:$0xff]   ;;  %v9442_v57 = vld [vmem:[#allocation15 + $0x1e4] ss:$16 sps:$4 sm:$0xff]  }
 0x192   :  { %1689 = vmatpush2.bf16.msra.mxu0 %v9007_v61  ;;  %1730 = vmatpush2.bf16.msra.mxu1 %v9009_v62  ;;  %v481_v61 = vrot.slane %v476_v58, %v10784_v60  ;;  %v9296_v62 = vpop.f32.mrf.mxu0 }
 0x193   :  { %1690 = vmatprep.subr.bf16.mxu0 %v9013_v0  ;;  %1731 = vmatprep.subr.bf16.mxu1 %v10752_v17  ;;  %10785 = vst [vmem:[#allocation72_spill] sm:$0xff] %v9296_v62  ;;  %v10786_v0 = vld [vmem:[#allocation37_spill] sm:$0xff] }
 0x194   :  { %v485_v14 = vrot.slane %v476_v58, %v10786_v0  ;;  %v9436_v62 = vld [vmem:[#allocation15 + $0x8] ss:$16 sps:$4 sm:$0xff]  }
 0x196   :  { %1691 = vmatpush2.bf16.msra.mxu0 %v10753_v18  ;;  %1732 = vmatpush2.bf16.msra.mxu1 %v10754_v19 }
 0x197   :  { %1692 = vmatprep.subr.bf16.mxu0 %v10755_v20  ;;  %1733 = vmatprep.subr.bf16.mxu1 %v10756_v21  ;;  %v10787_v21 = vld [vmem:[#allocation40_spill] sm:$0xff] }
 0x198   :  { %10815 = vst [vmem:[#allocation40_spill] sm:$0xff] %v9434_v59 }
 0x19a   :  { %1693 = vmatpush2.bf16.msra.mxu0 %v10757_v22  ;;  %1734 = vmatpush2.bf16.msra.mxu1 %v10758_v23  ;;  %v493_v22 = vrot.slane %v476_v58, %v10787_v21 }
 0x19b   :  { %1694 = vmatprep.subr.bf16.mxu0 %v10759_v24  ;;  %1735 = vmatprep.subr.bf16.mxu1 %v10760_v25  ;;  %v10788_v24 = vld [vmem:[#allocation41_spill] sm:$0xff] }
 0x19c   :  { %v489_v25 = vrot.slane %v476_v58, %v10788_v24  ;;  %10816 = vst [vmem:[#allocation41_spill] sm:$0xff] %v9436_v62 }
 0x19e   :  { %1695 = vmatpush2.bf16.msra.mxu0 %v10761_v26  ;;  %1736 = vmatpush2.bf16.msra.mxu1 %v10762_v27 }
 0x19f   :  { %1970 = vmatprep.subr.bf16.mxu0 %v10763_v28  ;;  %2011 = vmatprep.subr.bf16.mxu1 %v10764_v29 }
 0x201   :  { %v859_v3 = vpop.f32.mrf.mxu0  ;;  %v900_v7 = vpop.f32.mrf.mxu1 }
 0x202   :  { %v860_v9 = vadd.f32 %v859_v3, %v481_v61  ;;  %v901_v28 = vadd.f32 %v900_v7, %v489_v25  ;;  %v10789_v3 = vld [vmem:[#allocation38_spill] sm:$0xff] }
 0x203   :  { %v861_v45 = vpop.f32.mrf.mxu0  ;;  %v902_v16 = vpop.f32.mrf.mxu1 }
 0x204   :  { %v6995_v63 = vmul.f32 -1.442695, %v860_v9  ;;  %v862_v6 = vadd.f32 %v861_v45, %v485_v14  ;;  %v903_v23 = vadd.f32 %v902_v16, %v493_v22  ;;  %v234_v9 = vadd.f32 %v233_v31, %v10789_v3 }
 0x205   :  { %v863_v12 = vpop.f32.mrf.mxu0  ;;  %v904_v17 = vpop.f32.mrf.mxu1 }
 0x206   :  { %8406 = vpow2.f32 %v6995_v63  ;;  %v6996_v18 = vmul.f32 -1.442695, %v862_v6  ;;  %v6997_v26 = vmul.f32 -1.442695, %v903_v23  ;;  %v10790_v12 = vld [vmem:[#allocation39_spill] sm:$0xff] }
 0x207   :  { %v864_v19 = vpop.f32.mrf.mxu0  ;;  %v905_v20 = vpop.f32.mrf.mxu1  ;;  %v236_v17 = vadd.f32 %v235_v33, %v10790_v12  ;;  %v309_v33 = vadd.f32 %v9247_v32, %v9079_v54  ;;  %10817 = vst [vmem:[#allocation39_spill] sm:$0xff] %v9442_v57 }
 0x208   :  { %8408 = vpow2.f32 %v6996_v18 }
 0x209   :  { %8410 = vpow2.f32 %v6997_v26 }
 0x213   :  { %v8407_v27 = vpop.eup %8406 }
 0x214   :  { %v911_v29 = vadd.f32 1.0, %v8407_v27 }
 0x215   :  { %v8409_v61 = vpop.eup %8408 }
 0x216   :  { %8412 = vrcp.f32 %v911_v29  ;;  %v917_v14 = vadd.f32 1.0, %v8409_v61  ;;  %v8411_v6 = vpop.eup %8410 }
 0x217   :  { %8414 = vtanh.f32 %v901_v28  ;;  %v924_v25 = vadd.f32 1.0, %v8411_v6 }
 0x218   :  { %8416 = vrcp.f32 %v917_v14 }
 0x221   :  { %v1165_v45 = vpop.f32.mrf.mxu0  ;;  %v1206_v63 = vpop.f32.mrf.mxu1 }
 0x222   :  { %v1213_v16 = vadd.f32 %v1165_v45, %v234_v9  ;;  %v307_v45 = vadd.f32 %v9245_v30, %v9082_v10 }
 0x223   :  { %v8413_v18 = vpop.eup %8412  ;;  %v1167_v58 = vpop.f32.mrf.mxu0 }
 0x224   :  { %v1208_v19 = vpop.f32.mrf.mxu1  ;;  %v8415_v20 = vpop.eup %8414  ;;  %v7030_v7 = vmul.f32 -1.442695, %v1213_v16  ;;  %v1214_v22 = vadd.f32 %v1167_v58, %v236_v17  ;;  %v1215_v16 = vadd.f32 %v1206_v63, %v307_v45  ;;  %v10793_v45 = vld [vmem:[#allocation44_spill] sm:$0xff] }
 0x225   :  { %v8417_v23 = vpop.eup %8416  ;;  %v1169_v26 = vpop.f32.mrf.mxu0  ;;  %v928_v29 = vmul.f32 %v8415_v20, %v8413_v18  ;;  %v1216_v9 = vadd.f32 %v1208_v19, %v309_v33  ;;  %10820 = vst [vmem:[#allocation44_spill] sm:$0xff] %v9448_v55 }
 0x226   :  { %v1210_v27 = vpop.f32.mrf.mxu1  ;;  %v927_v28 = vmul.f32 0.0, %v8417_v23  ;;  %8418 = vpow2.f32 %v7030_v7  ;;  %v7031_v31 = vmul.f32 -1.442695, %v1214_v22 }
 0x227   :  { %v1170_v61 = vpop.f32.mrf.mxu0  ;;  %v7032_v6 = vmul.f32 -1.442695, %v1216_v9  ;;  %v10792_v9 = vld [vmem:[#allocation43_spill] sm:$0xff] }
 0x228   :  { %v1211_v14 = vpop.f32.mrf.mxu1  ;;  %v9303_v56 = vadd.f32 %v928_v29, %v927_v28  ;;  %8420 = vpow2.f32 %v7031_v31  ;;  %10819 = vst [vmem:[#allocation43_spill] sm:$0xff] %v9446_v53 }
 0x229   :  { %8422 = vrcp.f32 %v924_v25 }
 0x22a   :  { %8424 = vtanh.f32 %v9303_v56 }
 0x22b   :  { %8426 = vpow2.f32 %v7032_v6  ;;  %v10794_v6 = vld [vmem:[#allocation45_spill] sm:$0xff] }
 0x22c   :  { %10821 = vst [vmem:[#allocation45_spill] sm:$0xff] %v9454_v52 }
 0x233   :  { %v8419_v17 = vpop.eup %8418 }
 0x234   :  { %v1221_v18 = vadd.f32 1.0, %v8419_v17  ;;  %v10799_v17 = vld [vmem:[#allocation50_spill] sm:$0xff] }
 0x235   :  { %v8421_v58 = vpop.eup %8420  ;;  %10826 = vst [vmem:[#allocation50_spill] sm:$0xff] %v9468_v42 }
 0x236   :  { %v8423_v20 = vpop.eup %8422  ;;  %8428 = vrcp.f32 %v1221_v18  ;;  %v1227_v7 = vadd.f32 1.0, %v8421_v58  ;;  %v10802_v18 = vld [vmem:[#allocation53_spill] sm:$0xff]  ;;  %v10803_v58 = vld [vmem:[#allocation54_spill] sm:$0xff] }
 0x237   :  { %v8425_v22 = vpop.eup %8424  ;;  %8430 = vtanh.f32 %v1215_v16  ;;  %v10800_v16 = vld [vmem:[#allocation51_spill] sm:$0xff]  ;;  %10829 = vst [vmem:[#allocation53_spill] sm:$0xff] %v9478_v43  ;;  %10830 = vst [vmem:[#allocation54_spill] sm:$0xff] %v9480_v38 }
 0x238   :  { %8432 = vrcp.f32 %v1227_v7  ;;  %v931_v23 = vmul.f32 %v8425_v22, %v8423_v20  ;;  %v8427_v32 = vpop.eup %8426  ;;  %v10804_v20 = vld [vmem:[#allocation55_spill] sm:$0xff]  ;;  %v10805_v7 = vld [vmem:[#allocation56_spill] sm:$0xff]  ;;  %v10806_v22 = vld [vmem:[#allocation57_spill] sm:$0xff]  ;;  %10827 = vst [vmem:[#allocation51_spill] sm:$0xff] %v9470_v44 }
 0x239   :  { %v1234_v27 = vadd.f32 1.0, %v8427_v32  ;;  %v10809_v32 = vld [vmem:[#allocation60_spill] sm:$0xff]  ;;  %10831 = vst [vmem:[#allocation55_spill] sm:$0xff] %v9482_v40  ;;  %10832 = vst [vmem:[#allocation56_spill] sm:$0xff] %v9484_v41 }
 0x23a   :  { %v7769_v25 = vpack.c.bf16 %v931_v23, %v931_v23  ;;  %v10807_v23 = vld [vmem:[#allocation58_spill] sm:$0xff]  ;;  %10833 = vst [vmem:[#allocation57_spill] sm:$0xff] %v9488_v39 }
 0x23b   :  { %8434 = vrcp.f32 %v1234_v27  ;;  %v10813_v27 = vld [vmem:[#allocation64_spill] sm:$0xff] }
 0x23c   :  { %1696 = vmatprep.mubr.bf16.mxu0 %v7769_v25  ;;  %1737 = vmatprep.mubr.bf16.mxu1 %v7769_v25  ;;  %v10808_v25 = vld [vmem:[#allocation59_spill] sm:$0xff] }
 0x243   :  { %v8429_v19 = vpop.eup %8428 }
 0x244   :  { %v8431_v26 = vpop.eup %8430 }
 0x245   :  { %v8433_v30 = vpop.eup %8432  ;;  %v1238_v28 = vmul.f32 %v8431_v26, %v8429_v19  ;;  %v10810_v19 = vld [vmem:[#allocation61_spill] sm:$0xff]  ;;  %v10811_v26 = vld [vmem:[#allocation62_spill] sm:$0xff] }
 0x246   :  { %v1237_v63 = vmul.f32 %v8433_v30, %v9086_v4  ;;  %v10791_v4 = vld [vmem:[#allocation42_spill] sm:$0xff]  ;;  %v10812_v30 = vld [vmem:[#allocation63_spill] sm:$0xff] }
 0x247   :  { %10818 = vst [vmem:[#allocation42_spill] sm:$0xff] %v9444_v51 }
 0x248   :  { %v9311_v29 = vadd.f32 %v1238_v28, %v1237_v63  ;;  %v8435_v31 = vpop.eup %8434  ;;  %v10814_v28 = vld [vmem:[#allocation65_spill] sm:$0xff] }
 0x249   :  { %v9346_v63 = vld [vmem:[#allocation15 + $0xe4] ss:$16 sps:$4 sm:$0xff]  }
 0x24a   :  { %8436 = vtanh.f32 %v9311_v29 }
 0x257   :  { %v8437_v61 = vpop.eup %8436 }
 0x258   :  { %v1241_v14 = vmul.f32 %v8437_v61, %v8435_v31  ;;  %v9348_v31 = vld [vmem:[#allocation15 + $0xec] ss:$16 sps:$4 sm:$0xff]   ;;  %v9350_v61 = vld [vmem:[#allocation15 + $0xe0] ss:$16 sps:$4 sm:$0xff]  }
 0x25a   :  { %v1245_v33 = vpack.c.bf16 %v1241_v14, %v1241_v14  ;;  %v9352_v14 = vld [vmem:[#allocation15 + $0xe8] ss:$16 sps:$4 sm:$0xff]  }
 0x25c   :  { %1697 = vmatmul.mubr.bf16.vlgmr.msra.gmra.mxu0 %v1245_v33  ;;  %1738 = vmatmul.mubr.bf16.vlgmr.msra.gmra.mxu1 %v1245_v33 }
 0x25d   :  { %1971 = vmatpush1.bf16.msra.mxu0 %v9089_v13  ;;  %2012 = vmatpush1.bf16.msra.mxu1 %v9091_v1  ;;  %v10795_v13 = vld [vmem:[#allocation46_spill] sm:$0xff]  ;;  %v10796_v1 = vld [vmem:[#allocation47_spill] sm:$0xff] }
 0x25e   :  { %1972 = vmatprep.subr.bf16.mxu0 %v9095_v15  ;;  %2013 = vmatprep.subr.bf16.mxu1 %v9097_v11  ;;  %v10797_v15 = vld [vmem:[#allocation48_spill] sm:$0xff]  ;;  %v10798_v11 = vld [vmem:[#allocation49_spill] sm:$0xff]  ;;  %10822 = vst [vmem:[#allocation46_spill] sm:$0xff] %v9456_v47  ;;  %10823 = vst [vmem:[#allocation47_spill] sm:$0xff] %v9458_v49 }
 0x25f   :  { %2002 = vmatprep.mubr.bf16.mxu0 %v10730_v8  ;;  %2043 = vmatprep.mubr.bf16.mxu1 %v10730_v8  ;;  %10824 = vst [vmem:[#allocation48_spill] sm:$0xff] %v9460_v50  ;;  %10825 = vst [vmem:[#allocation49_spill] sm:$0xff] %v9466_v48 }
 0x261   :  { %1973 = vmatpush1.bf16.msra.mxu0 %v9103_v2  ;;  %2014 = vmatpush1.bf16.msra.mxu1 %v10791_v4  ;;  %v10801_v2 = vld [vmem:[#allocation52_spill] sm:$0xff] }
 0x262   :  { %1974 = vmatprep.subr.bf16.mxu0 %v10792_v9  ;;  %2015 = vmatprep.subr.bf16.mxu1 %v10793_v45  ;;  %v9358_v4 = vld [vmem:[#allocation15 + $0xc4] ss:$16 sps:$4 sm:$0xff]   ;;  %v9364_v9 = vld [vmem:[#allocation15 + $0xc8] ss:$16 sps:$4 sm:$0xff]   ;;  %10828 = vst [vmem:[#allocation52_spill] sm:$0xff] %v9472_v46 }
 0x263   :  { %v9370_v45 = vld [vmem:[#allocation15 + $0xa4] ss:$16 sps:$4 sm:$0xff]  }
 0x265   :  { %1975 = vmatpush1.bf16.msra.mxu0 %v10794_v6  ;;  %2016 = vmatpush1.bf16.msra.mxu1 %v10795_v13  ;;  %v9372_v6 = vld [vmem:[#allocation15 + $0xac] ss:$16 sps:$4 sm:$0xff]   ;;  %v9374_v13 = vld [vmem:[#allocation15 + $0xa0] ss:$16 sps:$4 sm:$0xff]  }
 0x266   :  { %1976 = vmatprep.subr.bf16.mxu0 %v10796_v1  ;;  %2017 = vmatprep.subr.bf16.mxu1 %v10797_v15  ;;  %v9376_v1 = vld [vmem:[#allocation15 + $0xa8] ss:$16 sps:$4 sm:$0xff]   ;;  %v9382_v15 = vld [vmem:[#allocation15 + $0x84] ss:$16 sps:$4 sm:$0xff]  }
 0x269   :  { %1977 = vmatpush1.bf16.msra.mxu0 %v10798_v11  ;;  %2018 = vmatpush1.bf16.msra.mxu1 %v10799_v17  ;;  %v9384_v11 = vld [vmem:[#allocation15 + $0x8c] ss:$16 sps:$4 sm:$0xff]   ;;  %v9386_v17 = vld [vmem:[#allocation15 + $0x80] ss:$16 sps:$4 sm:$0xff]  }
 0x26a   :  { %1978 = vmatprep.subr.bf16.mxu0 %v10800_v16  ;;  %2019 = vmatprep.subr.bf16.mxu1 %v10801_v2  ;;  %v9388_v16 = vld [vmem:[#allocation15 + $0x88] ss:$16 sps:$4 sm:$0xff]   ;;  %v9394_v2 = vld [vmem:[#allocation15 + $0x64] ss:$16 sps:$4 sm:$0xff]  }
 0x26d   :  { %1979 = vmatpush1.bf16.msra.mxu0 %v10802_v18  ;;  %2020 = vmatpush1.bf16.msra.mxu1 %v10803_v58  ;;  %v9396_v18 = vld [vmem:[#allocation15 + $0x6c] ss:$16 sps:$4 sm:$0xff]   ;;  %v9398_v58 = vld [vmem:[#allocation15 + $0x60] ss:$16 sps:$4 sm:$0xff]  }
 0x26e   :  { %1980 = vmatprep.subr.bf16.mxu0 %v10804_v20  ;;  %2021 = vmatprep.subr.bf16.mxu1 %v10805_v7  ;;  %v9400_v20 = vld [vmem:[#allocation15 + $0x68] ss:$16 sps:$4 sm:$0xff]   ;;  %v9406_v7 = vld [vmem:[#allocation15 + $0x44] ss:$16 sps:$4 sm:$0xff]  }
 0x271   :  { %1981 = vmatpush1.bf16.msra.mxu0 %v10806_v22  ;;  %2022 = vmatpush1.bf16.msra.mxu1 %v10807_v23  ;;  %v9408_v22 = vld [vmem:[#allocation15 + $0x4c] ss:$16 sps:$4 sm:$0xff]   ;;  %v9410_v23 = vld [vmem:[#allocation15 + $0x40] ss:$16 sps:$4 sm:$0xff]  }
 0x272   :  { %1982 = vmatprep.subr.bf16.mxu0 %v10808_v25  ;;  %2023 = vmatprep.subr.bf16.mxu1 %v10809_v32  ;;  %v9412_v25 = vld [vmem:[#allocation15 + $0x48] ss:$16 sps:$4 sm:$0xff]   ;;  %v9418_v32 = vld [vmem:[#allocation15 + $0x24] ss:$16 sps:$4 sm:$0xff]  }
 0x275   :  { %1983 = vmatpush1.bf16.msra.mxu0 %v10810_v19  ;;  %2024 = vmatpush1.bf16.msra.mxu1 %v10811_v26  ;;  %v9420_v19 = vld [vmem:[#allocation15 + $0x2c] ss:$16 sps:$4 sm:$0xff]   ;;  %v9422_v26 = vld [vmem:[#allocation15 + $0x20] ss:$16 sps:$4 sm:$0xff]  }
 0x276   :  { %1984 = vmatprep.subr.bf16.mxu0 %v10812_v30  ;;  %2025 = vmatprep.subr.bf16.mxu1 %v10813_v27  ;;  %v9424_v30 = vld [vmem:[#allocation15 + $0x28] ss:$16 sps:$4 sm:$0xff]   ;;  %v9430_v27 = vld [vmem:[#allocation15 + $0x4] ss:$16 sps:$4 sm:$0xff]  }
 0x279   :  { %1985 = vmatpush1.bf16.msra.mxu0 %v10814_v28  ;;  %2026 = vmatpush1.bf16.msra.mxu1 %v9179_v5  ;;  %v9360_v5 = vld [vmem:[#allocation15 + $0xcc] ss:$16 sps:$4 sm:$0xff]  }
 0x27a   :  { %2503 = vmatprep.subr.bf16.mxu0 %v9346_v63  ;;  %2544 = vmatprep.subr.bf16.mxu1 %v9348_v31  ;;  %v9432_v28 = vld [vmem:[#allocation15 + $0xc] ss:$16 sps:$4 sm:$0xff]  }
 0x27c   :  { %2003 = vmatmul.mubr.bf16.vlgmr.msra.gmra.mxu0 %v1245_v33  ;;  %2044 = vmatmul.mubr.bf16.vlgmr.msra.gmra.mxu1 %v1245_v33  ;;  %v9362_v33 = vld [vmem:[#allocation15 + $0xc0] ss:$16 sps:$4 sm:$0xff]  }
 0x27d   :  { %2504 = vmatpush1.bf16.msra.mxu0 %v9350_v61  ;;  %2545 = vmatpush1.bf16.msra.mxu1 %v9352_v14 }
 0x27e   :  { %2505 = vmatprep.subr.bf16.mxu0 %v9358_v4  ;;  %2546 = vmatprep.subr.bf16.mxu1 %v9360_v5 }
 0x281   :  { %2506 = vmatpush1.bf16.msra.mxu0 %v9362_v33  ;;  %2547 = vmatpush1.bf16.msra.mxu1 %v9364_v9 }
 0x282   :  { %2507 = vmatprep.subr.bf16.mxu0 %v9370_v45  ;;  %2548 = vmatprep.subr.bf16.mxu1 %v9372_v6 }
 0x285   :  { %2508 = vmatpush1.bf16.msra.mxu0 %v9374_v13  ;;  %2549 = vmatpush1.bf16.msra.mxu1 %v9376_v1 }
 0x286   :  { %2509 = vmatprep.subr.bf16.mxu0 %v9382_v15  ;;  %2550 = vmatprep.subr.bf16.mxu1 %v9384_v11 }
 0x289   :  { %2510 = vmatpush1.bf16.msra.mxu0 %v9386_v17  ;;  %2551 = vmatpush1.bf16.msra.mxu1 %v9388_v16 }
 0x28a   :  { %2511 = vmatprep.subr.bf16.mxu0 %v9394_v2  ;;  %2552 = vmatprep.subr.bf16.mxu1 %v9396_v18 }
 0x28d   :  { %2512 = vmatpush1.bf16.msra.mxu0 %v9398_v58  ;;  %2553 = vmatpush1.bf16.msra.mxu1 %v9400_v20 }
 0x28e   :  { %2513 = vmatprep.subr.bf16.mxu0 %v9406_v7  ;;  %2554 = vmatprep.subr.bf16.mxu1 %v9408_v22 }
 0x291   :  { %2514 = vmatpush1.bf16.msra.mxu0 %v9410_v23  ;;  %2555 = vmatpush1.bf16.msra.mxu1 %v9412_v25 }
 0x292   :  { %2515 = vmatprep.subr.bf16.mxu0 %v9418_v32  ;;  %2556 = vmatprep.subr.bf16.mxu1 %v9420_v19 }
 0x295   :  { %2516 = vmatpush1.bf16.msra.mxu0 %v9422_v26  ;;  %2557 = vmatpush1.bf16.msra.mxu1 %v9424_v30 }
 0x296   :  { %2517 = vmatprep.subr.bf16.mxu0 %v9430_v27  ;;  %2558 = vmatprep.subr.bf16.mxu1 %v9432_v28 }
 0x299   :  { %2518 = vmatpush1.bf16.msra.mxu0 %v9434_v59  ;;  %2559 = vmatpush1.bf16.msra.mxu1 %v9436_v62 }
 0x29a   :  { %2519 = vmatprep.subr.bf16.mxu0 %v9442_v57  ;;  %2560 = vmatprep.subr.bf16.mxu1 %v9444_v51 }
 0x29d   :  { %2520 = vmatpush2.bf16.msra.mxu0 %v9446_v53  ;;  %2561 = vmatpush2.bf16.msra.mxu1 %v9448_v55 }
 0x29e   :  { %2521 = vmatprep.subr.bf16.mxu0 %v9454_v52  ;;  %2562 = vmatprep.subr.bf16.mxu1 %v9456_v47 }
 0x2a1   :  { %2522 = vmatpush2.bf16.msra.mxu0 %v9458_v49  ;;  %2563 = vmatpush2.bf16.msra.mxu1 %v9460_v50  ;;  %v9501_v50 = vld [vmem:[#allocation15 + $0x14c] ss:$16 sps:$4 sm:$0xff]  }
 0x2a2   :  { %2523 = vmatprep.subr.bf16.mxu0 %v9466_v48  ;;  %2564 = vmatprep.subr.bf16.mxu1 %v9468_v42  ;;  %v9496_v42 = vld [vmem:[#allocation15 + $0x16c] ss:$16 sps:$4 sm:$0xff]   ;;  %v9499_v48 = vld [vmem:[#allocation15 + $0x144] ss:$16 sps:$4 sm:$0xff]   ;;  %10838 = vst [vmem:[#allocation62_spill] sm:$0xff] %v9501_v50 }
 0x2a3   :  { %10836 = vst [vmem:[#allocation60_spill] sm:$0xff] %v9496_v42  ;;  %10837 = vst [vmem:[#allocation61_spill] sm:$0xff] %v9499_v48 }
 0x2a5   :  { %2524 = vmatpush2.bf16.msra.mxu0 %v9470_v44  ;;  %2565 = vmatpush2.bf16.msra.mxu1 %v9472_v46  ;;  %v9492_v44 = vld [vmem:[#allocation15 + $0x160] ss:$16 sps:$4 sm:$0xff]   ;;  %v9494_v46 = vld [vmem:[#allocation15 + $0x168] ss:$16 sps:$4 sm:$0xff]  }
 0x2a6   :  { %2525 = vmatprep.subr.bf16.mxu0 %v9478_v43  ;;  %2566 = vmatprep.subr.bf16.mxu1 %v9480_v38  ;;  %10834 = vst [vmem:[#allocation58_spill] sm:$0xff] %v9492_v44  ;;  %10835 = vst [vmem:[#allocation59_spill] sm:$0xff] %v9494_v46  ;;  %v9512_v38 = vld [vmem:[#allocation15 + $0x124] ss:$16 sps:$4 sm:$0xff]  }
 0x2a7   :  { %10841 = vst [vmem:[#allocation65_spill] sm:$0xff] %v9512_v38 }
 0x2a9   :  { %2526 = vmatpush2.bf16.msra.mxu0 %v9482_v40  ;;  %2567 = vmatpush2.bf16.msra.mxu1 %v9484_v41  ;;  %v9506_v40 = vld [vmem:[#allocation15 + $0x140] ss:$16 sps:$4 sm:$0xff]   ;;  %v9508_v41 = vld [vmem:[#allocation15 + $0x148] ss:$16 sps:$4 sm:$0xff]  }
 0x2aa   :  { %2527 = vmatprep.subr.bf16.mxu0 %v9488_v39  ;;  %2568 = vmatprep.subr.bf16.mxu1 %v9496_v42  ;;  %10839 = vst [vmem:[#allocation63_spill] sm:$0xff] %v9506_v40  ;;  %10840 = vst [vmem:[#allocation64_spill] sm:$0xff] %v9508_v41  ;;  %v9514_v39 = vld [vmem:[#allocation15 + $0x12c] ss:$16 sps:$4 sm:$0xff]   ;;  %v9518_v42 = vld [vmem:[#allocation15 + $0x120] ss:$16 sps:$4 sm:$0xff]  }
 0x2ab   :  { %10842 = vst [vmem:[#allocation73_spill] sm:$0xff] %v9514_v39  ;;  %10843 = vst [vmem:[#allocation74_spill] sm:$0xff] %v9518_v42 }
 0x2ad   :  { %2528 = vmatpush2.bf16.msra.mxu0 %v9492_v44  ;;  %2569 = vmatpush2.bf16.msra.mxu1 %v9494_v46  ;;  %v9520_v44 = vld [vmem:[#allocation15 + $0x128] ss:$16 sps:$4 sm:$0xff]   ;;  %v9524_v46 = vld [vmem:[#allocation15 + $0x104] ss:$16 sps:$4 sm:$0xff]  }
 0x2ae   :  { %2529 = vmatprep.subr.bf16.mxu0 %v9499_v48  ;;  %2570 = vmatprep.subr.bf16.mxu1 %v9501_v50  ;;  %10844 = vst [vmem:[#allocation75_spill] sm:$0xff] %v9520_v44  ;;  %10845 = vst [vmem:[#allocation76_spill] sm:$0xff] %v9524_v46  ;;  %v9526_v48 = vld [vmem:[#allocation15 + $0x10c] ss:$16 sps:$4 sm:$0xff]   ;;  %v9530_v50 = vld [vmem:[#allocation15 + $0x100] ss:$16 sps:$4 sm:$0xff]  }
 0x2af   :  { %10846 = vst [vmem:[#allocation77_spill] sm:$0xff] %v9526_v48  ;;  %10847 = vst [vmem:[#allocation78_spill] sm:$0xff] %v9530_v50 }
 0x2b1   :  { %2530 = vmatpush2.bf16.msra.mxu0 %v9506_v40  ;;  %2571 = vmatpush2.bf16.msra.mxu1 %v9508_v41  ;;  %v9532_v40 = vld [vmem:[#allocation15 + $0x108] ss:$16 sps:$4 sm:$0xff]   ;;  %v9536_v41 = vld [vmem:[#allocation14 + $0xe4] ss:$16 sps:$4 sm:$0xff]  }
 0x2b2   :  { %2531 = vmatprep.subr.bf16.mxu0 %v9512_v38  ;;  %2572 = vmatprep.subr.bf16.mxu1 %v9514_v39  ;;  %10848 = vst [vmem:[#allocation79_spill] sm:$0xff] %v9532_v40  ;;  %10849 = vst [vmem:[#allocation80_spill] sm:$0xff] %v9536_v41  ;;  %v9538_v38 = vld [vmem:[#allocation14 + $0xec] ss:$16 sps:$4 sm:$0xff]  }
 0x2b3   :  { %10850 = vst [vmem:[#allocation81_spill] sm:$0xff] %v9538_v38 }
 0x2b5   :  { %2532 = vmatpush2.bf16.msra.mxu0 %v9518_v42  ;;  %2573 = vmatpush2.bf16.msra.mxu1 %v9520_v44  ;;  %v1315_v44 = vld [vmem:[#allocation17] sm:$0xf] }
 0x2b6   :  { %2533 = vmatprep.subr.bf16.mxu0 %v9524_v46  ;;  %2574 = vmatprep.subr.bf16.mxu1 %v9526_v48  ;;  %v1320_v42 = vrot.slane %v1315_v44, %v10784_v60  ;;  %v1324_v39 = vrot.slane %v1315_v44, %v10786_v0  ;;  %v1328_v60 = vrot.slane %v1315_v44, %v10788_v24 }
 0x2b9   :  { %2534 = vmatpush2.bf16.msra.mxu0 %v9530_v50  ;;  %2575 = vmatpush2.bf16.msra.mxu1 %v9532_v40 }
 0x2ba   :  { %2809 = vmatprep.subr.bf16.mxu0 %v9536_v41  ;;  %2850 = vmatprep.subr.bf16.mxu1 %v9538_v38  ;;  %v1332_v38 = vrot.slane %v1315_v44, %v10787_v21 }
 0x31c   :  { %v1698_v46 = vpop.f32.mrf.mxu0  ;;  %v1739_v43 = vpop.f32.mrf.mxu1 }
 0x31d   :  { %v1699_v48 = vadd.f32 %v1698_v46, %v1320_v42  ;;  %v1740_v59 = vadd.f32 %v1739_v43, %v1328_v60 }
 0x31e   :  { %v1700_v49 = vpop.f32.mrf.mxu0  ;;  %v1741_v47 = vpop.f32.mrf.mxu1 }
 0x31f   :  { %v7099_v52 = vmul.f32 -1.442695, %v1699_v48  ;;  %v1701_v55 = vadd.f32 %v1700_v49, %v1324_v39  ;;  %v1742_v57 = vadd.f32 %v1741_v47, %v1332_v38  ;;  %v240_v48 = vadd.f32 %v9251_v35, %v10789_v3 }
 0x320   :  { %v1702_v53 = vpop.f32.mrf.mxu0  ;;  %v1743_v50 = vpop.f32.mrf.mxu1  ;;  %v242_v38 = vadd.f32 %v9255_v37, %v10790_v12 }
 0x321   :  { %8438 = vpow2.f32 %v7099_v52  ;;  %v7100_v40 = vmul.f32 -1.442695, %v1701_v55  ;;  %v7101_v0 = vmul.f32 -1.442695, %v1742_v57 }
 0x322   :  { %v1703_v51 = vpop.f32.mrf.mxu0  ;;  %v1744_v41 = vpop.f32.mrf.mxu1 }
 0x323   :  { %8440 = vpow2.f32 %v7100_v40 }
 0x324   :  { %8442 = vpow2.f32 %v7101_v0 }
 0x32e   :  { %v8439_v62 = vpop.eup %8438 }
 0x32f   :  { %v1750_v42 = vadd.f32 1.0, %v8439_v62 }
 0x330   :  { %v8441_v46 = vpop.eup %8440 }
 0x331   :  { %8444 = vrcp.f32 %v1750_v42  ;;  %v1756_v39 = vadd.f32 1.0, %v8441_v46  ;;  %v8443_v49 = vpop.eup %8442 }
 0x332   :  { %8446 = vtanh.f32 %v1740_v59  ;;  %v1763_v57 = vadd.f32 1.0, %v8443_v49 }
 0x333   :  { %8448 = vrcp.f32 %v1756_v39  ;;  %v315_v39 = vadd.f32 %v9253_v36, %v9079_v54 }
 0x33c   :  { %v2004_v41 = vpop.f32.mrf.mxu0  ;;  %v2045_v40 = vpop.f32.mrf.mxu1 }
 0x33d   :  { %v2052_v44 = vadd.f32 %v2004_v41, %v240_v48  ;;  %v313_v41 = vadd.f32 %v9249_v34, %v9082_v10 }
 0x33e   :  { %v8445_v47 = vpop.eup %8444  ;;  %v2006_v50 = vpop.f32.mrf.mxu0 }
 0x33f   :  { %v2047_v43 = vpop.f32.mrf.mxu1  ;;  %v8447_v51 = vpop.eup %8446  ;;  %v7134_v52 = vmul.f32 -1.442695, %v2052_v44  ;;  %v2053_v53 = vadd.f32 %v2006_v50, %v242_v38  ;;  %v2054_v49 = vadd.f32 %v2045_v40, %v313_v41  ;;  %v9570_v41 = vld [vmem:[#allocation14 + $0xc4] ss:$16 sps:$4 sm:$0xff]  }
 0x340   :  { %v8449_v55 = vpop.eup %8448  ;;  %v2008_v59 = vpop.f32.mrf.mxu0  ;;  %v1767_v62 = vmul.f32 %v8447_v51, %v8445_v47  ;;  %v2055_v48 = vadd.f32 %v2047_v43, %v315_v39  ;;  %v9566_v39 = vld [vmem:[#allocation14 + $0xe8] ss:$16 sps:$4 sm:$0xff]  }
 0x341   :  { %v2049_v60 = vpop.f32.mrf.mxu1  ;;  %v1766_v35 = vmul.f32 %v8449_v55, %v9303_v56  ;;  %8450 = vpow2.f32 %v7134_v52  ;;  %v7135_v0 = vmul.f32 -1.442695, %v2053_v53 }
 0x342   :  { %v2009_v42 = vpop.f32.mrf.mxu0  ;;  %v7136_v38 = vmul.f32 -1.442695, %v2055_v48 }
 0x343   :  { %v2050_v46 = vpop.f32.mrf.mxu1  ;;  %8452 = vpow2.f32 %v7135_v0  ;;  %v9553_v37 = vadd.f32 %v1767_v62, %v1766_v35 }
 0x344   :  { %8454 = vrcp.f32 %v1763_v57  ;;  %v9564_v46 = vld [vmem:[#allocation14 + $0xe0] ss:$16 sps:$4 sm:$0xff]  }
 0x345   :  { %8456 = vtanh.f32 %v9553_v37 }
 0x346   :  { %8458 = vtanh.f32 %v2054_v49  ;;  %v9572_v49 = vld [vmem:[#allocation14 + $0xcc] ss:$16 sps:$4 sm:$0xff]  }
 0x347   :  { %8460 = vpow2.f32 %v7136_v38  ;;  %v9580_v38 = vld [vmem:[#allocation14 + $0xc8] ss:$16 sps:$4 sm:$0xff]  }
 0x34e   :  { %v8451_v56 = vpop.eup %8450 }
 0x34f   :  { %v2060_v44 = vadd.f32 1.0, %v8451_v56  ;;  %v9584_v56 = vld [vmem:[#allocation14 + $0xa4] ss:$16 sps:$4 sm:$0xff]  }
 0x350   :  { %v8453_v47 = vpop.eup %8452 }
 0x351   :  { %v8455_v50 = vpop.eup %8454  ;;  %8462 = vrcp.f32 %v2060_v44  ;;  %v2066_v51 = vadd.f32 1.0, %v8453_v47  ;;  %v9586_v44 = vld [vmem:[#allocation14 + $0xac] ss:$16 sps:$4 sm:$0xff]   ;;  %v9592_v47 = vld [vmem:[#allocation14 + $0xa0] ss:$16 sps:$4 sm:$0xff]  }
 0x352   :  { %v8457_v52 = vpop.eup %8456 }
 0x353   :  { %8464 = vrcp.f32 %v2066_v51  ;;  %v1770_v53 = vmul.f32 %v8457_v52, %v8455_v50  ;;  %v8459_v36 = vpop.eup %8458  ;;  %v9594_v50 = vld [vmem:[#allocation14 + $0xa8] ss:$16 sps:$4 sm:$0xff]   ;;  %v9598_v51 = vld [vmem:[#allocation14 + $0x84] ss:$16 sps:$4 sm:$0xff]   ;;  %v9600_v52 = vld [vmem:[#allocation14 + $0x8c] ss:$16 sps:$4 sm:$0xff]  }
 0x354   :  { %v8461_v43 = vpop.eup %8460 }
 0x355   :  { %v7771_v55 = vpack.c.bf16 %v1770_v53, %v1770_v53  ;;  %v2073_v59 = vadd.f32 1.0, %v8461_v43  ;;  %v9604_v53 = vld [vmem:[#allocation14 + $0x80] ss:$16 sps:$4 sm:$0xff]   ;;  %v9612_v43 = vld [vmem:[#allocation14 + $0x6c] ss:$16 sps:$4 sm:$0xff]  }
 0x356   :  { %10851 = vst [vmem:[#allocation82_spill] sm:$0xff] %v9612_v43 }
 0x357   :  { %2535 = vmatprep.mubr.bf16.mxu0 %v7771_v55  ;;  %2576 = vmatprep.mubr.bf16.mxu1 %v7771_v55  ;;  %8466 = vrcp.f32 %v2073_v59  ;;  %v9606_v55 = vld [vmem:[#allocation14 + $0x88] ss:$16 sps:$4 sm:$0xff]   ;;  %v9624_v59 = vld [vmem:[#allocation14 + $0x4c] ss:$16 sps:$4 sm:$0xff]  }
 0x358   :  { %10855 = vst [vmem:[#allocation86_spill] sm:$0xff] %v9624_v59 }
 0x35e   :  { %v8463_v57 = vpop.eup %8462 }
 0x35f   :  { %v2077_v34 = vmul.f32 %v8463_v57, %v8459_v36  ;;  %v9610_v36 = vld [vmem:[#allocation14 + $0x64] ss:$16 sps:$4 sm:$0xff]   ;;  %v9616_v57 = vld [vmem:[#allocation14 + $0x60] ss:$16 sps:$4 sm:$0xff]  }
 0x360   :  { %v8465_v40 = vpop.eup %8464  ;;  %10852 = vst [vmem:[#allocation83_spill] sm:$0xff] %v9616_v57 }
 0x361   :  { %v2076_v60 = vmul.f32 %v8465_v40, %v9311_v29  ;;  %v9578_v29 = vld [vmem:[#allocation14 + $0xc0] ss:$16 sps:$4 sm:$0xff]   ;;  %v9622_v40 = vld [vmem:[#allocation14 + $0x44] ss:$16 sps:$4 sm:$0xff]  }
 0x362   :  { %10854 = vst [vmem:[#allocation85_spill] sm:$0xff] %v9622_v40 }
 0x363   :  { %v9561_v62 = vadd.f32 %v2077_v34, %v2076_v60  ;;  %v9618_v34 = vld [vmem:[#allocation14 + $0x68] ss:$16 sps:$4 sm:$0xff]   ;;  %v9628_v60 = vld [vmem:[#allocation14 + $0x40] ss:$16 sps:$4 sm:$0xff]  }
 0x364   :  { %v8467_v35 = vpop.eup %8466  ;;  %10853 = vst [vmem:[#allocation84_spill] sm:$0xff] %v9618_v34  ;;  %10856 = vst [vmem:[#allocation87_spill] sm:$0xff] %v9628_v60 }
 0x365   :  { %8468 = vtanh.f32 %v9561_v62 }
 0x372   :  { %v8469_v0 = vpop.eup %8468 }
 0x373   :  { %v2080_v42 = vmul.f32 %v8469_v0, %v8467_v35  ;;  %v9630_v35 = vld [vmem:[#allocation14 + $0x48] ss:$16 sps:$4 sm:$0xff]   ;;  %v9634_v0 = vld [vmem:[#allocation14 + $0x24] ss:$16 sps:$4 sm:$0xff]  }
 0x375   :  { %v9568_v48 = vpack.c.bf16 %v2080_v42, %v2080_v42  ;;  %v9636_v42 = vld [vmem:[#allocation14 + $0x2c] ss:$16 sps:$4 sm:$0xff]  }
 0x377   :  { %2536 = vmatmul.mubr.bf16.vlgmr.msra.gmra.mxu0 %v9568_v48  ;;  %2577 = vmatmul.mubr.bf16.vlgmr.msra.gmra.mxu1 %v9568_v48 }
 0x378   :  { %2810 = vmatpush1.bf16.msra.mxu0 %v9564_v46  ;;  %2851 = vmatpush1.bf16.msra.mxu1 %v9566_v39 }
 0x379   :  { %2811 = vmatprep.subr.bf16.mxu0 %v9570_v41  ;;  %2852 = vmatprep.subr.bf16.mxu1 %v9572_v49 }
 0x37a   :  { %2841 = vmatprep.mubr.bf16.mxu0 %v10730_v8  ;;  %2882 = vmatprep.mubr.bf16.mxu1 %v10730_v8 }
 0x37c   :  { %2812 = vmatpush1.bf16.msra.mxu0 %v9578_v29  ;;  %2853 = vmatpush1.bf16.msra.mxu1 %v9580_v38 }
 0x37d   :  { %2813 = vmatprep.subr.bf16.mxu0 %v9584_v56  ;;  %2854 = vmatprep.subr.bf16.mxu1 %v9586_v44 }
 0x380   :  { %2814 = vmatpush1.bf16.msra.mxu0 %v9592_v47  ;;  %2855 = vmatpush1.bf16.msra.mxu1 %v9594_v50 }
 0x381   :  { %2815 = vmatprep.subr.bf16.mxu0 %v9598_v51  ;;  %2856 = vmatprep.subr.bf16.mxu1 %v9600_v52 }
 0x384   :  { %2816 = vmatpush1.bf16.msra.mxu0 %v9604_v53  ;;  %2857 = vmatpush1.bf16.msra.mxu1 %v9606_v55 }
 0x385   :  { %2817 = vmatprep.subr.bf16.mxu0 %v9610_v36  ;;  %2858 = vmatprep.subr.bf16.mxu1 %v9612_v43  ;;  %v9640_v43 = vld [vmem:[#allocation14 + $0x20] ss:$16 sps:$4 sm:$0xff]  }
 0x388   :  { %2818 = vmatpush1.bf16.msra.mxu0 %v9616_v57  ;;  %2859 = vmatpush1.bf16.msra.mxu1 %v9618_v34  ;;  %v9642_v57 = vld [vmem:[#allocation14 + $0x28] ss:$16 sps:$4 sm:$0xff]   ;;  %v9646_v34 = vld [vmem:[#allocation14 + $0x4] ss:$16 sps:$4 sm:$0xff]  }
 0x389   :  { %2819 = vmatprep.subr.bf16.mxu0 %v9622_v40  ;;  %2860 = vmatprep.subr.bf16.mxu1 %v9624_v59  ;;  %v9648_v40 = vld [vmem:[#allocation14 + $0xc] ss:$16 sps:$4 sm:$0xff]   ;;  %v9652_v59 = vld [vmem:[#allocation14] ss:$16 sps:$4 sm:$0xff]  }
 0x38c   :  { %2820 = vmatpush1.bf16.msra.mxu0 %v9628_v60  ;;  %2861 = vmatpush1.bf16.msra.mxu1 %v9630_v35  ;;  %v9654_v60 = vld [vmem:[#allocation14 + $0x8] ss:$16 sps:$4 sm:$0xff]  }
 0x38d   :  { %2821 = vmatprep.subr.bf16.mxu0 %v9634_v0  ;;  %2862 = vmatprep.subr.bf16.mxu1 %v9636_v42 }
 0x390   :  { %2822 = vmatpush1.bf16.msra.mxu0 %v9640_v43  ;;  %2863 = vmatpush1.bf16.msra.mxu1 %v9642_v57 }
 0x391   :  { %2823 = vmatprep.subr.bf16.mxu0 %v9646_v34  ;;  %2864 = vmatprep.subr.bf16.mxu1 %v9648_v40 }
 0x394   :  { %2824 = vmatpush1.bf16.msra.mxu0 %v9652_v59  ;;  %2865 = vmatpush1.bf16.msra.mxu1 %v9654_v60 }
 0x395   :  { %3342 = vmatprep.subr.bf16.mxu0 %v9346_v63  ;;  %3383 = vmatprep.subr.bf16.mxu1 %v9348_v31  ;;  %v10857_v63 = vld [vmem:[#allocation40_spill] sm:$0xff]  ;;  %v10858_v31 = vld [vmem:[#allocation41_spill] sm:$0xff] }
 0x397   :  { %2842 = vmatmul.mubr.bf16.vlgmr.msra.gmra.mxu0 %v9568_v48  ;;  %2883 = vmatmul.mubr.bf16.vlgmr.msra.gmra.mxu1 %v9568_v48  ;;  %v10887_v48 = vld [vmem:[#allocation76_spill] sm:$0xff] }
 0x398   :  { %3343 = vmatpush1.bf16.msra.mxu0 %v9350_v61  ;;  %3384 = vmatpush1.bf16.msra.mxu1 %v9352_v14  ;;  %v10859_v61 = vld [vmem:[#allocation39_spill] sm:$0xff]  ;;  %v10860_v14 = vld [vmem:[#allocation42_spill] sm:$0xff] }
 0x399   :  { %3344 = vmatprep.subr.bf16.mxu0 %v9358_v4  ;;  %3385 = vmatprep.subr.bf16.mxu1 %v9360_v5  ;;  %v10861_v4 = vld [vmem:[#allocation43_spill] sm:$0xff]  ;;  %v10862_v5 = vld [vmem:[#allocation44_spill] sm:$0xff] }
 0x39c   :  { %3345 = vmatpush1.bf16.msra.mxu0 %v9362_v33  ;;  %3386 = vmatpush1.bf16.msra.mxu1 %v9364_v9  ;;  %v10863_v33 = vld [vmem:[#allocation45_spill] sm:$0xff]  ;;  %v10864_v9 = vld [vmem:[#allocation46_spill] sm:$0xff] }
 0x39d   :  { %3346 = vmatprep.subr.bf16.mxu0 %v9370_v45  ;;  %3387 = vmatprep.subr.bf16.mxu1 %v9372_v6  ;;  %v10865_v45 = vld [vmem:[#allocation47_spill] sm:$0xff]  ;;  %v10866_v6 = vld [vmem:[#allocation48_spill] sm:$0xff] }
 0x3a0   :  { %3347 = vmatpush1.bf16.msra.mxu0 %v9374_v13  ;;  %3388 = vmatpush1.bf16.msra.mxu1 %v9376_v1  ;;  %v10867_v13 = vld [vmem:[#allocation49_spill] sm:$0xff]  ;;  %v10868_v1 = vld [vmem:[#allocation50_spill] sm:$0xff] }
 0x3a1   :  { %3348 = vmatprep.subr.bf16.mxu0 %v9382_v15  ;;  %3389 = vmatprep.subr.bf16.mxu1 %v9384_v11  ;;  %v10869_v15 = vld [vmem:[#allocation51_spill] sm:$0xff]  ;;  %v10870_v11 = vld [vmem:[#allocation52_spill] sm:$0xff] }
 0x3a4   :  { %3349 = vmatpush1.bf16.msra.mxu0 %v9386_v17  ;;  %3390 = vmatpush1.bf16.msra.mxu1 %v9388_v16  ;;  %v10871_v17 = vld [vmem:[#allocation53_spill] sm:$0xff]  ;;  %v10872_v16 = vld [vmem:[#allocation54_spill] sm:$0xff] }
 0x3a5   :  { %3350 = vmatprep.subr.bf16.mxu0 %v9394_v2  ;;  %3391 = vmatprep.subr.bf16.mxu1 %v9396_v18  ;;  %v10873_v2 = vld [vmem:[#allocation55_spill] sm:$0xff]  ;;  %v10874_v18 = vld [vmem:[#allocation56_spill] sm:$0xff] }
 0x3a8   :  { %3351 = vmatpush1.bf16.msra.mxu0 %v9398_v58  ;;  %3392 = vmatpush1.bf16.msra.mxu1 %v9400_v20  ;;  %v10875_v58 = vld [vmem:[#allocation57_spill] sm:$0xff]  ;;  %v10876_v20 = vld [vmem:[#allocation60_spill] sm:$0xff] }
 0x3a9   :  { %3352 = vmatprep.subr.bf16.mxu0 %v9406_v7  ;;  %3393 = vmatprep.subr.bf16.mxu1 %v9408_v22  ;;  %v10877_v7 = vld [vmem:[#allocation58_spill] sm:$0xff]  ;;  %v10878_v22 = vld [vmem:[#allocation59_spill] sm:$0xff] }
 0x3ac   :  { %3353 = vmatpush1.bf16.msra.mxu0 %v9410_v23  ;;  %3394 = vmatpush1.bf16.msra.mxu1 %v9412_v25  ;;  %v10879_v23 = vld [vmem:[#allocation61_spill] sm:$0xff]  ;;  %v10880_v25 = vld [vmem:[#allocation62_spill] sm:$0xff] }
 0x3ad   :  { %3354 = vmatprep.subr.bf16.mxu0 %v9418_v32  ;;  %3395 = vmatprep.subr.bf16.mxu1 %v9420_v19  ;;  %v10881_v32 = vld [vmem:[#allocation63_spill] sm:$0xff]  ;;  %v10882_v19 = vld [vmem:[#allocation64_spill] sm:$0xff] }
 0x3b0   :  { %3355 = vmatpush1.bf16.msra.mxu0 %v9422_v26  ;;  %3396 = vmatpush1.bf16.msra.mxu1 %v9424_v30  ;;  %v10883_v26 = vld [vmem:[#allocation65_spill] sm:$0xff] }
 0x3b1   :  { %3356 = vmatprep.subr.bf16.mxu0 %v9430_v27  ;;  %3397 = vmatprep.subr.bf16.mxu1 %v9432_v28  ;;  %v10884_v30 = vld [vmem:[#allocation73_spill] sm:$0xff]  ;;  %v10885_v27 = vld [vmem:[#allocation74_spill] sm:$0xff]  ;;  %v10886_v28 = vld [vmem:[#allocation75_spill] sm:$0xff] }
 0x3b4   :  { %3357 = vmatpush1.bf16.msra.mxu0 %v10857_v63  ;;  %3398 = vmatpush1.bf16.msra.mxu1 %v10858_v31  ;;  %v10888_v63 = vld [vmem:[#allocation77_spill] sm:$0xff]  ;;  %v10889_v31 = vld [vmem:[#allocation78_spill] sm:$0xff] }
 0x3b5   :  { %3358 = vmatprep.subr.bf16.mxu0 %v10859_v61  ;;  %3399 = vmatprep.subr.bf16.mxu1 %v10860_v14  ;;  %v10890_v61 = vld [vmem:[#allocation79_spill] sm:$0xff]  ;;  %v10891_v14 = vld [vmem:[#allocation80_spill] sm:$0xff] }
 0x3b8   :  { %3359 = vmatpush2.bf16.msra.mxu0 %v10861_v4  ;;  %3400 = vmatpush2.bf16.msra.mxu1 %v10862_v5  ;;  %v10892_v4 = vld [vmem:[#allocation81_spill] sm:$0xff]  ;;  %v2154_v5 = vld [vmem:[#allocation17] sm:$0xf] }
 0x3b9   :  { %3360 = vmatprep.subr.bf16.mxu0 %v10863_v33  ;;  %3401 = vmatprep.subr.bf16.mxu1 %v10864_v9  ;;  %v10893_v33 = vld [vmem:[#allocation36_spill] sm:$0xff] }
 0x3ba   :  { %v2159_v9 = vrot.slane %v2154_v5, %v10893_v33 }
 0x3bc   :  { %3361 = vmatpush2.bf16.msra.mxu0 %v10865_v45  ;;  %3402 = vmatpush2.bf16.msra.mxu1 %v10866_v6  ;;  %v10894_v45 = vld [vmem:[#allocation37_spill] sm:$0xff] }
 0x3bd   :  { %3362 = vmatprep.subr.bf16.mxu0 %v10867_v13  ;;  %3403 = vmatprep.subr.bf16.mxu1 %v10868_v1  ;;  %v2163_v6 = vrot.slane %v2154_v5, %v10894_v45 }
 0x3c0   :  { %3363 = vmatpush2.bf16.msra.mxu0 %v10869_v15  ;;  %3404 = vmatpush2.bf16.msra.mxu1 %v10870_v11 }
 0x3c1   :  { %3364 = vmatprep.subr.bf16.mxu0 %v10871_v17  ;;  %3405 = vmatprep.subr.bf16.mxu1 %v10872_v16 }
 0x3c4   :  { %3365 = vmatpush2.bf16.msra.mxu0 %v10873_v2  ;;  %3406 = vmatpush2.bf16.msra.mxu1 %v10874_v18 }
 0x3c5   :  { %3366 = vmatprep.subr.bf16.mxu0 %v10875_v58  ;;  %3407 = vmatprep.subr.bf16.mxu1 %v10876_v20 }
 0x3c8   :  { %3367 = vmatpush2.bf16.msra.mxu0 %v10877_v7  ;;  %3408 = vmatpush2.bf16.msra.mxu1 %v10878_v22 }
 0x3c9   :  { %3368 = vmatprep.subr.bf16.mxu0 %v10879_v23  ;;  %3409 = vmatprep.subr.bf16.mxu1 %v10880_v25  ;;  %v2171_v23 = vrot.slane %v2154_v5, %v10787_v21 }
 0x3cc   :  { %3369 = vmatpush2.bf16.msra.mxu0 %v10881_v32  ;;  %3410 = vmatpush2.bf16.msra.mxu1 %v10882_v19  ;;  %v2167_v32 = vrot.slane %v2154_v5, %v10788_v24 }
 0x3cd   :  { %3370 = vmatprep.subr.bf16.mxu0 %v10883_v26  ;;  %3411 = vmatprep.subr.bf16.mxu1 %v10884_v30 }
 0x3d0   :  { %3371 = vmatpush2.bf16.msra.mxu0 %v10885_v27  ;;  %3412 = vmatpush2.bf16.msra.mxu1 %v10886_v28 }
 0x3d1   :  { %3372 = vmatprep.subr.bf16.mxu0 %v10887_v48  ;;  %3413 = vmatprep.subr.bf16.mxu1 %v10888_v63  ;;  %v10895_v63 = vld [vmem:[#allocation23_spill] sm:$0xff] }
 0x3d4   :  { %3373 = vmatpush2.bf16.msra.mxu0 %v10889_v31  ;;  %3414 = vmatpush2.bf16.msra.mxu1 %v10890_v61  ;;  %v244_v31 = vadd.f32 %v10895_v63, %v10789_v3 }
 0x3d5   :  { %3648 = vmatprep.subr.bf16.mxu0 %v10891_v14  ;;  %3689 = vmatprep.subr.bf16.mxu1 %v10892_v4 }
 0x437   :  { %v2537_v13 = vpop.f32.mrf.mxu0  ;;  %v2578_v1 = vpop.f32.mrf.mxu1 }
 0x438   :  { %v2538_v15 = vadd.f32 %v2537_v13, %v2159_v9  ;;  %v2579_v30 = vadd.f32 %v2578_v1, %v2167_v32  ;;  %v10896_v9 = vld [vmem:[#allocation26_spill] sm:$0xff] }
 0x439   :  { %v2539_v11 = vpop.f32.mrf.mxu0  ;;  %v2580_v17 = vpop.f32.mrf.mxu1 }
 0x43a   :  { %v7203_v16 = vmul.f32 -1.442695, %v2538_v15  ;;  %v2540_v2 = vadd.f32 %v2539_v11, %v2163_v6  ;;  %v2581_v25 = vadd.f32 %v2580_v17, %v2171_v23  ;;  %v246_v6 = vadd.f32 %v10896_v9, %v10790_v12 }
 0x43b   :  { %v2541_v18 = vpop.f32.mrf.mxu0  ;;  %v2582_v58 = vpop.f32.mrf.mxu1 }
 0x43c   :  { %8470 = vpow2.f32 %v7203_v16  ;;  %v7204_v20 = vmul.f32 -1.442695, %v2540_v2  ;;  %v7205_v19 = vmul.f32 -1.442695, %v2581_v25 }
 0x43d   :  { %v2542_v7 = vpop.f32.mrf.mxu0  ;;  %v2583_v22 = vpop.f32.mrf.mxu1 }
 0x43e   :  { %8472 = vpow2.f32 %v7204_v20 }
 0x43f   :  { %8474 = vpow2.f32 %v7205_v19 }
 0x449   :  { %v8471_v26 = vpop.eup %8470 }
 0x44a   :  { %v2589_v27 = vadd.f32 1.0, %v8471_v26  ;;  %v10897_v26 = vld [vmem:[#allocation24_spill] sm:$0xff] }
 0x44b   :  { %v8473_v28 = vpop.eup %8472 }
 0x44c   :  { %8476 = vrcp.f32 %v2589_v27  ;;  %v2595_v48 = vadd.f32 1.0, %v8473_v28  ;;  %v8475_v4 = vpop.eup %8474  ;;  %v10898_v28 = vld [vmem:[#allocation25_spill] sm:$0xff] }
 0x44d   :  { %8478 = vtanh.f32 %v2579_v30  ;;  %v2602_v18 = vadd.f32 1.0, %v8475_v4  ;;  %v319_v30 = vadd.f32 %v10897_v26, %v9079_v54  ;;  %v9842_v26 = vld [vmem:[#allocation15 + $0x4c] ss:$16 sps:$4 sm:$0xff]  }
 0x44e   :  { %8480 = vrcp.f32 %v2595_v48  ;;  %v317_v48 = vadd.f32 %v10898_v28, %v9082_v10  ;;  %v9852_v28 = vld [vmem:[#allocation15 + $0x24] ss:$16 sps:$4 sm:$0xff]  }
 0x457   :  { %v2843_v61 = vpop.f32.mrf.mxu0  ;;  %v2884_v14 = vpop.f32.mrf.mxu1 }
 0x458   :  { %v2891_v5 = vadd.f32 %v2843_v61, %v244_v31  ;;  %v2893_v63 = vadd.f32 %v2884_v14, %v317_v48  ;;  %v9854_v48 = vld [vmem:[#allocation15 + $0x2c] ss:$16 sps:$4 sm:$0xff]  }
 0x459   :  { %v8477_v13 = vpop.eup %8476  ;;  %v2845_v15 = vpop.f32.mrf.mxu0 }
 0x45a   :  { %v2886_v1 = vpop.f32.mrf.mxu1  ;;  %v8479_v11 = vpop.eup %8478  ;;  %v7238_v17 = vmul.f32 -1.442695, %v2891_v5  ;;  %v2892_v16 = vadd.f32 %v2845_v15, %v246_v6 }
 0x45b   :  { %v8481_v2 = vpop.eup %8480  ;;  %v2847_v58 = vpop.f32.mrf.mxu0  ;;  %v2606_v7 = vmul.f32 %v8479_v11, %v8477_v13  ;;  %v2894_v27 = vadd.f32 %v2886_v1, %v319_v30  ;;  %v9844_v30 = vld [vmem:[#allocation15 + $0x40] ss:$16 sps:$4 sm:$0xff]  }
 0x45c   :  { %v2888_v20 = vpop.f32.mrf.mxu1  ;;  %v2605_v22 = vmul.f32 %v8481_v2, %v9553_v37  ;;  %8482 = vpow2.f32 %v7238_v17  ;;  %v7239_v23 = vmul.f32 -1.442695, %v2892_v16 }
 0x45d   :  { %v2848_v25 = vpop.f32.mrf.mxu0  ;;  %v7240_v31 = vmul.f32 -1.442695, %v2894_v27  ;;  %v9846_v27 = vld [vmem:[#allocation15 + $0x48] ss:$16 sps:$4 sm:$0xff]  }
 0x45e   :  { %v2889_v32 = vpop.f32.mrf.mxu1  ;;  %8484 = vpow2.f32 %v7239_v23  ;;  %v9737_v19 = vadd.f32 %v2606_v7, %v2605_v22  ;;  %v9834_v25 = vld [vmem:[#allocation15 + $0x68] ss:$16 sps:$4 sm:$0xff]  }
 0x45f   :  { %8486 = vrcp.f32 %v2602_v18  ;;  %v9840_v32 = vld [vmem:[#allocation15 + $0x44] ss:$16 sps:$4 sm:$0xff]  }
 0x460   :  { %8488 = vtanh.f32 %v9737_v19 }
 0x461   :  { %8490 = vtanh.f32 %v2893_v63  ;;  %v9856_v63 = vld [vmem:[#allocation15 + $0x20] ss:$16 sps:$4 sm:$0xff]  }
 0x462   :  { %8492 = vpow2.f32 %v7240_v31  ;;  %v9858_v31 = vld [vmem:[#allocation15 + $0x28] ss:$16 sps:$4 sm:$0xff]  }
 0x469   :  { %v8483_v37 = vpop.eup %8482 }
 0x46a   :  { %v2899_v61 = vadd.f32 1.0, %v8483_v37  ;;  %v9864_v37 = vld [vmem:[#allocation15 + $0x4] ss:$16 sps:$4 sm:$0xff]  }
 0x46b   :  { %v8485_v4 = vpop.eup %8484 }
 0x46c   :  { %v8487_v9 = vpop.eup %8486  ;;  %8494 = vrcp.f32 %v2899_v61  ;;  %v2905_v6 = vadd.f32 1.0, %v8485_v4  ;;  %v9866_v61 = vld [vmem:[#allocation15 + $0xc] ss:$16 sps:$4 sm:$0xff]   ;;  %v9868_v4 = vld [vmem:[#allocation15] ss:$16 sps:$4 sm:$0xff]  }
 0x46d   :  { %v8489_v5 = vpop.eup %8488 }
 0x46e   :  { %8496 = vrcp.f32 %v2905_v6  ;;  %v2609_v13 = vmul.f32 %v8489_v5, %v8487_v9  ;;  %v8491_v1 = vpop.eup %8490  ;;  %v9870_v9 = vld [vmem:[#allocation15 + $0x8] ss:$16 sps:$4 sm:$0xff]   ;;  %v9876_v6 = vld [vmem:[#allocation15 + $0x1e4] ss:$16 sps:$4 sm:$0xff]   ;;  %v9878_v5 = vld [vmem:[#allocation15 + $0x1ec] ss:$16 sps:$4 sm:$0xff]  }
 0x46f   :  { %v8493_v11 = vpop.eup %8492 }
 0x470   :  { %v7773_v15 = vpack.c.bf16 %v2609_v13, %v2609_v13  ;;  %v2912_v2 = vadd.f32 1.0, %v8493_v11  ;;  %v9880_v13 = vld [vmem:[#allocation15 + $0x1e0] ss:$16 sps:$4 sm:$0xff]   ;;  %v9890_v11 = vld [vmem:[#allocation15 + $0x1cc] ss:$16 sps:$4 sm:$0xff]  }
 0x471   :  { %10905 = vst [vmem:[#allocation40_spill] sm:$0xff] %v9880_v13  ;;  %10908 = vst [vmem:[#allocation42_spill] sm:$0xff] %v9890_v11 }
 0x472   :  { %3374 = vmatprep.mubr.bf16.mxu0 %v7773_v15  ;;  %3415 = vmatprep.mubr.bf16.mxu1 %v7773_v15  ;;  %8498 = vrcp.f32 %v2912_v2  ;;  %v9882_v15 = vld [vmem:[#allocation15 + $0x1e8] ss:$16 sps:$4 sm:$0xff]   ;;  %v9902_v2 = vld [vmem:[#allocation15 + $0x1ac] ss:$16 sps:$4 sm:$0xff]  }
 0x473   :  { %10906 = vst [vmem:[#allocation41_spill] sm:$0xff] %v9882_v15  ;;  %10912 = vst [vmem:[#allocation46_spill] sm:$0xff] %v9902_v2 }
 0x479   :  { %v8495_v17 = vpop.eup %8494 }
 0x47a   :  { %v2916_v16 = vmul.f32 %v8495_v17, %v8491_v1  ;;  %v9888_v1 = vld [vmem:[#allocation15 + $0x1c4] ss:$16 sps:$4 sm:$0xff]   ;;  %v9892_v17 = vld [vmem:[#allocation15 + $0x1c0] ss:$16 sps:$4 sm:$0xff]  }
 0x47b   :  { %v8497_v14 = vpop.eup %8496  ;;  %10907 = vst [vmem:[#allocation39_spill] sm:$0xff] %v9888_v1  ;;  %10909 = vst [vmem:[#allocation43_spill] sm:$0xff] %v9892_v17 }
 0x47c   :  { %v2915_v18 = vmul.f32 %v8497_v14, %v9561_v62  ;;  %v10899_v62 = vld [vmem:[#allocation82_spill] sm:$0xff] }
 0x47d   :  { %v9900_v14 = vld [vmem:[#allocation15 + $0x1a4] ss:$16 sps:$4 sm:$0xff]  }
 0x47e   :  { %v9745_v58 = vadd.f32 %v2916_v16, %v2915_v18  ;;  %v9894_v16 = vld [vmem:[#allocation15 + $0x1c8] ss:$16 sps:$4 sm:$0xff]   ;;  %10911 = vst [vmem:[#allocation45_spill] sm:$0xff] %v9900_v14  ;;  %v9904_v18 = vld [vmem:[#allocation15 + $0x1a0] ss:$16 sps:$4 sm:$0xff]  }
 0x47f   :  { %v8499_v20 = vpop.eup %8498  ;;  %10910 = vst [vmem:[#allocation44_spill] sm:$0xff] %v9894_v16  ;;  %10913 = vst [vmem:[#allocation47_spill] sm:$0xff] %v9904_v18 }
 0x480   :  { %8500 = vtanh.f32 %v9745_v58 }
 0x48d   :  { %v8501_v7 = vpop.eup %8500 }
 0x48e   :  { %v2919_v22 = vmul.f32 %v8501_v7, %v8499_v20  ;;  %v9906_v20 = vld [vmem:[#allocation15 + $0x1a8] ss:$16 sps:$4 sm:$0xff]   ;;  %v9912_v7 = vld [vmem:[#allocation15 + $0x184] ss:$16 sps:$4 sm:$0xff]  }
 0x48f   :  { %10914 = vst [vmem:[#allocation48_spill] sm:$0xff] %v9906_v20  ;;  %10915 = vst [vmem:[#allocation49_spill] sm:$0xff] %v9912_v7 }
 0x490   :  { %v2923_v23 = vpack.c.bf16 %v2919_v22, %v2919_v22  ;;  %v9914_v22 = vld [vmem:[#allocation15 + $0x18c] ss:$16 sps:$4 sm:$0xff]  }
 0x491   :  { %10916 = vst [vmem:[#allocation50_spill] sm:$0xff] %v9914_v22 }
 0x492   :  { %3375 = vmatmul.mubr.bf16.vlgmr.msra.gmra.mxu0 %v2923_v23  ;;  %3416 = vmatmul.mubr.bf16.vlgmr.msra.gmra.mxu1 %v2923_v23 }
 0x493   :  { %3649 = vmatpush1.bf16.msra.mxu0 %v9564_v46  ;;  %3690 = vmatpush1.bf16.msra.mxu1 %v9566_v39  ;;  %v10900_v46 = vld [vmem:[#allocation83_spill] sm:$0xff]  ;;  %v10901_v39 = vld [vmem:[#allocation84_spill] sm:$0xff] }
 0x494   :  { %3650 = vmatprep.subr.bf16.mxu0 %v9570_v41  ;;  %3691 = vmatprep.subr.bf16.mxu1 %v9572_v49  ;;  %v10902_v41 = vld [vmem:[#allocation85_spill] sm:$0xff]  ;;  %v10903_v49 = vld [vmem:[#allocation86_spill] sm:$0xff] }
 0x495   :  { %3680 = vmatprep.mubr.bf16.mxu0 %v10730_v8  ;;  %3721 = vmatprep.mubr.bf16.mxu1 %v10730_v8 }
 0x497   :  { %3651 = vmatpush1.bf16.msra.mxu0 %v9578_v29  ;;  %3692 = vmatpush1.bf16.msra.mxu1 %v9580_v38  ;;  %v10904_v29 = vld [vmem:[#allocation87_spill] sm:$0xff] }
 0x498   :  { %3652 = vmatprep.subr.bf16.mxu0 %v9584_v56  ;;  %3693 = vmatprep.subr.bf16.mxu1 %v9586_v44  ;;  %v9780_v38 = vld [vmem:[#allocation15 + $0xe4] ss:$16 sps:$4 sm:$0xff]   ;;  %v9782_v56 = vld [vmem:[#allocation15 + $0xec] ss:$16 sps:$4 sm:$0xff]   ;;  %v9784_v44 = vld [vmem:[#allocation15 + $0xe0] ss:$16 sps:$4 sm:$0xff]  }
 0x49b   :  { %3653 = vmatpush1.bf16.msra.mxu0 %v9592_v47  ;;  %3694 = vmatpush1.bf16.msra.mxu1 %v9594_v50  ;;  %v9786_v47 = vld [vmem:[#allocation15 + $0xe8] ss:$16 sps:$4 sm:$0xff]   ;;  %v9792_v50 = vld [vmem:[#allocation15 + $0xc4] ss:$16 sps:$4 sm:$0xff]  }
 0x49c   :  { %3654 = vmatprep.subr.bf16.mxu0 %v9598_v51  ;;  %3695 = vmatprep.subr.bf16.mxu1 %v9600_v52  ;;  %v9794_v51 = vld [vmem:[#allocation15 + $0xcc] ss:$16 sps:$4 sm:$0xff]   ;;  %v9796_v52 = vld [vmem:[#allocation15 + $0xc0] ss:$16 sps:$4 sm:$0xff]  }
 0x49f   :  { %3655 = vmatpush1.bf16.msra.mxu0 %v9604_v53  ;;  %3696 = vmatpush1.bf16.msra.mxu1 %v9606_v55  ;;  %v9798_v53 = vld [vmem:[#allocation15 + $0xc8] ss:$16 sps:$4 sm:$0xff]   ;;  %v9804_v55 = vld [vmem:[#allocation15 + $0xa4] ss:$16 sps:$4 sm:$0xff]  }
 0x4a0   :  { %3656 = vmatprep.subr.bf16.mxu0 %v9610_v36  ;;  %3697 = vmatprep.subr.bf16.mxu1 %v10899_v62  ;;  %v9806_v36 = vld [vmem:[#allocation15 + $0xac] ss:$16 sps:$4 sm:$0xff]   ;;  %v9918_v62 = vld [vmem:[#allocation15 + $0x188] ss:$16 sps:$4 sm:$0xff]  }
 0x4a1   :  { %10918 = vst [vmem:[#allocation52_spill] sm:$0xff] %v9918_v62 }
 0x4a3   :  { %3657 = vmatpush1.bf16.msra.mxu0 %v10900_v46  ;;  %3698 = vmatpush1.bf16.msra.mxu1 %v10901_v39  ;;  %v9922_v46 = vld [vmem:[#allocation15 + $0x164] ss:$16 sps:$4 sm:$0xff]   ;;  %v9926_v39 = vld [vmem:[#allocation15 + $0x160] ss:$16 sps:$4 sm:$0xff]  }
 0x4a4   :  { %3658 = vmatprep.subr.bf16.mxu0 %v10902_v41  ;;  %3699 = vmatprep.subr.bf16.mxu1 %v10903_v49  ;;  %10919 = vst [vmem:[#allocation53_spill] sm:$0xff] %v9922_v46  ;;  %10920 = vst [vmem:[#allocation54_spill] sm:$0xff] %v9926_v39  ;;  %v9928_v41 = vld [vmem:[#allocation15 + $0x168] ss:$16 sps:$4 sm:$0xff]   ;;  %v9930_v49 = vld [vmem:[#allocation15 + $0x16c] ss:$16 sps:$4 sm:$0xff]  }
 0x4a5   :  { %10921 = vst [vmem:[#allocation55_spill] sm:$0xff] %v9928_v41  ;;  %10922 = vst [vmem:[#allocation56_spill] sm:$0xff] %v9930_v49 }
 0x4a7   :  { %3659 = vmatpush1.bf16.msra.mxu0 %v10904_v29  ;;  %3700 = vmatpush1.bf16.msra.mxu1 %v9630_v35  ;;  %v9828_v35 = vld [vmem:[#allocation15 + $0x64] ss:$16 sps:$4 sm:$0xff]  }
 0x4a8   :  { %3660 = vmatprep.subr.bf16.mxu0 %v9634_v0  ;;  %3701 = vmatprep.subr.bf16.mxu1 %v9636_v42  ;;  %v9830_v0 = vld [vmem:[#allocation15 + $0x6c] ss:$16 sps:$4 sm:$0xff]   ;;  %v9832_v42 = vld [vmem:[#allocation15 + $0x60] ss:$16 sps:$4 sm:$0xff]   ;;  %v9933_v29 = vld [vmem:[#allocation15 + $0x144] ss:$16 sps:$4 sm:$0xff]  }
 0x4a9   :  { %10923 = vst [vmem:[#allocation57_spill] sm:$0xff] %v9933_v29 }
 0x4ab   :  { %3661 = vmatpush1.bf16.msra.mxu0 %v9640_v43  ;;  %3702 = vmatpush1.bf16.msra.mxu1 %v9642_v57  ;;  %v9808_v43 = vld [vmem:[#allocation15 + $0xa0] ss:$16 sps:$4 sm:$0xff]   ;;  %v9810_v57 = vld [vmem:[#allocation15 + $0xa8] ss:$16 sps:$4 sm:$0xff]  }
 0x4ac   :  { %3662 = vmatprep.subr.bf16.mxu0 %v9646_v34  ;;  %3703 = vmatprep.subr.bf16.mxu1 %v9648_v40  ;;  %v9816_v34 = vld [vmem:[#allocation15 + $0x84] ss:$16 sps:$4 sm:$0xff]   ;;  %v9818_v40 = vld [vmem:[#allocation15 + $0x8c] ss:$16 sps:$4 sm:$0xff]  }
 0x4af   :  { %3663 = vmatpush1.bf16.msra.mxu0 %v9652_v59  ;;  %3704 = vmatpush1.bf16.msra.mxu1 %v9654_v60  ;;  %v9820_v59 = vld [vmem:[#allocation15 + $0x80] ss:$16 sps:$4 sm:$0xff]   ;;  %v9822_v60 = vld [vmem:[#allocation15 + $0x88] ss:$16 sps:$4 sm:$0xff]  }
 0x4b0   :  { %4181 = vmatprep.subr.bf16.mxu0 %v9780_v38  ;;  %4222 = vmatprep.subr.bf16.mxu1 %v9782_v56 }
 0x4b2   :  { %3681 = vmatmul.mubr.bf16.vlgmr.msra.gmra.mxu0 %v2923_v23  ;;  %3722 = vmatmul.mubr.bf16.vlgmr.msra.gmra.mxu1 %v2923_v23  ;;  %v9916_v23 = vld [vmem:[#allocation15 + $0x180] ss:$16 sps:$4 sm:$0xff]  }
 0x4b3   :  { %4182 = vmatpush1.bf16.msra.mxu0 %v9784_v44  ;;  %4223 = vmatpush1.bf16.msra.mxu1 %v9786_v47  ;;  %10917 = vst [vmem:[#allocation51_spill] sm:$0xff] %v9916_v23 }
 0x4b4   :  { %4183 = vmatprep.subr.bf16.mxu0 %v9792_v50  ;;  %4224 = vmatprep.subr.bf16.mxu1 %v9794_v51 }
 0x4b7   :  { %4184 = vmatpush1.bf16.msra.mxu0 %v9796_v52  ;;  %4225 = vmatpush1.bf16.msra.mxu1 %v9798_v53 }
 0x4b8   :  { %4185 = vmatprep.subr.bf16.mxu0 %v9804_v55  ;;  %4226 = vmatprep.subr.bf16.mxu1 %v9806_v36 }
 0x4bb   :  { %4186 = vmatpush1.bf16.msra.mxu0 %v9808_v43  ;;  %4227 = vmatpush1.bf16.msra.mxu1 %v9810_v57 }
 0x4bc   :  { %4187 = vmatprep.subr.bf16.mxu0 %v9816_v34  ;;  %4228 = vmatprep.subr.bf16.mxu1 %v9818_v40 }
 0x4bf   :  { %4188 = vmatpush1.bf16.msra.mxu0 %v9820_v59  ;;  %4229 = vmatpush1.bf16.msra.mxu1 %v9822_v60 }
 0x4c0   :  { %4189 = vmatprep.subr.bf16.mxu0 %v9828_v35  ;;  %4230 = vmatprep.subr.bf16.mxu1 %v9830_v0 }
 0x4c3   :  { %4190 = vmatpush1.bf16.msra.mxu0 %v9832_v42  ;;  %4231 = vmatpush1.bf16.msra.mxu1 %v9834_v25 }
 0x4c4   :  { %4191 = vmatprep.subr.bf16.mxu0 %v9840_v32  ;;  %4232 = vmatprep.subr.bf16.mxu1 %v9842_v26 }
 0x4c7   :  { %4192 = vmatpush1.bf16.msra.mxu0 %v9844_v30  ;;  %4233 = vmatpush1.bf16.msra.mxu1 %v9846_v27 }
 0x4c8   :  { %4193 = vmatprep.subr.bf16.mxu0 %v9852_v28  ;;  %4234 = vmatprep.subr.bf16.mxu1 %v9854_v48 }
 0x4cb   :  { %4194 = vmatpush1.bf16.msra.mxu0 %v9856_v63  ;;  %4235 = vmatpush1.bf16.msra.mxu1 %v9858_v31 }
 0x4cc   :  { %4195 = vmatprep.subr.bf16.mxu0 %v9864_v37  ;;  %4236 = vmatprep.subr.bf16.mxu1 %v9866_v61 }
 0x4cf   :  { %4196 = vmatpush1.bf16.msra.mxu0 %v9868_v4  ;;  %4237 = vmatpush1.bf16.msra.mxu1 %v9870_v9 }
 0x4d0   :  { %4197 = vmatprep.subr.bf16.mxu0 %v9876_v6  ;;  %4238 = vmatprep.subr.bf16.mxu1 %v9878_v5 }
 0x4d3   :  { %4198 = vmatpush2.bf16.msra.mxu0 %v9880_v13  ;;  %4239 = vmatpush2.bf16.msra.mxu1 %v9882_v15 }
 0x4d4   :  { %4199 = vmatprep.subr.bf16.mxu0 %v9888_v1  ;;  %4240 = vmatprep.subr.bf16.mxu1 %v9890_v11 }
 0x4d7   :  { %4200 = vmatpush2.bf16.msra.mxu0 %v9892_v17  ;;  %4241 = vmatpush2.bf16.msra.mxu1 %v9894_v16 }
 0x4d8   :  { %4201 = vmatprep.subr.bf16.mxu0 %v9900_v14  ;;  %4242 = vmatprep.subr.bf16.mxu1 %v9902_v2 }
 0x4db   :  { %4202 = vmatpush2.bf16.msra.mxu0 %v9904_v18  ;;  %4243 = vmatpush2.bf16.msra.mxu1 %v9906_v20  ;;  %v9935_v20 = vld [vmem:[#allocation15 + $0x14c] ss:$16 sps:$4 sm:$0xff]  }
 0x4dc   :  { %4203 = vmatprep.subr.bf16.mxu0 %v9912_v7  ;;  %4244 = vmatprep.subr.bf16.mxu1 %v9914_v22  ;;  %10924 = vst [vmem:[#allocation60_spill] sm:$0xff] %v9935_v20  ;;  %v9946_v22 = vld [vmem:[#allocation15 + $0x124] ss:$16 sps:$4 sm:$0xff]  }
 0x4dd   :  { %10927 = vst [vmem:[#allocation61_spill] sm:$0xff] %v9946_v22 }
 0x4df   :  { %4204 = vmatpush2.bf16.msra.mxu0 %v9916_v23  ;;  %4245 = vmatpush2.bf16.msra.mxu1 %v9918_v62  ;;  %v9940_v23 = vld [vmem:[#allocation15 + $0x140] ss:$16 sps:$4 sm:$0xff]   ;;  %v9942_v62 = vld [vmem:[#allocation15 + $0x148] ss:$16 sps:$4 sm:$0xff]  }
 0x4e0   :  { %4205 = vmatprep.subr.bf16.mxu0 %v9922_v46  ;;  %4246 = vmatprep.subr.bf16.mxu1 %v9930_v49  ;;  %10925 = vst [vmem:[#allocation58_spill] sm:$0xff] %v9940_v23  ;;  %10926 = vst [vmem:[#allocation59_spill] sm:$0xff] %v9942_v62  ;;  %v9948_v46 = vld [vmem:[#allocation15 + $0x12c] ss:$16 sps:$4 sm:$0xff]   ;;  %v9952_v49 = vld [vmem:[#allocation15 + $0x120] ss:$16 sps:$4 sm:$0xff]  }
 0x4e1   :  { %10928 = vst [vmem:[#allocation62_spill] sm:$0xff] %v9948_v46  ;;  %10929 = vst [vmem:[#allocation63_spill] sm:$0xff] %v9952_v49 }
 0x4e3   :  { %4206 = vmatpush2.bf16.msra.mxu0 %v9926_v39  ;;  %4247 = vmatpush2.bf16.msra.mxu1 %v9928_v41  ;;  %v9954_v39 = vld [vmem:[#allocation15 + $0x128] ss:$16 sps:$4 sm:$0xff]   ;;  %v9958_v41 = vld [vmem:[#allocation15 + $0x104] ss:$16 sps:$4 sm:$0xff]  }
 0x4e4   :  { %4207 = vmatprep.subr.bf16.mxu0 %v9933_v29  ;;  %4248 = vmatprep.subr.bf16.mxu1 %v9935_v20  ;;  %10930 = vst [vmem:[#allocation64_spill] sm:$0xff] %v9954_v39  ;;  %10931 = vst [vmem:[#allocation65_spill] sm:$0xff] %v9958_v41  ;;  %v9960_v29 = vld [vmem:[#allocation15 + $0x10c] ss:$16 sps:$4 sm:$0xff]   ;;  %v9964_v20 = vld [vmem:[#allocation15 + $0x100] ss:$16 sps:$4 sm:$0xff]  }
 0x4e5   :  { %10932 = vst [vmem:[#allocation73_spill] sm:$0xff] %v9960_v29  ;;  %10933 = vst [vmem:[#allocation74_spill] sm:$0xff] %v9964_v20 }
 0x4e7   :  { %4208 = vmatpush2.bf16.msra.mxu0 %v9940_v23  ;;  %4249 = vmatpush2.bf16.msra.mxu1 %v9942_v62  ;;  %v9966_v23 = vld [vmem:[#allocation15 + $0x108] ss:$16 sps:$4 sm:$0xff]   ;;  %v9970_v62 = vld [vmem:[#allocation14 + $0xe4] ss:$16 sps:$4 sm:$0xff]  }
 0x4e8   :  { %4209 = vmatprep.subr.bf16.mxu0 %v9946_v22  ;;  %4250 = vmatprep.subr.bf16.mxu1 %v9948_v46  ;;  %10934 = vst [vmem:[#allocation75_spill] sm:$0xff] %v9966_v23  ;;  %10935 = vst [vmem:[#allocation76_spill] sm:$0xff] %v9970_v62  ;;  %v9972_v22 = vld [vmem:[#allocation14 + $0xec] ss:$16 sps:$4 sm:$0xff]  }
 0x4e9   :  { %10936 = vst [vmem:[#allocation77_spill] sm:$0xff] %v9972_v22 }
 0x4eb   :  { %4210 = vmatpush2.bf16.msra.mxu0 %v9952_v49  ;;  %4251 = vmatpush2.bf16.msra.mxu1 %v9954_v39  ;;  %v2993_v39 = vld [vmem:[#allocation17] sm:$0xf] }
 0x4ec   :  { %4211 = vmatprep.subr.bf16.mxu0 %v9958_v41  ;;  %4252 = vmatprep.subr.bf16.mxu1 %v9960_v29  ;;  %v2998_v49 = vrot.slane %v2993_v39, %v10893_v33  ;;  %v3002_v46 = vrot.slane %v2993_v39, %v10894_v45  ;;  %v3006_v33 = vrot.slane %v2993_v39, %v10788_v24 }
 0x4ef   :  { %4212 = vmatpush2.bf16.msra.mxu0 %v9964_v20  ;;  %4253 = vmatpush2.bf16.msra.mxu1 %v9966_v23 }
 0x4f0   :  { %4487 = vmatprep.subr.bf16.mxu0 %v9970_v62  ;;  %4528 = vmatprep.subr.bf16.mxu1 %v9972_v22  ;;  %v3010_v22 = vrot.slane %v2993_v39, %v10787_v21 }
 0x552   :  { %v3376_v41 = vpop.f32.mrf.mxu0  ;;  %v3417_v7 = vpop.f32.mrf.mxu1 }
 0x553   :  { %v3377_v29 = vadd.f32 %v3376_v41, %v2998_v49  ;;  %v3418_v13 = vadd.f32 %v3417_v7, %v3006_v33 }
 0x554   :  { %v3378_v18 = vpop.f32.mrf.mxu0  ;;  %v3419_v2 = vpop.f32.mrf.mxu1 }
 0x555   :  { %v7307_v14 = vmul.f32 -1.442695, %v3377_v29  ;;  %v3379_v16 = vadd.f32 %v3378_v18, %v3002_v46  ;;  %v3420_v1 = vadd.f32 %v3419_v2, %v3010_v22  ;;  %v10938_v2 = vld [vmem:[#allocation30_spill] sm:$0xff] }
 0x556   :  { %v3380_v17 = vpop.f32.mrf.mxu0  ;;  %v3421_v20 = vpop.f32.mrf.mxu1  ;;  %v252_v22 = vadd.f32 %v10938_v2, %v10790_v12 }
 0x557   :  { %8502 = vpow2.f32 %v7307_v14  ;;  %v7308_v23 = vmul.f32 -1.442695, %v3379_v16  ;;  %v7309_v45 = vmul.f32 -1.442695, %v3420_v1  ;;  %v10937_v17 = vld [vmem:[#allocation28_spill] sm:$0xff] }
 0x558   :  { %v3381_v11 = vpop.f32.mrf.mxu0  ;;  %v3422_v62 = vpop.f32.mrf.mxu1 }
 0x559   :  { %8504 = vpow2.f32 %v7308_v23  ;;  %v250_v11 = vadd.f32 %v10937_v17, %v10789_v3 }
 0x55a   :  { %8506 = vpow2.f32 %v7309_v45 }
 0x564   :  { %v8503_v15 = vpop.eup %8502 }
 0x565   :  { %v3428_v41 = vadd.f32 1.0, %v8503_v15 }
 0x566   :  { %v8505_v49 = vpop.eup %8504 }
 0x567   :  { %8508 = vrcp.f32 %v3428_v41  ;;  %v3434_v18 = vadd.f32 1.0, %v8505_v49  ;;  %v8507_v20 = vpop.eup %8506 }
 0x568   :  { %8510 = vtanh.f32 %v3418_v13  ;;  %v3441_v39 = vadd.f32 1.0, %v8507_v20  ;;  %v10940_v20 = vld [vmem:[#allocation27_spill] sm:$0xff] }
 0x569   :  { %8512 = vrcp.f32 %v3434_v18 }
 0x572   :  { %v3682_v16 = vpop.f32.mrf.mxu0  ;;  %v3723_v14 = vpop.f32.mrf.mxu1 }
 0x573   :  { %v3730_v23 = vadd.f32 %v3682_v16, %v250_v11  ;;  %v10939_v11 = vld [vmem:[#allocation29_spill] sm:$0xff] }
 0x574   :  { %v8509_v1 = vpop.eup %8508  ;;  %v3684_v62 = vpop.f32.mrf.mxu0  ;;  %v325_v16 = vadd.f32 %v10939_v11, %v9079_v54 }
 0x575   :  { %v3725_v33 = vpop.f32.mrf.mxu1  ;;  %v8511_v15 = vpop.eup %8510  ;;  %v7342_v7 = vmul.f32 -1.442695, %v3730_v23  ;;  %v3731_v45 = vadd.f32 %v3684_v62, %v252_v22  ;;  %v323_v23 = vadd.f32 %v10940_v20, %v9082_v10 }
 0x576   :  { %v8513_v46 = vpop.eup %8512  ;;  %v3686_v13 = vpop.f32.mrf.mxu0  ;;  %v3445_v41 = vmul.f32 %v8511_v15, %v8509_v1  ;;  %v3733_v22 = vadd.f32 %v3725_v33, %v325_v16 }
 0x577   :  { %v3727_v29 = vpop.f32.mrf.mxu1  ;;  %v3444_v49 = vmul.f32 %v8513_v46, %v9737_v19  ;;  %8514 = vpow2.f32 %v7342_v7  ;;  %v7343_v18 = vmul.f32 -1.442695, %v3731_v45  ;;  %v3732_v1 = vadd.f32 %v3723_v14, %v323_v23  ;;  %v9998_v23 = vld [vmem:[#allocation14 + $0xe0] ss:$16 sps:$4 sm:$0xff]  }
 0x578   :  { %v3687_v17 = vpop.f32.mrf.mxu0  ;;  %v7344_v62 = vmul.f32 -1.442695, %v3733_v22 }
 0x579   :  { %v3728_v3 = vpop.f32.mrf.mxu1  ;;  %8516 = vpow2.f32 %v7343_v18  ;;  %v9987_v2 = vadd.f32 %v3445_v41, %v3444_v49 }
 0x57a   :  { %8518 = vrcp.f32 %v3441_v39 }
 0x57b   :  { %8520 = vtanh.f32 %v9987_v2 }
 0x57c   :  { %8522 = vtanh.f32 %v3732_v1  ;;  %v10000_v1 = vld [vmem:[#allocation14 + $0xe8] ss:$16 sps:$4 sm:$0xff]  }
 0x57d   :  { %8524 = vpow2.f32 %v7344_v62 }
 0x584   :  { %v8515_v19 = vpop.eup %8514 }
 0x585   :  { %v3738_v15 = vadd.f32 1.0, %v8515_v19  ;;  %v10004_v19 = vld [vmem:[#allocation14 + $0xc4] ss:$16 sps:$4 sm:$0xff]  }
 0x586   :  { %v8517_v7 = vpop.eup %8516 }
 0x587   :  { %v8519_v3 = vpop.eup %8518  ;;  %8526 = vrcp.f32 %v3738_v15  ;;  %v3744_v45 = vadd.f32 1.0, %v8517_v7  ;;  %v10006_v15 = vld [vmem:[#allocation14 + $0xcc] ss:$16 sps:$4 sm:$0xff]   ;;  %v10014_v7 = vld [vmem:[#allocation14 + $0xc8] ss:$16 sps:$4 sm:$0xff]  }
 0x588   :  { %v8521_v46 = vpop.eup %8520 }
 0x589   :  { %8528 = vrcp.f32 %v3744_v45  ;;  %v3448_v39 = vmul.f32 %v8521_v46, %v8519_v3  ;;  %v8523_v33 = vpop.eup %8522  ;;  %v10018_v3 = vld [vmem:[#allocation14 + $0xa4] ss:$16 sps:$4 sm:$0xff]   ;;  %v10020_v45 = vld [vmem:[#allocation14 + $0xac] ss:$16 sps:$4 sm:$0xff]   ;;  %v10026_v46 = vld [vmem:[#allocation14 + $0xa0] ss:$16 sps:$4 sm:$0xff]  }
 0x58a   :  { %v8525_v29 = vpop.eup %8524 }
 0x58b   :  { %v7775_v13 = vpack.c.bf16 %v3448_v39, %v3448_v39  ;;  %v3751_v18 = vadd.f32 1.0, %v8525_v29  ;;  %v10028_v39 = vld [vmem:[#allocation14 + $0xa8] ss:$16 sps:$4 sm:$0xff]   ;;  %v10038_v29 = vld [vmem:[#allocation14 + $0x80] ss:$16 sps:$4 sm:$0xff]  }
 0x58c   :  { %10941 = vst [vmem:[#allocation78_spill] sm:$0xff] %v10038_v29 }
 0x58d   :  { %4213 = vmatprep.mubr.bf16.mxu0 %v7775_v13  ;;  %4254 = vmatprep.mubr.bf16.mxu1 %v7775_v13  ;;  %8530 = vrcp.f32 %v3751_v18  ;;  %v10032_v13 = vld [vmem:[#allocation14 + $0x84] ss:$16 sps:$4 sm:$0xff]   ;;  %v10050_v18 = vld [vmem:[#allocation14 + $0x60] ss:$16 sps:$4 sm:$0xff]  }
 0x58e   :  { %10945 = vst [vmem:[#allocation23_spill] sm:$0xff] %v10050_v18 }
 0x594   :  { %v8527_v41 = vpop.eup %8526 }
 0x595   :  { %v3755_v49 = vmul.f32 %v8527_v41, %v8523_v33  ;;  %v10034_v33 = vld [vmem:[#allocation14 + $0x8c] ss:$16 sps:$4 sm:$0xff]   ;;  %v10040_v41 = vld [vmem:[#allocation14 + $0x88] ss:$16 sps:$4 sm:$0xff]  }
 0x596   :  { %v8529_v14 = vpop.eup %8528  ;;  %10942 = vst [vmem:[#allocation79_spill] sm:$0xff] %v10040_v41 }
 0x597   :  { %v3754_v17 = vmul.f32 %v8529_v14, %v9745_v58  ;;  %v10012_v58 = vld [vmem:[#allocation14 + $0xc0] ss:$16 sps:$4 sm:$0xff]   ;;  %v10046_v14 = vld [vmem:[#allocation14 + $0x6c] ss:$16 sps:$4 sm:$0xff]  }
 0x598   :  { %10944 = vst [vmem:[#allocation81_spill] sm:$0xff] %v10046_v14 }
 0x599   :  { %v9995_v11 = vadd.f32 %v3755_v49, %v3754_v17  ;;  %v10044_v49 = vld [vmem:[#allocation14 + $0x64] ss:$16 sps:$4 sm:$0xff]   ;;  %v10052_v17 = vld [vmem:[#allocation14 + $0x68] ss:$16 sps:$4 sm:$0xff]  }
 0x59a   :  { %v8531_v16 = vpop.eup %8530  ;;  %10943 = vst [vmem:[#allocation80_spill] sm:$0xff] %v10044_v49  ;;  %10946 = vst [vmem:[#allocation26_spill] sm:$0xff] %v10052_v17 }
 0x59b   :  { %8532 = vtanh.f32 %v9995_v11 }
 0x5a8   :  { %v8533_v22 = vpop.eup %8532 }
 0x5a9   :  { %v3758_v20 = vmul.f32 %v8533_v22, %v8531_v16  ;;  %v10056_v16 = vld [vmem:[#allocation14 + $0x44] ss:$16 sps:$4 sm:$0xff]   ;;  %v10058_v22 = vld [vmem:[#allocation14 + $0x4c] ss:$16 sps:$4 sm:$0xff]  }
 0x5aa   :  { %10947 = vst [vmem:[#allocation24_spill] sm:$0xff] %v10056_v16  ;;  %10948 = vst [vmem:[#allocation25_spill] sm:$0xff] %v10058_v22 }
 0x5ab   :  { %v10002_v62 = vpack.c.bf16 %v3758_v20, %v3758_v20  ;;  %v10062_v20 = vld [vmem:[#allocation14 + $0x40] ss:$16 sps:$4 sm:$0xff]  }
 0x5ac   :  { %10949 = vst [vmem:[#allocation82_spill] sm:$0xff] %v10062_v20 }
 0x5ad   :  { %4214 = vmatmul.mubr.bf16.vlgmr.msra.gmra.mxu0 %v10002_v62  ;;  %4255 = vmatmul.mubr.bf16.vlgmr.msra.gmra.mxu1 %v10002_v62 }
 0x5ae   :  { %4488 = vmatpush1.bf16.msra.mxu0 %v9998_v23  ;;  %4529 = vmatpush1.bf16.msra.mxu1 %v10000_v1 }
 0x5af   :  { %4489 = vmatprep.subr.bf16.mxu0 %v10004_v19  ;;  %4530 = vmatprep.subr.bf16.mxu1 %v10006_v15 }
 0x5b0   :  { %4519 = vmatprep.mubr.bf16.mxu0 %v10730_v8  ;;  %4560 = vmatprep.mubr.bf16.mxu1 %v10730_v8 }
 0x5b2   :  { %4490 = vmatpush1.bf16.msra.mxu0 %v10012_v58  ;;  %4531 = vmatpush1.bf16.msra.mxu1 %v10014_v7 }
 0x5b3   :  { %4491 = vmatprep.subr.bf16.mxu0 %v10018_v3  ;;  %4532 = vmatprep.subr.bf16.mxu1 %v10020_v45 }
 0x5b6   :  { %4492 = vmatpush1.bf16.msra.mxu0 %v10026_v46  ;;  %4533 = vmatpush1.bf16.msra.mxu1 %v10028_v39 }
 0x5b7   :  { %4493 = vmatprep.subr.bf16.mxu0 %v10032_v13  ;;  %4534 = vmatprep.subr.bf16.mxu1 %v10034_v33 }
 0x5ba   :  { %4494 = vmatpush1.bf16.msra.mxu0 %v10038_v29  ;;  %4535 = vmatpush1.bf16.msra.mxu1 %v10040_v41  ;;  %v10064_v29 = vld [vmem:[#allocation14 + $0x48] ss:$16 sps:$4 sm:$0xff]   ;;  %v10068_v41 = vld [vmem:[#allocation14 + $0x24] ss:$16 sps:$4 sm:$0xff]  }
 0x5bb   :  { %4495 = vmatprep.subr.bf16.mxu0 %v10044_v49  ;;  %4536 = vmatprep.subr.bf16.mxu1 %v10046_v14  ;;  %v10070_v49 = vld [vmem:[#allocation14 + $0x2c] ss:$16 sps:$4 sm:$0xff]   ;;  %v10074_v14 = vld [vmem:[#allocation14 + $0x20] ss:$16 sps:$4 sm:$0xff]  }
 0x5be   :  { %4496 = vmatpush1.bf16.msra.mxu0 %v10050_v18  ;;  %4537 = vmatpush1.bf16.msra.mxu1 %v10052_v17  ;;  %v10076_v18 = vld [vmem:[#allocation14 + $0x28] ss:$16 sps:$4 sm:$0xff]   ;;  %v10080_v17 = vld [vmem:[#allocation14 + $0x4] ss:$16 sps:$4 sm:$0xff]  }
 0x5bf   :  { %4497 = vmatprep.subr.bf16.mxu0 %v10056_v16  ;;  %4538 = vmatprep.subr.bf16.mxu1 %v10058_v22  ;;  %v10082_v16 = vld [vmem:[#allocation14 + $0xc] ss:$16 sps:$4 sm:$0xff]   ;;  %v10086_v22 = vld [vmem:[#allocation14] ss:$16 sps:$4 sm:$0xff]  }
 0x5c2   :  { %4498 = vmatpush1.bf16.msra.mxu0 %v10062_v20  ;;  %4539 = vmatpush1.bf16.msra.mxu1 %v10064_v29  ;;  %v10088_v20 = vld [vmem:[#allocation14 + $0x8] ss:$16 sps:$4 sm:$0xff]  }
 0x5c3   :  { %4499 = vmatprep.subr.bf16.mxu0 %v10068_v41  ;;  %4540 = vmatprep.subr.bf16.mxu1 %v10070_v49 }
 0x5c6   :  { %4500 = vmatpush1.bf16.msra.mxu0 %v10074_v14  ;;  %4541 = vmatpush1.bf16.msra.mxu1 %v10076_v18 }
 0x5c7   :  { %4501 = vmatprep.subr.bf16.mxu0 %v10080_v17  ;;  %4542 = vmatprep.subr.bf16.mxu1 %v10082_v16 }
 0x5ca   :  { %4502 = vmatpush1.bf16.msra.mxu0 %v10086_v22  ;;  %4543 = vmatpush1.bf16.msra.mxu1 %v10088_v20 }
 0x5cb   :  { %5020 = vmatprep.subr.bf16.mxu0 %v9780_v38  ;;  %5061 = vmatprep.subr.bf16.mxu1 %v9782_v56  ;;  %v10950_v38 = vld [vmem:[#allocation40_spill] sm:$0xff]  ;;  %v10951_v56 = vld [vmem:[#allocation41_spill] sm:$0xff] }
 0x5cd   :  { %4520 = vmatmul.mubr.bf16.vlgmr.msra.gmra.mxu0 %v10002_v62  ;;  %4561 = vmatmul.mubr.bf16.vlgmr.msra.gmra.mxu1 %v10002_v62 }
 0x5ce   :  { %5021 = vmatpush1.bf16.msra.mxu0 %v9784_v44  ;;  %5062 = vmatpush1.bf16.msra.mxu1 %v9786_v47  ;;  %v10952_v44 = vld [vmem:[#allocation39_spill] sm:$0xff]  ;;  %v10953_v47 = vld [vmem:[#allocation42_spill] sm:$0xff] }
 0x5cf   :  { %5022 = vmatprep.subr.bf16.mxu0 %v9792_v50  ;;  %5063 = vmatprep.subr.bf16.mxu1 %v9794_v51  ;;  %v10954_v50 = vld [vmem:[#allocation43_spill] sm:$0xff]  ;;  %v10955_v51 = vld [vmem:[#allocation44_spill] sm:$0xff] }
 0x5d2   :  { %5023 = vmatpush1.bf16.msra.mxu0 %v9796_v52  ;;  %5064 = vmatpush1.bf16.msra.mxu1 %v9798_v53  ;;  %v10956_v52 = vld [vmem:[#allocation45_spill] sm:$0xff]  ;;  %v10957_v53 = vld [vmem:[#allocation46_spill] sm:$0xff] }
 0x5d3   :  { %5024 = vmatprep.subr.bf16.mxu0 %v9804_v55  ;;  %5065 = vmatprep.subr.bf16.mxu1 %v9806_v36  ;;  %v10958_v55 = vld [vmem:[#allocation47_spill] sm:$0xff]  ;;  %v10959_v36 = vld [vmem:[#allocation48_spill] sm:$0xff] }
 0x5d6   :  { %5025 = vmatpush1.bf16.msra.mxu0 %v9808_v43  ;;  %5066 = vmatpush1.bf16.msra.mxu1 %v9810_v57  ;;  %v10960_v43 = vld [vmem:[#allocation49_spill] sm:$0xff]  ;;  %v10961_v57 = vld [vmem:[#allocation50_spill] sm:$0xff] }
 0x5d7   :  { %5026 = vmatprep.subr.bf16.mxu0 %v9816_v34  ;;  %5067 = vmatprep.subr.bf16.mxu1 %v9818_v40  ;;  %v10962_v34 = vld [vmem:[#allocation51_spill] sm:$0xff]  ;;  %v10963_v40 = vld [vmem:[#allocation52_spill] sm:$0xff] }
 0x5da   :  { %5027 = vmatpush1.bf16.msra.mxu0 %v9820_v59  ;;  %5068 = vmatpush1.bf16.msra.mxu1 %v9822_v60  ;;  %v10964_v59 = vld [vmem:[#allocation53_spill] sm:$0xff]  ;;  %v10965_v60 = vld [vmem:[#allocation56_spill] sm:$0xff] }
 0x5db   :  { %5028 = vmatprep.subr.bf16.mxu0 %v9828_v35  ;;  %5069 = vmatprep.subr.bf16.mxu1 %v9830_v0  ;;  %v10966_v35 = vld [vmem:[#allocation54_spill] sm:$0xff]  ;;  %v10967_v0 = vld [vmem:[#allocation55_spill] sm:$0xff] }
 0x5de   :  { %5029 = vmatpush1.bf16.msra.mxu0 %v9832_v42  ;;  %5070 = vmatpush1.bf16.msra.mxu1 %v9834_v25  ;;  %v10968_v42 = vld [vmem:[#allocation57_spill] sm:$0xff]  ;;  %v10969_v25 = vld [vmem:[#allocation60_spill] sm:$0xff] }
 0x5df   :  { %5030 = vmatprep.subr.bf16.mxu0 %v9840_v32  ;;  %5071 = vmatprep.subr.bf16.mxu1 %v9842_v26  ;;  %v10970_v32 = vld [vmem:[#allocation58_spill] sm:$0xff]  ;;  %v10971_v26 = vld [vmem:[#allocation59_spill] sm:$0xff] }
 0x5e2   :  { %5031 = vmatpush1.bf16.msra.mxu0 %v9844_v30  ;;  %5072 = vmatpush1.bf16.msra.mxu1 %v9846_v27  ;;  %v10972_v30 = vld [vmem:[#allocation61_spill] sm:$0xff]  ;;  %v10973_v27 = vld [vmem:[#allocation62_spill] sm:$0xff] }
 0x5e3   :  { %5032 = vmatprep.subr.bf16.mxu0 %v9852_v28  ;;  %5073 = vmatprep.subr.bf16.mxu1 %v9854_v48  ;;  %v10974_v28 = vld [vmem:[#allocation63_spill] sm:$0xff]  ;;  %v10975_v48 = vld [vmem:[#allocation64_spill] sm:$0xff] }
 0x5e6   :  { %5033 = vmatpush1.bf16.msra.mxu0 %v9856_v63  ;;  %5074 = vmatpush1.bf16.msra.mxu1 %v9858_v31  ;;  %v10976_v63 = vld [vmem:[#allocation65_spill] sm:$0xff] }
 0x5e7   :  { %5034 = vmatprep.subr.bf16.mxu0 %v9864_v37  ;;  %5075 = vmatprep.subr.bf16.mxu1 %v9866_v61  ;;  %v10977_v31 = vld [vmem:[#allocation73_spill] sm:$0xff]  ;;  %v10978_v37 = vld [vmem:[#allocation74_spill] sm:$0xff]  ;;  %v10979_v61 = vld [vmem:[#allocation75_spill] sm:$0xff] }
 0x5ea   :  { %5035 = vmatpush1.bf16.msra.mxu0 %v9868_v4  ;;  %5076 = vmatpush1.bf16.msra.mxu1 %v9870_v9  ;;  %v10980_v4 = vld [vmem:[#allocation76_spill] sm:$0xff]  ;;  %v10981_v9 = vld [vmem:[#allocation77_spill] sm:$0xff] }
 0x5eb   :  { %5036 = vmatprep.subr.bf16.mxu0 %v9876_v6  ;;  %5077 = vmatprep.subr.bf16.mxu1 %v9878_v5  ;;  %v3832_v6 = vld [vmem:[#allocation17] sm:$0xf]  ;;  %v10982_v5 = vld [vmem:[#allocation36_spill] sm:$0xff] }
 0x5ec   :  { %v3837_v62 = vrot.slane %v3832_v6, %v10982_v5 }
 0x5ee   :  { %5037 = vmatpush2.bf16.msra.mxu0 %v10950_v38  ;;  %5078 = vmatpush2.bf16.msra.mxu1 %v10951_v56  ;;  %v10983_v38 = vld [vmem:[#allocation37_spill] sm:$0xff] }
 0x5ef   :  { %5038 = vmatprep.subr.bf16.mxu0 %v10952_v44  ;;  %5079 = vmatprep.subr.bf16.mxu1 %v10953_v47  ;;  %v3841_v56 = vrot.slane %v3832_v6, %v10983_v38 }
 0x5f2   :  { %5039 = vmatpush2.bf16.msra.mxu0 %v10954_v50  ;;  %5080 = vmatpush2.bf16.msra.mxu1 %v10955_v51 }
 0x5f3   :  { %5040 = vmatprep.subr.bf16.mxu0 %v10956_v52  ;;  %5081 = vmatprep.subr.bf16.mxu1 %v10957_v53 }
 0x5f6   :  { %5041 = vmatpush2.bf16.msra.mxu0 %v10958_v55  ;;  %5082 = vmatpush2.bf16.msra.mxu1 %v10959_v36 }
 0x5f7   :  { %5042 = vmatprep.subr.bf16.mxu0 %v10960_v43  ;;  %5083 = vmatprep.subr.bf16.mxu1 %v10961_v57 }
 0x5fa   :  { %5043 = vmatpush2.bf16.msra.mxu0 %v10962_v34  ;;  %5084 = vmatpush2.bf16.msra.mxu1 %v10963_v40 }
 0x5fb   :  { %5044 = vmatprep.subr.bf16.mxu0 %v10964_v59  ;;  %5085 = vmatprep.subr.bf16.mxu1 %v10965_v60  ;;  %v3849_v59 = vrot.slane %v3832_v6, %v10787_v21 }
 0x5fe   :  { %5045 = vmatpush2.bf16.msra.mxu0 %v10966_v35  ;;  %5086 = vmatpush2.bf16.msra.mxu1 %v10967_v0  ;;  %v3845_v35 = vrot.slane %v3832_v6, %v10788_v24 }
 0x5ff   :  { %5046 = vmatprep.subr.bf16.mxu0 %v10968_v42  ;;  %5087 = vmatprep.subr.bf16.mxu1 %v10969_v25 }
 0x602   :  { %5047 = vmatpush2.bf16.msra.mxu0 %v10970_v32  ;;  %5088 = vmatpush2.bf16.msra.mxu1 %v10971_v26 }
 0x603   :  { %5048 = vmatprep.subr.bf16.mxu0 %v10972_v30  ;;  %5089 = vmatprep.subr.bf16.mxu1 %v10973_v27  ;;  %v10984_v27 = vld [vmem:[#allocation38_spill] sm:$0xff] }
 0x606   :  { %5049 = vmatpush2.bf16.msra.mxu0 %v10974_v28  ;;  %5090 = vmatpush2.bf16.msra.mxu1 %v10975_v48  ;;  %v10985_v28 = vld [vmem:[#allocation32_spill] sm:$0xff] }
 0x607   :  { %5050 = vmatprep.subr.bf16.mxu0 %v10976_v63  ;;  %5091 = vmatprep.subr.bf16.mxu1 %v10977_v31  ;;  %v254_v48 = vadd.f32 %v10985_v28, %v10984_v27 }
 0x60a   :  { %5051 = vmatpush2.bf16.msra.mxu0 %v10978_v37  ;;  %5092 = vmatpush2.bf16.msra.mxu1 %v10979_v61  ;;  %v10986_v61 = vld [vmem:[#allocation34_spill] sm:$0xff] }
 0x60b   :  { %5326 = vmatprep.subr.bf16.mxu0 %v10980_v4  ;;  %5367 = vmatprep.subr.bf16.mxu1 %v10981_v9  ;;  %v256_v4 = vadd.f32 %v10986_v61, %v10790_v12 }
 0x66d   :  { %v4215_v44 = vpop.f32.mrf.mxu0  ;;  %v4256_v47 = vpop.f32.mrf.mxu1 }
 0x66e   :  { %v4216_v50 = vadd.f32 %v4215_v44, %v3837_v62  ;;  %v4257_v25 = vadd.f32 %v4256_v47, %v3845_v35 }
 0x66f   :  { %v4217_v51 = vpop.f32.mrf.mxu0  ;;  %v4258_v52 = vpop.f32.mrf.mxu1 }
 0x670   :  { %v7411_v53 = vmul.f32 -1.442695, %v4216_v50  ;;  %v4218_v55 = vadd.f32 %v4217_v51, %v3841_v56  ;;  %v4259_v60 = vadd.f32 %v4258_v52, %v3849_v59 }
 0x671   :  { %v4219_v36 = vpop.f32.mrf.mxu0  ;;  %v4260_v43 = vpop.f32.mrf.mxu1 }
 0x672   :  { %8534 = vpow2.f32 %v7411_v53  ;;  %v7412_v57 = vmul.f32 -1.442695, %v4218_v55  ;;  %v7413_v0 = vmul.f32 -1.442695, %v4259_v60  ;;  %v10987_v60 = vld [vmem:[#allocation33_spill] sm:$0xff] }
 0x673   :  { %v4220_v34 = vpop.f32.mrf.mxu0  ;;  %v4261_v40 = vpop.f32.mrf.mxu1  ;;  %v329_v35 = vadd.f32 %v10987_v60, %v9079_v54  ;;  %v10266_v60 = vld [vmem:[#allocation15 + $0x60] ss:$16 sps:$4 sm:$0xff]  }
 0x674   :  { %8536 = vpow2.f32 %v7412_v57 }
 0x675   :  { %8538 = vpow2.f32 %v7413_v0 }
 0x67f   :  { %v8535_v42 = vpop.eup %8534 }
 0x680   :  { %v4267_v32 = vadd.f32 1.0, %v8535_v42  ;;  %v10988_v42 = vld [vmem:[#allocation31_spill] sm:$0xff] }
 0x681   :  { %v8537_v26 = vpop.eup %8536 }
 0x682   :  { %8540 = vrcp.f32 %v4267_v32  ;;  %v4273_v30 = vadd.f32 1.0, %v8537_v26  ;;  %v8539_v37 = vpop.eup %8538 }
 0x683   :  { %8542 = vtanh.f32 %v4257_v25  ;;  %v4280_v52 = vadd.f32 1.0, %v8539_v37  ;;  %v327_v25 = vadd.f32 %v10988_v42, %v9082_v10  ;;  %v10276_v42 = vld [vmem:[#allocation15 + $0x4c] ss:$16 sps:$4 sm:$0xff]  }
 0x684   :  { %8544 = vrcp.f32 %v4273_v30 }
 0x68d   :  { %v4521_v63 = vpop.f32.mrf.mxu0  ;;  %v4562_v31 = vpop.f32.mrf.mxu1 }
 0x68e   :  { %v4569_v9 = vadd.f32 %v4521_v63, %v254_v48  ;;  %v4571_v32 = vadd.f32 %v4562_v31, %v327_v25  ;;  %v10278_v25 = vld [vmem:[#allocation15 + $0x40] ss:$16 sps:$4 sm:$0xff]  }
 0x68f   :  { %v8541_v6 = vpop.eup %8540  ;;  %v4523_v62 = vpop.f32.mrf.mxu0 }
 0x690   :  { %v4564_v56 = vpop.f32.mrf.mxu1  ;;  %v8543_v44 = vpop.eup %8542  ;;  %v7446_v47 = vmul.f32 -1.442695, %v4569_v9  ;;  %v4570_v50 = vadd.f32 %v4523_v62, %v256_v4 }
 0x691   :  { %v8545_v51 = vpop.eup %8544  ;;  %v4525_v53 = vpop.f32.mrf.mxu0  ;;  %v4284_v36 = vmul.f32 %v8543_v44, %v8541_v6  ;;  %v4572_v0 = vadd.f32 %v4564_v56, %v329_v35  ;;  %v10268_v35 = vld [vmem:[#allocation15 + $0x68] ss:$16 sps:$4 sm:$0xff]  }
 0x692   :  { %v4566_v55 = vpop.f32.mrf.mxu1  ;;  %v4283_v43 = vmul.f32 %v8545_v51, %v9987_v2  ;;  %8546 = vpow2.f32 %v7446_v47  ;;  %v7447_v57 = vmul.f32 -1.442695, %v4570_v50 }
 0x693   :  { %v4526_v34 = vpop.f32.mrf.mxu0  ;;  %v7448_v26 = vmul.f32 -1.442695, %v4572_v0  ;;  %v10274_v0 = vld [vmem:[#allocation15 + $0x44] ss:$16 sps:$4 sm:$0xff]  }
 0x694   :  { %v4567_v40 = vpop.f32.mrf.mxu1  ;;  %8548 = vpow2.f32 %v7447_v57  ;;  %v10171_v59 = vadd.f32 %v4284_v36, %v4283_v43  ;;  %v10252_v36 = vld [vmem:[#allocation15 + $0x8c] ss:$16 sps:$4 sm:$0xff]   ;;  %v10254_v43 = vld [vmem:[#allocation15 + $0x80] ss:$16 sps:$4 sm:$0xff]   ;;  %v10256_v57 = vld [vmem:[#allocation15 + $0x88] ss:$16 sps:$4 sm:$0xff]  }
 0x695   :  { %8550 = vrcp.f32 %v4280_v52  ;;  %v10262_v34 = vld [vmem:[#allocation15 + $0x64] ss:$16 sps:$4 sm:$0xff]   ;;  %v10264_v40 = vld [vmem:[#allocation15 + $0x6c] ss:$16 sps:$4 sm:$0xff]  }
 0x696   :  { %8552 = vtanh.f32 %v10171_v59 }
 0x697   :  { %8554 = vtanh.f32 %v4571_v32  ;;  %v10280_v32 = vld [vmem:[#allocation15 + $0x48] ss:$16 sps:$4 sm:$0xff]  }
 0x698   :  { %8556 = vpow2.f32 %v7448_v26  ;;  %v10286_v26 = vld [vmem:[#allocation15 + $0x24] ss:$16 sps:$4 sm:$0xff]  }
 0x69f   :  { %v8547_v2 = vpop.eup %8546 }
 0x6a0   :  { %v4577_v30 = vadd.f32 1.0, %v8547_v2  ;;  %v10288_v2 = vld [vmem:[#allocation15 + $0x2c] ss:$16 sps:$4 sm:$0xff]  }
 0x6a1   :  { %v8549_v28 = vpop.eup %8548 }
 0x6a2   :  { %v8551_v48 = vpop.eup %8550  ;;  %8558 = vrcp.f32 %v4577_v30  ;;  %v4583_v63 = vadd.f32 1.0, %v8549_v28  ;;  %v10290_v30 = vld [vmem:[#allocation15 + $0x20] ss:$16 sps:$4 sm:$0xff]   ;;  %v10292_v28 = vld [vmem:[#allocation15 + $0x28] ss:$16 sps:$4 sm:$0xff]  }
 0x6a3   :  { %v8553_v37 = vpop.eup %8552 }
 0x6a4   :  { %8560 = vrcp.f32 %v4583_v63  ;;  %v4287_v61 = vmul.f32 %v8553_v37, %v8551_v48  ;;  %v8555_v9 = vpop.eup %8554  ;;  %v10298_v48 = vld [vmem:[#allocation15 + $0x4] ss:$16 sps:$4 sm:$0xff]   ;;  %v10300_v63 = vld [vmem:[#allocation15 + $0xc] ss:$16 sps:$4 sm:$0xff]   ;;  %v10302_v37 = vld [vmem:[#allocation15] ss:$16 sps:$4 sm:$0xff]  }
 0x6a5   :  { %v8557_v6 = vpop.eup %8556 }
 0x6a6   :  { %v7777_v4 = vpack.c.bf16 %v4287_v61, %v4287_v61  ;;  %v4590_v44 = vadd.f32 1.0, %v8557_v6  ;;  %v10304_v61 = vld [vmem:[#allocation15 + $0x8] ss:$16 sps:$4 sm:$0xff]   ;;  %v10314_v6 = vld [vmem:[#allocation15 + $0x1e0] ss:$16 sps:$4 sm:$0xff]  }
 0x6a7   :  { %10998 = vst [vmem:[#allocation83_spill] sm:$0xff] %v10314_v6 }
 0x6a8   :  { %5052 = vmatprep.mubr.bf16.mxu0 %v7777_v4  ;;  %5093 = vmatprep.mubr.bf16.mxu1 %v7777_v4  ;;  %8562 = vrcp.f32 %v4590_v44  ;;  %v10310_v4 = vld [vmem:[#allocation15 + $0x1e4] ss:$16 sps:$4 sm:$0xff]   ;;  %v10326_v44 = vld [vmem:[#allocation15 + $0x1c0] ss:$16 sps:$4 sm:$0xff]  }
 0x6a9   :  { %11002 = vst [vmem:[#allocation87_spill] sm:$0xff] %v10326_v44 }
 0x6af   :  { %v8559_v62 = vpop.eup %8558 }
 0x6b0   :  { %v4594_v56 = vmul.f32 %v8559_v62, %v8555_v9  ;;  %v10312_v9 = vld [vmem:[#allocation15 + $0x1ec] ss:$16 sps:$4 sm:$0xff]   ;;  %v10316_v62 = vld [vmem:[#allocation15 + $0x1e8] ss:$16 sps:$4 sm:$0xff]  }
 0x6b1   :  { %v8561_v31 = vpop.eup %8560  ;;  %10999 = vst [vmem:[#allocation84_spill] sm:$0xff] %v10316_v62 }
 0x6b2   :  { %v4593_v47 = vmul.f32 %v8561_v31, %v9995_v11  ;;  %v10989_v11 = vld [vmem:[#allocation78_spill] sm:$0xff] }
 0x6b3   :  { %v10324_v31 = vld [vmem:[#allocation15 + $0x1cc] ss:$16 sps:$4 sm:$0xff]  }
 0x6b4   :  { %v10179_v50 = vadd.f32 %v4594_v56, %v4593_v47  ;;  %v10322_v56 = vld [vmem:[#allocation15 + $0x1c4] ss:$16 sps:$4 sm:$0xff]   ;;  %11001 = vst [vmem:[#allocation86_spill] sm:$0xff] %v10324_v31  ;;  %v10328_v47 = vld [vmem:[#allocation15 + $0x1c8] ss:$16 sps:$4 sm:$0xff]  }
 0x6b5   :  { %v8563_v51 = vpop.eup %8562  ;;  %11000 = vst [vmem:[#allocation85_spill] sm:$0xff] %v10322_v56  ;;  %11003 = vst [vmem:[#allocation28_spill] sm:$0xff] %v10328_v47 }
 0x6b6   :  { %8564 = vtanh.f32 %v10179_v50 }
 0x6c3   :  { %v8565_v52 = vpop.eup %8564 }
 0x6c4   :  { %v4597_v53 = vmul.f32 %v8565_v52, %v8563_v51  ;;  %v10334_v51 = vld [vmem:[#allocation15 + $0x1a4] ss:$16 sps:$4 sm:$0xff]   ;;  %v10336_v52 = vld [vmem:[#allocation15 + $0x1ac] ss:$16 sps:$4 sm:$0xff]  }
 0x6c5   :  { %11004 = vst [vmem:[#allocation30_spill] sm:$0xff] %v10334_v51  ;;  %11005 = vst [vmem:[#allocation29_spill] sm:$0xff] %v10336_v52 }
 0x6c6   :  { %v4601_v55 = vpack.c.bf16 %v4597_v53, %v4597_v53  ;;  %v10338_v53 = vld [vmem:[#allocation15 + $0x1a0] ss:$16 sps:$4 sm:$0xff]  }
 0x6c7   :  { %11006 = vst [vmem:[#allocation27_spill] sm:$0xff] %v10338_v53 }
 0x6c8   :  { %5053 = vmatmul.mubr.bf16.vlgmr.msra.gmra.mxu0 %v4601_v55  ;;  %5094 = vmatmul.mubr.bf16.vlgmr.msra.gmra.mxu1 %v4601_v55 }
 0x6c9   :  { %5327 = vmatpush1.bf16.msra.mxu0 %v9998_v23  ;;  %5368 = vmatpush1.bf16.msra.mxu1 %v10000_v1  ;;  %v10990_v23 = vld [vmem:[#allocation79_spill] sm:$0xff]  ;;  %v10991_v1 = vld [vmem:[#allocation80_spill] sm:$0xff] }
 0x6ca   :  { %5328 = vmatprep.subr.bf16.mxu0 %v10004_v19  ;;  %5369 = vmatprep.subr.bf16.mxu1 %v10006_v15  ;;  %v10992_v19 = vld [vmem:[#allocation81_spill] sm:$0xff]  ;;  %v10993_v15 = vld [vmem:[#allocation23_spill] sm:$0xff] }
 0x6cb   :  { %5358 = vmatprep.mubr.bf16.mxu0 %v10730_v8  ;;  %5399 = vmatprep.mubr.bf16.mxu1 %v10730_v8 }
 0x6cd   :  { %5329 = vmatpush1.bf16.msra.mxu0 %v10012_v58  ;;  %5370 = vmatpush1.bf16.msra.mxu1 %v10014_v7  ;;  %v10994_v58 = vld [vmem:[#allocation26_spill] sm:$0xff]  ;;  %v10995_v7 = vld [vmem:[#allocation24_spill] sm:$0xff] }
 0x6ce   :  { %5330 = vmatprep.subr.bf16.mxu0 %v10018_v3  ;;  %5371 = vmatprep.subr.bf16.mxu1 %v10020_v45  ;;  %v10996_v3 = vld [vmem:[#allocation25_spill] sm:$0xff]  ;;  %v10997_v45 = vld [vmem:[#allocation82_spill] sm:$0xff] }
 0x6d1   :  { %5331 = vmatpush1.bf16.msra.mxu0 %v10026_v46  ;;  %5372 = vmatpush1.bf16.msra.mxu1 %v10028_v39  ;;  %v10214_v46 = vld [vmem:[#allocation15 + $0xe4] ss:$16 sps:$4 sm:$0xff]   ;;  %v10216_v39 = vld [vmem:[#allocation15 + $0xec] ss:$16 sps:$4 sm:$0xff]  }
 0x6d2   :  { %5332 = vmatprep.subr.bf16.mxu0 %v10032_v13  ;;  %5373 = vmatprep.subr.bf16.mxu1 %v10034_v33  ;;  %v10218_v13 = vld [vmem:[#allocation15 + $0xe0] ss:$16 sps:$4 sm:$0xff]   ;;  %v10220_v33 = vld [vmem:[#allocation15 + $0xe8] ss:$16 sps:$4 sm:$0xff]  }
 0x6d5   :  { %5333 = vmatpush1.bf16.msra.mxu0 %v10989_v11  ;;  %5374 = vmatpush1.bf16.msra.mxu1 %v10990_v23  ;;  %v10346_v11 = vld [vmem:[#allocation15 + $0x184] ss:$16 sps:$4 sm:$0xff]   ;;  %v10348_v23 = vld [vmem:[#allocation15 + $0x18c] ss:$16 sps:$4 sm:$0xff]  }
 0x6d6   :  { %5334 = vmatprep.subr.bf16.mxu0 %v10991_v1  ;;  %5375 = vmatprep.subr.bf16.mxu1 %v10992_v19  ;;  %11008 = vst [vmem:[#allocation41_spill] sm:$0xff] %v10346_v11  ;;  %11009 = vst [vmem:[#allocation39_spill] sm:$0xff] %v10348_v23  ;;  %v10350_v1 = vld [vmem:[#allocation15 + $0x180] ss:$16 sps:$4 sm:$0xff]   ;;  %v10352_v19 = vld [vmem:[#allocation15 + $0x188] ss:$16 sps:$4 sm:$0xff]  }
 0x6d7   :  { %11010 = vst [vmem:[#allocation42_spill] sm:$0xff] %v10350_v1  ;;  %11011 = vst [vmem:[#allocation43_spill] sm:$0xff] %v10352_v19 }
 0x6d9   :  { %5335 = vmatpush1.bf16.msra.mxu0 %v10993_v15  ;;  %5376 = vmatpush1.bf16.msra.mxu1 %v10994_v58  ;;  %v10356_v15 = vld [vmem:[#allocation15 + $0x164] ss:$16 sps:$4 sm:$0xff]   ;;  %v10360_v58 = vld [vmem:[#allocation15 + $0x160] ss:$16 sps:$4 sm:$0xff]  }
 0x6da   :  { %5336 = vmatprep.subr.bf16.mxu0 %v10995_v7  ;;  %5377 = vmatprep.subr.bf16.mxu1 %v10996_v3  ;;  %11012 = vst [vmem:[#allocation44_spill] sm:$0xff] %v10356_v15  ;;  %11013 = vst [vmem:[#allocation45_spill] sm:$0xff] %v10360_v58  ;;  %v10362_v7 = vld [vmem:[#allocation15 + $0x168] ss:$16 sps:$4 sm:$0xff]   ;;  %v10364_v3 = vld [vmem:[#allocation15 + $0x16c] ss:$16 sps:$4 sm:$0xff]  }
 0x6db   :  { %11014 = vst [vmem:[#allocation46_spill] sm:$0xff] %v10362_v7  ;;  %11015 = vst [vmem:[#allocation47_spill] sm:$0xff] %v10364_v3 }
 0x6dd   :  { %5337 = vmatpush1.bf16.msra.mxu0 %v10997_v45  ;;  %5378 = vmatpush1.bf16.msra.mxu1 %v10064_v29  ;;  %v10226_v29 = vld [vmem:[#allocation15 + $0xc4] ss:$16 sps:$4 sm:$0xff]  }
 0x6de   :  { %5338 = vmatprep.subr.bf16.mxu0 %v10068_v41  ;;  %5379 = vmatprep.subr.bf16.mxu1 %v10070_v49  ;;  %v10228_v41 = vld [vmem:[#allocation15 + $0xcc] ss:$16 sps:$4 sm:$0xff]   ;;  %v10230_v49 = vld [vmem:[#allocation15 + $0xc0] ss:$16 sps:$4 sm:$0xff]   ;;  %v10367_v45 = vld [vmem:[#allocation15 + $0x144] ss:$16 sps:$4 sm:$0xff]  }
 0x6df   :  { %11016 = vst [vmem:[#allocation48_spill] sm:$0xff] %v10367_v45 }
 0x6e1   :  { %5339 = vmatpush1.bf16.msra.mxu0 %v10074_v14  ;;  %5380 = vmatpush1.bf16.msra.mxu1 %v10076_v18  ;;  %v10232_v14 = vld [vmem:[#allocation15 + $0xc8] ss:$16 sps:$4 sm:$0xff]   ;;  %v10238_v18 = vld [vmem:[#allocation15 + $0xa4] ss:$16 sps:$4 sm:$0xff]  }
 0x6e2   :  { %5340 = vmatprep.subr.bf16.mxu0 %v10080_v17  ;;  %5381 = vmatprep.subr.bf16.mxu1 %v10082_v16  ;;  %v10240_v17 = vld [vmem:[#allocation15 + $0xac] ss:$16 sps:$4 sm:$0xff]   ;;  %v10242_v16 = vld [vmem:[#allocation15 + $0xa0] ss:$16 sps:$4 sm:$0xff]  }
 0x6e5   :  { %5341 = vmatpush1.bf16.msra.mxu0 %v10086_v22  ;;  %5382 = vmatpush1.bf16.msra.mxu1 %v10088_v20  ;;  %v10244_v22 = vld [vmem:[#allocation15 + $0xa8] ss:$16 sps:$4 sm:$0xff]   ;;  %v10250_v20 = vld [vmem:[#allocation15 + $0x84] ss:$16 sps:$4 sm:$0xff]  }
 0x6e6   :  { %5859 = vmatprep.subr.bf16.mxu0 %v10214_v46  ;;  %5900 = vmatprep.subr.bf16.mxu1 %v10216_v39 }
 0x6e8   :  { %5359 = vmatmul.mubr.bf16.vlgmr.msra.gmra.mxu0 %v4601_v55  ;;  %5400 = vmatmul.mubr.bf16.vlgmr.msra.gmra.mxu1 %v4601_v55  ;;  %v10340_v55 = vld [vmem:[#allocation15 + $0x1a8] ss:$16 sps:$4 sm:$0xff]  }
 0x6e9   :  { %5860 = vmatpush1.bf16.msra.mxu0 %v10218_v13  ;;  %5901 = vmatpush1.bf16.msra.mxu1 %v10220_v33  ;;  %11007 = vst [vmem:[#allocation40_spill] sm:$0xff] %v10340_v55 }
 0x6ea   :  { %5861 = vmatprep.subr.bf16.mxu0 %v10226_v29  ;;  %5902 = vmatprep.subr.bf16.mxu1 %v10228_v41 }
 0x6ed   :  { %5862 = vmatpush1.bf16.msra.mxu0 %v10230_v49  ;;  %5903 = vmatpush1.bf16.msra.mxu1 %v10232_v14 }
 0x6ee   :  { %5863 = vmatprep.subr.bf16.mxu0 %v10238_v18  ;;  %5904 = vmatprep.subr.bf16.mxu1 %v10240_v17 }
 0x6f1   :  { %5864 = vmatpush1.bf16.msra.mxu0 %v10242_v16  ;;  %5905 = vmatpush1.bf16.msra.mxu1 %v10244_v22 }
 0x6f2   :  { %5865 = vmatprep.subr.bf16.mxu0 %v10250_v20  ;;  %5906 = vmatprep.subr.bf16.mxu1 %v10252_v36 }
 0x6f5   :  { %5866 = vmatpush1.bf16.msra.mxu0 %v10254_v43  ;;  %5907 = vmatpush1.bf16.msra.mxu1 %v10256_v57 }
 0x6f6   :  { %5867 = vmatprep.subr.bf16.mxu0 %v10262_v34  ;;  %5908 = vmatprep.subr.bf16.mxu1 %v10264_v40 }
 0x6f9   :  { %5868 = vmatpush1.bf16.msra.mxu0 %v10266_v60  ;;  %5909 = vmatpush1.bf16.msra.mxu1 %v10268_v35 }
 0x6fa   :  { %5869 = vmatprep.subr.bf16.mxu0 %v10274_v0  ;;  %5910 = vmatprep.subr.bf16.mxu1 %v10276_v42 }
 0x6fd   :  { %5870 = vmatpush1.bf16.msra.mxu0 %v10278_v25  ;;  %5911 = vmatpush1.bf16.msra.mxu1 %v10280_v32 }
 0x6fe   :  { %5871 = vmatprep.subr.bf16.mxu0 %v10286_v26  ;;  %5912 = vmatprep.subr.bf16.mxu1 %v10288_v2 }
 0x701   :  { %5872 = vmatpush1.bf16.msra.mxu0 %v10290_v30  ;;  %5913 = vmatpush1.bf16.msra.mxu1 %v10292_v28 }
 0x702   :  { %5873 = vmatprep.subr.bf16.mxu0 %v10298_v48  ;;  %5914 = vmatprep.subr.bf16.mxu1 %v10300_v63 }
 0x705   :  { %5874 = vmatpush1.bf16.msra.mxu0 %v10302_v37  ;;  %5915 = vmatpush1.bf16.msra.mxu1 %v10304_v61 }
 0x706   :  { %5875 = vmatprep.subr.bf16.mxu0 %v10310_v4  ;;  %5916 = vmatprep.subr.bf16.mxu1 %v10312_v9 }
 0x709   :  { %5876 = vmatpush2.bf16.msra.mxu0 %v10314_v6  ;;  %5917 = vmatpush2.bf16.msra.mxu1 %v10316_v62 }
 0x70a   :  { %5877 = vmatprep.subr.bf16.mxu0 %v10322_v56  ;;  %5918 = vmatprep.subr.bf16.mxu1 %v10324_v31 }
 0x70d   :  { %5878 = vmatpush2.bf16.msra.mxu0 %v10326_v44  ;;  %5919 = vmatpush2.bf16.msra.mxu1 %v10328_v47 }
 0x70e   :  { %5879 = vmatprep.subr.bf16.mxu0 %v10334_v51  ;;  %5920 = vmatprep.subr.bf16.mxu1 %v10336_v52 }
 0x711   :  { %5880 = vmatpush2.bf16.msra.mxu0 %v10338_v53  ;;  %5921 = vmatpush2.bf16.msra.mxu1 %v10340_v55  ;;  %v10369_v55 = vld [vmem:[#allocation15 + $0x14c] ss:$16 sps:$4 sm:$0xff]  }
 0x712   :  { %5881 = vmatprep.subr.bf16.mxu0 %v10346_v11  ;;  %5922 = vmatprep.subr.bf16.mxu1 %v10348_v23  ;;  %11017 = vst [vmem:[#allocation49_spill] sm:$0xff] %v10369_v55  ;;  %v10380_v23 = vld [vmem:[#allocation15 + $0x124] ss:$16 sps:$4 sm:$0xff]  }
 0x713   :  { %11020 = vst [vmem:[#allocation52_spill] sm:$0xff] %v10380_v23 }
 0x715   :  { %5882 = vmatpush2.bf16.msra.mxu0 %v10350_v1  ;;  %5923 = vmatpush2.bf16.msra.mxu1 %v10352_v19  ;;  %v10374_v1 = vld [vmem:[#allocation15 + $0x140] ss:$16 sps:$4 sm:$0xff]   ;;  %v10376_v19 = vld [vmem:[#allocation15 + $0x148] ss:$16 sps:$4 sm:$0xff]  }
 0x716   :  { %5883 = vmatprep.subr.bf16.mxu0 %v10356_v15  ;;  %5924 = vmatprep.subr.bf16.mxu1 %v10364_v3  ;;  %11018 = vst [vmem:[#allocation50_spill] sm:$0xff] %v10374_v1  ;;  %11019 = vst [vmem:[#allocation51_spill] sm:$0xff] %v10376_v19  ;;  %v10382_v15 = vld [vmem:[#allocation15 + $0x12c] ss:$16 sps:$4 sm:$0xff]   ;;  %v10386_v3 = vld [vmem:[#allocation15 + $0x120] ss:$16 sps:$4 sm:$0xff]  }
 0x717   :  { %11021 = vst [vmem:[#allocation53_spill] sm:$0xff] %v10382_v15  ;;  %11022 = vst [vmem:[#allocation56_spill] sm:$0xff] %v10386_v3 }
 0x719   :  { %5884 = vmatpush2.bf16.msra.mxu0 %v10360_v58  ;;  %5925 = vmatpush2.bf16.msra.mxu1 %v10362_v7  ;;  %v10388_v58 = vld [vmem:[#allocation15 + $0x128] ss:$16 sps:$4 sm:$0xff]   ;;  %v10392_v7 = vld [vmem:[#allocation15 + $0x104] ss:$16 sps:$4 sm:$0xff]  }
 0x71a   :  { %5885 = vmatprep.subr.bf16.mxu0 %v10367_v45  ;;  %5926 = vmatprep.subr.bf16.mxu1 %v10369_v55  ;;  %11023 = vst [vmem:[#allocation54_spill] sm:$0xff] %v10388_v58  ;;  %11024 = vst [vmem:[#allocation55_spill] sm:$0xff] %v10392_v7  ;;  %v10394_v45 = vld [vmem:[#allocation15 + $0x10c] ss:$16 sps:$4 sm:$0xff]   ;;  %v10398_v55 = vld [vmem:[#allocation15 + $0x100] ss:$16 sps:$4 sm:$0xff]  }
 0x71b   :  { %11025 = vst [vmem:[#allocation57_spill] sm:$0xff] %v10394_v45  ;;  %11026 = vst [vmem:[#allocation60_spill] sm:$0xff] %v10398_v55 }
 0x71d   :  { %5886 = vmatpush2.bf16.msra.mxu0 %v10374_v1  ;;  %5927 = vmatpush2.bf16.msra.mxu1 %v10376_v19  ;;  %v10400_v1 = vld [vmem:[#allocation15 + $0x108] ss:$16 sps:$4 sm:$0xff]   ;;  %v8344_v19 = vld [vmem:[#allocation14 + $0xe4] ss:$16 sps:$4 sm:$0xff]  }
 0x71e   :  { %5887 = vmatprep.subr.bf16.mxu0 %v10380_v23  ;;  %5928 = vmatprep.subr.bf16.mxu1 %v10382_v15  ;;  %11027 = vst [vmem:[#allocation58_spill] sm:$0xff] %v10400_v1  ;;  %v8347_v23 = vld [vmem:[#allocation14 + $0xec] ss:$16 sps:$4 sm:$0xff]   ;;  %v4671_v15 = vld [vmem:[#allocation17] sm:$0xf] }
 0x721   :  { %5888 = vmatpush2.bf16.msra.mxu0 %v10386_v3  ;;  %5929 = vmatpush2.bf16.msra.mxu1 %v10388_v58  ;;  %v4676_v3 = vrot.slane %v4671_v15, %v10982_v5  ;;  %v4680_v58 = vrot.slane %v4671_v15, %v10983_v38  ;;  %v4684_v5 = vrot.slane %v4671_v15, %v10788_v24 }
 0x722   :  { %5889 = vmatprep.subr.bf16.mxu0 %v10392_v7  ;;  %5930 = vmatprep.subr.bf16.mxu1 %v10394_v45 }
 0x725   :  { %5890 = vmatpush2.bf16.msra.mxu0 %v10398_v55  ;;  %5931 = vmatpush2.bf16.msra.mxu1 %v10400_v1 }
 0x726   :  { %6165 = vmatprep.subr.bf16.mxu0 %v8344_v19  ;;  %6206 = vmatprep.subr.bf16.mxu1 %v8347_v23  ;;  %v4688_v23 = vrot.slane %v4671_v15, %v10787_v21 }
 0x788   :  { %v5054_v11 = vpop.f32.mrf.mxu0  ;;  %v5095_v53 = vpop.f32.mrf.mxu1 }
 0x789   :  { %v5055_v52 = vadd.f32 %v5054_v11, %v4676_v3  ;;  %v5096_v6 = vadd.f32 %v5095_v53, %v4684_v5 }
 0x78a   :  { %v5056_v51 = vpop.f32.mrf.mxu0  ;;  %v5097_v7 = vpop.f32.mrf.mxu1 }
 0x78b   :  { %v7515_v47 = vmul.f32 -1.442695, %v5055_v52  ;;  %v5057_v45 = vadd.f32 %v5056_v51, %v4680_v58  ;;  %v5098_v19 = vadd.f32 %v5097_v7, %v4688_v23 }
 0x78c   :  { %v5058_v44 = vpop.f32.mrf.mxu0  ;;  %v5099_v31 = vpop.f32.mrf.mxu1 }
 0x78d   :  { %8566 = vpow2.f32 %v7515_v47  ;;  %v7516_v55 = vmul.f32 -1.442695, %v5057_v45  ;;  %v7517_v38 = vmul.f32 -1.442695, %v5098_v19  ;;  %v11028_v31 = vld [vmem:[#allocation66_spill] sm:$0xff] }
 0x78e   :  { %v5059_v56 = vpop.f32.mrf.mxu0  ;;  %v5100_v1 = vpop.f32.mrf.mxu1 }
 0x78f   :  { %8568 = vpow2.f32 %v7516_v55  ;;  %v260_v56 = vadd.f32 %v11028_v31, %v10984_v27  ;;  %v11029_v55 = vld [vmem:[#allocation68_spill] sm:$0xff] }
 0x790   :  { %8570 = vpow2.f32 %v7517_v38  ;;  %v262_v1 = vadd.f32 %v11029_v55, %v10790_v12 }
 0x79a   :  { %v8567_v62 = vpop.eup %8566 }
 0x79b   :  { %v5106_v11 = vadd.f32 1.0, %v8567_v62 }
 0x79c   :  { %v8569_v3 = vpop.eup %8568 }
 0x79d   :  { %8572 = vrcp.f32 %v5106_v11  ;;  %v5112_v51 = vadd.f32 1.0, %v8569_v3  ;;  %v8571_v52 = vpop.eup %8570 }
 0x79e   :  { %8574 = vtanh.f32 %v5096_v6  ;;  %v5119_v23 = vadd.f32 1.0, %v8571_v52  ;;  %v11031_v52 = vld [vmem:[#allocation35_spill] sm:$0xff] }
 0x79f   :  { %8576 = vrcp.f32 %v5112_v51 }
 0x7a8   :  { %v5360_v44 = vpop.f32.mrf.mxu0  ;;  %v5401_v47 = vpop.f32.mrf.mxu1 }
 0x7a9   :  { %v5408_v15 = vadd.f32 %v5360_v44, %v260_v56  ;;  %v11030_v56 = vld [vmem:[#allocation67_spill] sm:$0xff] }
 0x7aa   :  { %v8573_v58 = vpop.eup %8572  ;;  %v5362_v7 = vpop.f32.mrf.mxu0  ;;  %v335_v44 = vadd.f32 %v11030_v56, %v9079_v54 }
 0x7ab   :  { %v5403_v5 = vpop.f32.mrf.mxu1  ;;  %v8575_v62 = vpop.eup %8574  ;;  %v7550_v53 = vmul.f32 -1.442695, %v5408_v15  ;;  %v5409_v38 = vadd.f32 %v5362_v7, %v262_v1  ;;  %v333_v15 = vadd.f32 %v11031_v52, %v9082_v10 }
 0x7ac   :  { %v8577_v45 = vpop.eup %8576  ;;  %v5364_v6 = vpop.f32.mrf.mxu0  ;;  %v5123_v11 = vmul.f32 %v8575_v62, %v8573_v58  ;;  %v5411_v1 = vadd.f32 %v5403_v5, %v335_v44 }
 0x7ad   :  { %v5405_v19 = vpop.f32.mrf.mxu1  ;;  %v5122_v3 = vmul.f32 %v8577_v45, %v10171_v59  ;;  %8578 = vpow2.f32 %v7550_v53  ;;  %v7551_v51 = vmul.f32 -1.442695, %v5409_v38  ;;  %v5410_v58 = vadd.f32 %v5401_v47, %v333_v15  ;;  %v8342_v15 = vld [vmem:[#allocation14 + $0xe0] ss:$16 sps:$4 sm:$0xff]  }
 0x7ae   :  { %v5365_v31 = vpop.f32.mrf.mxu0  ;;  %v7552_v7 = vmul.f32 -1.442695, %v5411_v1 }
 0x7af   :  { %v5406_v27 = vpop.f32.mrf.mxu1  ;;  %8580 = vpow2.f32 %v7551_v51  ;;  %v10415_v55 = vadd.f32 %v5123_v11, %v5122_v3 }
 0x7b0   :  { %8582 = vrcp.f32 %v5119_v23 }
 0x7b1   :  { %8584 = vtanh.f32 %v10415_v55 }
 0x7b2   :  { %8586 = vtanh.f32 %v5410_v58  ;;  %v8345_v58 = vld [vmem:[#allocation14 + $0xe8] ss:$16 sps:$4 sm:$0xff]  }
 0x7b3   :  { %8588 = vpow2.f32 %v7552_v7 }
 0x7ba   :  { %v8579_v59 = vpop.eup %8578 }
 0x7bb   :  { %v5416_v62 = vadd.f32 1.0, %v8579_v59  ;;  %v8350_v59 = vld [vmem:[#allocation14 + $0xc4] ss:$16 sps:$4 sm:$0xff]  }
 0x7bc   :  { %v8581_v53 = vpop.eup %8580 }
 0x7bd   :  { %v8583_v27 = vpop.eup %8582  ;;  %8590 = vrcp.f32 %v5416_v62  ;;  %v5422_v38 = vadd.f32 1.0, %v8581_v53  ;;  %v8353_v62 = vld [vmem:[#allocation14 + $0xcc] ss:$16 sps:$4 sm:$0xff]   ;;  %v8351_v53 = vld [vmem:[#allocation14 + $0xc8] ss:$16 sps:$4 sm:$0xff]  }
 0x7be   :  { %v8585_v45 = vpop.eup %8584 }
 0x7bf   :  { %8592 = vrcp.f32 %v5422_v38  ;;  %v5126_v23 = vmul.f32 %v8585_v45, %v8583_v27  ;;  %v8587_v5 = vpop.eup %8586  ;;  %v8356_v27 = vld [vmem:[#allocation14 + $0xa4] ss:$16 sps:$4 sm:$0xff]   ;;  %v8359_v38 = vld [vmem:[#allocation14 + $0xac] ss:$16 sps:$4 sm:$0xff]   ;;  %v8354_v45 = vld [vmem:[#allocation14 + $0xa0] ss:$16 sps:$4 sm:$0xff]  }
 0x7c0   :  { %v8589_v19 = vpop.eup %8588 }
 0x7c1   :  { %v7779_v6 = vpack.c.bf16 %v5126_v23, %v5126_v23  ;;  %v5429_v51 = vadd.f32 1.0, %v8589_v19  ;;  %v8357_v23 = vld [vmem:[#allocation14 + $0xa8] ss:$16 sps:$4 sm:$0xff]   ;;  %v8360_v19 = vld [vmem:[#allocation14 + $0x80] ss:$16 sps:$4 sm:$0xff]  }
 0x7c3   :  { %5891 = vmatprep.mubr.bf16.mxu0 %v7779_v6  ;;  %5932 = vmatprep.mubr.bf16.mxu1 %v7779_v6  ;;  %8594 = vrcp.f32 %v5429_v51  ;;  %v8362_v6 = vld [vmem:[#allocation14 + $0x84] ss:$16 sps:$4 sm:$0xff]   ;;  %v8366_v51 = vld [vmem:[#allocation14 + $0x60] ss:$16 sps:$4 sm:$0xff]  }
 0x7ca   :  { %v8591_v11 = vpop.eup %8590 }
 0x7cb   :  { %v5433_v3 = vmul.f32 %v8591_v11, %v8587_v5  ;;  %v8365_v5 = vld [vmem:[#allocation14 + $0x8c] ss:$16 sps:$4 sm:$0xff]   ;;  %v8363_v11 = vld [vmem:[#allocation14 + $0x88] ss:$16 sps:$4 sm:$0xff]  }
 0x7cc   :  { %v8593_v47 = vpop.eup %8592 }
 0x7cd   :  { %v5432_v31 = vmul.f32 %v8593_v47, %v10179_v50  ;;  %v8348_v50 = vld [vmem:[#allocation14 + $0xc0] ss:$16 sps:$4 sm:$0xff]   ;;  %v8371_v47 = vld [vmem:[#allocation14 + $0x6c] ss:$16 sps:$4 sm:$0xff]  }
 0x7cf   :  { %v10423_v56 = vadd.f32 %v5433_v3, %v5432_v31  ;;  %v8368_v3 = vld [vmem:[#allocation14 + $0x64] ss:$16 sps:$4 sm:$0xff]  }
 0x7d0   :  { %v8595_v44 = vpop.eup %8594  ;;  %v8374_v31 = vld [vmem:[#allocation14 + $0x44] ss:$16 sps:$4 sm:$0xff]  }
 0x7d1   :  { %8596 = vtanh.f32 %v10423_v56 }
 0x7de   :  { %v8597_v1 = vpop.eup %8596 }
 0x7df   :  { %v5436_v52 = vmul.f32 %v8597_v1, %v8595_v44  ;;  %v8377_v44 = vld [vmem:[#allocation14 + $0x4c] ss:$16 sps:$4 sm:$0xff]   ;;  %v8372_v1 = vld [vmem:[#allocation14 + $0x40] ss:$16 sps:$4 sm:$0xff]  }
 0x7e1   :  { %v10426_v7 = vpack.c.bf16 %v5436_v52, %v5436_v52  ;;  %v8375_v52 = vld [vmem:[#allocation14 + $0x48] ss:$16 sps:$4 sm:$0xff]  }
 0x7e3   :  { %5892 = vmatmul.mubr.bf16.vlgmr.msra.gmra.mxu0 %v10426_v7  ;;  %5933 = vmatmul.mubr.bf16.vlgmr.msra.gmra.mxu1 %v10426_v7 }
 0x7e4   :  { %6166 = vmatpush1.bf16.msra.mxu0 %v8342_v15  ;;  %6207 = vmatpush1.bf16.msra.mxu1 %v8345_v58  ;;  %v8380_v15 = vld [vmem:[#allocation14 + $0x24] ss:$16 sps:$4 sm:$0xff]   ;;  %v8383_v58 = vld [vmem:[#allocation14 + $0x2c] ss:$16 sps:$4 sm:$0xff]  }
 0x7e5   :  { %6167 = vmatprep.subr.bf16.mxu0 %v8350_v59  ;;  %6208 = vmatprep.subr.bf16.mxu1 %v8353_v62  ;;  %v8378_v59 = vld [vmem:[#allocation14 + $0x20] ss:$16 sps:$4 sm:$0xff]   ;;  %v8381_v62 = vld [vmem:[#allocation14 + $0x28] ss:$16 sps:$4 sm:$0xff]  }
 0x7e6   :  { %6197 = vmatprep.mubr.bf16.mxu0 %v10730_v8  ;;  %6238 = vmatprep.mubr.bf16.mxu1 %v10730_v8  ;;  %v8369_v8 = vld [vmem:[#allocation14 + $0x68] ss:$16 sps:$4 sm:$0xff]  }
 0x7e8   :  { %6168 = vmatpush1.bf16.msra.mxu0 %v8348_v50  ;;  %6209 = vmatpush1.bf16.msra.mxu1 %v8351_v53  ;;  %v8386_v50 = vld [vmem:[#allocation14 + $0x4] ss:$16 sps:$4 sm:$0xff]   ;;  %v8389_v53 = vld [vmem:[#allocation14 + $0xc] ss:$16 sps:$4 sm:$0xff]  }
 0x7e9   :  { %6169 = vmatprep.subr.bf16.mxu0 %v8356_v27  ;;  %6210 = vmatprep.subr.bf16.mxu1 %v8359_v38  ;;  %v8384_v27 = vld [vmem:[#allocation14] ss:$16 sps:$4 sm:$0xff]   ;;  %v8387_v38 = vld [vmem:[#allocation14 + $0x8] ss:$16 sps:$4 sm:$0xff]  }
 0x7ec   :  { %6170 = vmatpush1.bf16.msra.mxu0 %v8354_v45  ;;  %6211 = vmatpush1.bf16.msra.mxu1 %v8357_v23 }
 0x7ed   :  { %6171 = vmatprep.subr.bf16.mxu0 %v8362_v6  ;;  %6212 = vmatprep.subr.bf16.mxu1 %v8365_v5 }
 0x7f0   :  { %6172 = vmatpush1.bf16.msra.mxu0 %v8360_v19  ;;  %6213 = vmatpush1.bf16.msra.mxu1 %v8363_v11 }
 0x7f1   :  { %6173 = vmatprep.subr.bf16.mxu0 %v8368_v3  ;;  %6214 = vmatprep.subr.bf16.mxu1 %v8371_v47 }
 0x7f4   :  { %6174 = vmatpush1.bf16.msra.mxu0 %v8366_v51  ;;  %6215 = vmatpush1.bf16.msra.mxu1 %v8369_v8 }
 0x7f5   :  { %6175 = vmatprep.subr.bf16.mxu0 %v8374_v31  ;;  %6216 = vmatprep.subr.bf16.mxu1 %v8377_v44 }
 0x7f8   :  { %6176 = vmatpush1.bf16.msra.mxu0 %v8372_v1  ;;  %6217 = vmatpush1.bf16.msra.mxu1 %v8375_v52 }
 0x7f9   :  { %6177 = vmatprep.subr.bf16.mxu0 %v8380_v15  ;;  %6218 = vmatprep.subr.bf16.mxu1 %v8383_v58 }
 0x7fc   :  { %6178 = vmatpush1.bf16.msra.mxu0 %v8378_v59  ;;  %6219 = vmatpush1.bf16.msra.mxu1 %v8381_v62 }
 0x7fd   :  { %6179 = vmatprep.subr.bf16.mxu0 %v8386_v50  ;;  %6220 = vmatprep.subr.bf16.mxu1 %v8389_v53 }
 0x800   :  { %6180 = vmatpush1.bf16.msra.mxu0 %v8384_v27  ;;  %6221 = vmatpush1.bf16.msra.mxu1 %v8387_v38  ;;  %v11064_v38 = vld [vmem:[#allocation38_spill] sm:$0xff] }
 0x801   :  { %6698 = vmatprep.subr.bf16.mxu0 %v10214_v46  ;;  %6739 = vmatprep.subr.bf16.mxu1 %v10216_v39  ;;  %v11032_v46 = vld [vmem:[#allocation83_spill] sm:$0xff]  ;;  %v11033_v39 = vld [vmem:[#allocation84_spill] sm:$0xff] }
 0x803   :  { %6198 = vmatmul.mubr.bf16.vlgmr.msra.gmra.mxu0 %v10426_v7  ;;  %6239 = vmatmul.mubr.bf16.vlgmr.msra.gmra.mxu1 %v10426_v7 }
 0x804   :  { %6699 = vmatpush1.bf16.msra.mxu0 %v10218_v13  ;;  %6740 = vmatpush1.bf16.msra.mxu1 %v10220_v33  ;;  %v11034_v13 = vld [vmem:[#allocation85_spill] sm:$0xff]  ;;  %v11035_v33 = vld [vmem:[#allocation86_spill] sm:$0xff] }
 0x805   :  { %6700 = vmatprep.subr.bf16.mxu0 %v10226_v29  ;;  %6741 = vmatprep.subr.bf16.mxu1 %v10228_v41  ;;  %v11036_v29 = vld [vmem:[#allocation87_spill] sm:$0xff]  ;;  %v11037_v41 = vld [vmem:[#allocation28_spill] sm:$0xff] }
 0x808   :  { %6701 = vmatpush1.bf16.msra.mxu0 %v10230_v49  ;;  %6742 = vmatpush1.bf16.msra.mxu1 %v10232_v14  ;;  %v11038_v49 = vld [vmem:[#allocation30_spill] sm:$0xff]  ;;  %v11039_v14 = vld [vmem:[#allocation29_spill] sm:$0xff] }
 0x809   :  { %6702 = vmatprep.subr.bf16.mxu0 %v10238_v18  ;;  %6743 = vmatprep.subr.bf16.mxu1 %v10240_v17  ;;  %v11040_v18 = vld [vmem:[#allocation27_spill] sm:$0xff]  ;;  %v11041_v17 = vld [vmem:[#allocation40_spill] sm:$0xff] }
 0x80c   :  { %6703 = vmatpush1.bf16.msra.mxu0 %v10242_v16  ;;  %6744 = vmatpush1.bf16.msra.mxu1 %v10244_v22  ;;  %v11042_v16 = vld [vmem:[#allocation41_spill] sm:$0xff]  ;;  %v11043_v22 = vld [vmem:[#allocation39_spill] sm:$0xff] }
 0x80d   :  { %6704 = vmatprep.subr.bf16.mxu0 %v10250_v20  ;;  %6745 = vmatprep.subr.bf16.mxu1 %v10252_v36  ;;  %v11044_v20 = vld [vmem:[#allocation42_spill] sm:$0xff]  ;;  %v11045_v36 = vld [vmem:[#allocation43_spill] sm:$0xff] }
 0x810   :  { %6705 = vmatpush1.bf16.msra.mxu0 %v10254_v43  ;;  %6746 = vmatpush1.bf16.msra.mxu1 %v10256_v57  ;;  %v11046_v43 = vld [vmem:[#allocation44_spill] sm:$0xff]  ;;  %v11047_v57 = vld [vmem:[#allocation47_spill] sm:$0xff] }
 0x811   :  { %6706 = vmatprep.subr.bf16.mxu0 %v10262_v34  ;;  %6747 = vmatprep.subr.bf16.mxu1 %v10264_v40  ;;  %v11048_v34 = vld [vmem:[#allocation45_spill] sm:$0xff]  ;;  %v11049_v40 = vld [vmem:[#allocation46_spill] sm:$0xff] }
 0x814   :  { %6707 = vmatpush1.bf16.msra.mxu0 %v10266_v60  ;;  %6748 = vmatpush1.bf16.msra.mxu1 %v10268_v35  ;;  %v11050_v60 = vld [vmem:[#allocation48_spill] sm:$0xff]  ;;  %v11051_v35 = vld [vmem:[#allocation49_spill] sm:$0xff] }
 0x815   :  { %6708 = vmatprep.subr.bf16.mxu0 %v10274_v0  ;;  %6749 = vmatprep.subr.bf16.mxu1 %v10276_v42  ;;  %v11052_v0 = vld [vmem:[#allocation50_spill] sm:$0xff]  ;;  %v11053_v42 = vld [vmem:[#allocation51_spill] sm:$0xff] }
 0x818   :  { %6709 = vmatpush1.bf16.msra.mxu0 %v10278_v25  ;;  %6750 = vmatpush1.bf16.msra.mxu1 %v10280_v32  ;;  %v11054_v25 = vld [vmem:[#allocation52_spill] sm:$0xff]  ;;  %v11055_v32 = vld [vmem:[#allocation53_spill] sm:$0xff] }
 0x819   :  { %6710 = vmatprep.subr.bf16.mxu0 %v10286_v26  ;;  %6751 = vmatprep.subr.bf16.mxu1 %v10288_v2  ;;  %v11056_v26 = vld [vmem:[#allocation56_spill] sm:$0xff]  ;;  %v11057_v2 = vld [vmem:[#allocation54_spill] sm:$0xff] }
 0x81c   :  { %6711 = vmatpush1.bf16.msra.mxu0 %v10290_v30  ;;  %6752 = vmatpush1.bf16.msra.mxu1 %v10292_v28  ;;  %v11058_v30 = vld [vmem:[#allocation55_spill] sm:$0xff]  ;;  %v11059_v28 = vld [vmem:[#allocation57_spill] sm:$0xff] }
 0x81d   :  { %6712 = vmatprep.subr.bf16.mxu0 %v10298_v48  ;;  %6753 = vmatprep.subr.bf16.mxu1 %v10300_v63  ;;  %v11060_v48 = vld [vmem:[#allocation60_spill] sm:$0xff]  ;;  %v11061_v63 = vld [vmem:[#allocation58_spill] sm:$0xff] }
 0x820   :  { %6713 = vmatpush1.bf16.msra.mxu0 %v10302_v37  ;;  %6754 = vmatpush1.bf16.msra.mxu1 %v10304_v61  ;;  %v5510_v37 = vld [vmem:[#allocation17] sm:$0xf]  ;;  %v11062_v61 = vld [vmem:[#allocation36_spill] sm:$0xff] }
 0x821   :  { %6714 = vmatprep.subr.bf16.mxu0 %v10310_v4  ;;  %6755 = vmatprep.subr.bf16.mxu1 %v10312_v9  ;;  %v5515_v4 = vrot.slane %v5510_v37, %v11062_v61  ;;  %v11063_v9 = vld [vmem:[#allocation37_spill] sm:$0xff]  ;;  %v5527_v1 = vrot.slane %v5510_v37, %v10787_v21  ;;  %v5523_v15 = vrot.slane %v5510_v37, %v10788_v24 }
 0x822   :  { %v5519_v7 = vrot.slane %v5510_v37, %v11063_v9 }
 0x824   :  { %6715 = vmatpush2.bf16.msra.mxu0 %v11032_v46  ;;  %6756 = vmatpush2.bf16.msra.mxu1 %v11033_v39  ;;  %v11065_v46 = vld [vmem:[#allocation70_spill] sm:$0xff] }
 0x825   :  { %6716 = vmatprep.subr.bf16.mxu0 %v11034_v13  ;;  %6757 = vmatprep.subr.bf16.mxu1 %v11035_v33  ;;  %v264_v39 = vadd.f32 %v11065_v46, %v11064_v38 }
 0x828   :  { %6717 = vmatpush2.bf16.msra.mxu0 %v11036_v29  ;;  %6758 = vmatpush2.bf16.msra.mxu1 %v11037_v41  ;;  %v11066_v41 = vld [vmem:[#allocation72_spill] sm:$0xff] }
 0x829   :  { %6718 = vmatprep.subr.bf16.mxu0 %v11038_v49  ;;  %6759 = vmatprep.subr.bf16.mxu1 %v11039_v14  ;;  %v266_v49 = vadd.f32 %v11066_v41, %v10790_v12 }
 0x82c   :  { %6719 = vmatpush2.bf16.msra.mxu0 %v11040_v18  ;;  %6760 = vmatpush2.bf16.msra.mxu1 %v11041_v17 }
 0x82d   :  { %6720 = vmatprep.subr.bf16.mxu0 %v11042_v16  ;;  %6761 = vmatprep.subr.bf16.mxu1 %v11043_v22 }
 0x830   :  { %6721 = vmatpush2.bf16.msra.mxu0 %v11044_v20  ;;  %6762 = vmatpush2.bf16.msra.mxu1 %v11045_v36 }
 0x831   :  { %6722 = vmatprep.subr.bf16.mxu0 %v11046_v43  ;;  %6763 = vmatprep.subr.bf16.mxu1 %v11047_v57 }
 0x834   :  { %6723 = vmatpush2.bf16.msra.mxu0 %v11048_v34  ;;  %6764 = vmatpush2.bf16.msra.mxu1 %v11049_v40 }
 0x835   :  { %6724 = vmatprep.subr.bf16.mxu0 %v11050_v60  ;;  %6765 = vmatprep.subr.bf16.mxu1 %v11051_v35 }
 0x838   :  { %6725 = vmatpush2.bf16.msra.mxu0 %v11052_v0  ;;  %6766 = vmatpush2.bf16.msra.mxu1 %v11053_v42 }
 0x839   :  { %6726 = vmatprep.subr.bf16.mxu0 %v11054_v25  ;;  %6767 = vmatprep.subr.bf16.mxu1 %v11055_v32  ;;  %v11067_v32 = vld [vmem:[#allocation71_spill] sm:$0xff] }
 0x83c   :  { %6727 = vmatpush2.bf16.msra.mxu0 %v11056_v26  ;;  %6768 = vmatpush2.bf16.msra.mxu1 %v11057_v2  ;;  %v339_v26 = vadd.f32 %v11067_v32, %v9079_v54 }
 0x83d   :  { %6728 = vmatprep.subr.bf16.mxu0 %v11058_v30  ;;  %6769 = vmatprep.subr.bf16.mxu1 %v11059_v28  ;;  %v11068_v30 = vld [vmem:[#allocation69_spill] sm:$0xff] }
 0x83e   :  { %v337_v28 = vadd.f32 %v11068_v30, %v9082_v10 }
 0x840   :  { %6729 = vmatpush2.bf16.msra.mxu0 %v11060_v48  ;;  %6770 = vmatpush2.bf16.msra.mxu1 %v11061_v63 }
 0x8a3   :  { %v5893_v45 = vpop.f32.mrf.mxu0  ;;  %v5934_v23 = vpop.f32.mrf.mxu1 }
 0x8a4   :  { %v5894_v6 = vadd.f32 %v5893_v45, %v5515_v4  ;;  %v5935_v62 = vadd.f32 %v5934_v23, %v5523_v15  ;;  %v8793_v15 = vmov 0.0  }
 0x8a5   :  { %v5895_v5 = vpop.f32.mrf.mxu0  ;;  %v5936_v19 = vpop.f32.mrf.mxu1  ;;  %7784 = vmatprep.subr.mxu0 %v8793_v15 }
 0x8a6   :  { %v7619_v11 = vmul.f32 -1.442695, %v5894_v6  ;;  %v5896_v3 = vadd.f32 %v5895_v5, %v5519_v7  ;;  %v5937_v52 = vadd.f32 %v5936_v19, %v5527_v1 }
 0x8a7   :  { %v5897_v47 = vpop.f32.mrf.mxu0  ;;  %v5938_v51 = vpop.f32.mrf.mxu1 }
 0x8a8   :  { %8598 = vpow2.f32 %v7619_v11  ;;  %v7620_v8 = vmul.f32 -1.442695, %v5896_v3  ;;  %v7621_v58 = vmul.f32 -1.442695, %v5937_v52 }
 0x8a9   :  { %v5898_v31 = vpop.f32.mrf.mxu0  ;;  %v5939_v44 = vpop.f32.mrf.mxu1 }
 0x8aa   :  { %8600 = vpow2.f32 %v7620_v8 }
 0x8ab   :  { %8602 = vpow2.f32 %v7621_v58  ;;  %v6878_v58 = vld [vmem:[#allocation8] sm:$0x1] }
 0x8ac   :  { %6881 = vperm.xlu0 %7803, %v6878_v58  }
 0x8b5   :  { %v8599_v59 = vpop.eup %8598 }
 0x8b6   :  { %v5945_v50 = vadd.f32 1.0, %v8599_v59  ;;  %v6349_v59 = vld [vmem:[#allocation17] sm:$0xf] }
 0x8b7   :  { %v8601_v53 = vpop.eup %8600 }
 0x8b8   :  { %8604 = vrcp.f32 %v5945_v50  ;;  %v5951_v27 = vadd.f32 1.0, %v8601_v53  ;;  %v8603_v29 = vpop.eup %8602 }
 0x8b9   :  { %8606 = vtanh.f32 %v5935_v62  ;;  %v5958_v57 = vadd.f32 1.0, %v8603_v29  ;;  %v6354_v62 = vrot.slane %v6349_v59, %v11062_v61 }
 0x8ba   :  { %8608 = vrcp.f32 %v5951_v27 }
 0x8c3   :  { %v6199_v13 = vpop.f32.mrf.mxu0  ;;  %v6240_v33 = vpop.f32.mrf.mxu1 }
 0x8c4   :  { %v6247_v14 = vadd.f32 %v6199_v13, %v264_v39  ;;  %v6249_v48 = vadd.f32 %v6240_v33, %v337_v28 }
 0x8c5   :  { %v8605_v18 = vpop.eup %8604  ;;  %v6201_v17 = vpop.f32.mrf.mxu0 }
 0x8c6   :  { %v6242_v16 = vpop.f32.mrf.mxu1  ;;  %v8607_v22 = vpop.eup %8606  ;;  %v7654_v20 = vmul.f32 -1.442695, %v6247_v14  ;;  %v6248_v36 = vadd.f32 %v6201_v17, %v266_v49 }
 0x8c7   :  { %v8609_v43 = vpop.eup %8608  ;;  %v6203_v34 = vpop.f32.mrf.mxu0  ;;  %v5962_v60 = vmul.f32 %v8607_v22, %v8605_v18  ;;  %v6250_v2 = vadd.f32 %v6242_v16, %v339_v26  ;;  %v6366_v18 = vrot.slane %v6349_v59, %v10787_v21  ;;  %v6362_v16 = vrot.slane %v6349_v59, %v10788_v24 }
 0x8c8   :  { %v6244_v40 = vpop.f32.mrf.mxu1  ;;  %v5961_v35 = vmul.f32 %v8609_v43, %v10415_v55  ;;  %8610 = vpow2.f32 %v7654_v20  ;;  %v7655_v0 = vmul.f32 -1.442695, %v6248_v36 }
 0x8c9   :  { %v6204_v42 = vpop.f32.mrf.mxu0  ;;  %v7656_v63 = vmul.f32 -1.442695, %v6250_v2  ;;  %v6807_v2 = vld [vmem:[%s10533_s6] sm:$0xff] }
 0x8ca   :  { %v6245_v25 = vpop.f32.mrf.mxu1  ;;  %8612 = vpow2.f32 %v7655_v0  ;;  %v10507_v12 = vadd.f32 %v5962_v60, %v5961_v35 }
 0x8cb   :  { %8614 = vrcp.f32 %v5958_v57 }
 0x8cc   :  { %8616 = vtanh.f32 %v10507_v12 }
 0x8cd   :  { %8618 = vtanh.f32 %v6249_v48 }
 0x8ce   :  { %8620 = vpow2.f32 %v7656_v63 }
 0x8d5   :  { %v8611_v55 = vpop.eup %8610 }
 0x8d6   :  { %v6255_v37 = vadd.f32 1.0, %v8611_v55 }
 0x8d7   :  { %v8613_v4 = vpop.eup %8612 }
 0x8d8   :  { %v8615_v7 = vpop.eup %8614  ;;  %8622 = vrcp.f32 %v6255_v37  ;;  %v6261_v45 = vadd.f32 1.0, %v8613_v4 }
 0x8d9   :  { %v8617_v23 = vpop.eup %8616 }
 0x8da   :  { %8624 = vrcp.f32 %v6261_v45  ;;  %v5965_v6 = vmul.f32 %v8617_v23, %v8615_v7  ;;  %v8619_v54 = vpop.eup %8618 }
 0x8db   :  { %v8621_v19 = vpop.eup %8620 }
 0x8dc   :  { %v7781_v5 = vpack.c.bf16 %v5965_v6, %v5965_v6  ;;  %v6268_v47 = vadd.f32 1.0, %v8621_v19 }
 0x8de   :  { %6730 = vmatprep.mubr.bf16.mxu0 %v7781_v5  ;;  %6771 = vmatprep.mubr.bf16.mxu1 %v7781_v5  ;;  %8626 = vrcp.f32 %v6268_v47 }
 0x8e5   :  { %v8623_v11 = vpop.eup %8622 }
 0x8e6   :  { %v6272_v10 = vmul.f32 %v8623_v11, %v8619_v54 }
 0x8e7   :  { %v8625_v3 = vpop.eup %8624 }
 0x8e8   :  { %v6271_v51 = vmul.f32 %v8625_v3, %v10423_v56  ;;  %v6358_v56 = vrot.slane %v6349_v59, %v11063_v9 }
 0x8ea   :  { %v6273_v8 = vadd.f32 %v6272_v10, %v6271_v51 }
 0x8eb   :  { %v8627_v31 = vpop.eup %8626 }
 0x8ec   :  { %8628 = vtanh.f32 %v6273_v8 }
 0x8f9   :  { %v8629_v44 = vpop.eup %8628 }
 0x8fa   :  { %v6275_v1 = vmul.f32 %v8629_v44, %v8627_v31 }
 0x8fc   :  { %v7780_v52 = vpack.c.bf16 %v6275_v1, %v6275_v1 }
 0x8fe   :  { %6731 = vmatmul.mubr.bf16.vlgmr.msra.gmra.mxu0 %v7780_v52  ;;  %6772 = vmatmul.mubr.bf16.vlgmr.msra.gmra.mxu1 %v7780_v52 }
 0x8ff   :  { %7786 = vmatprep.mubr.msk.f32.mxu0 %vm8794_vm2, %v8793_v15 }
 0x927   :  { %v6882_v30 = vpop.permute.xlu0 %6881 }
 0x928   :  { %v6887_v28 = vrot.slane %v6882_v30, %v11062_v61 }
 0x9be   :  { %v6732_v50 = vpop.f32.mrf.mxu0  ;;  %v6773_v53 = vpop.f32.mrf.mxu1 }
 0x9bf   :  { %v6733_v27 = vadd.f32 %v6732_v50, %v6354_v62  ;;  %v6774_v20 = vadd.f32 %v6773_v53, %v6362_v16 }
 0x9c0   :  { %v6734_v38 = vpop.f32.mrf.mxu0  ;;  %v6775_v46 = vpop.f32.mrf.mxu1 }
 0x9c1   :  { %v7723_v39 = vmul.f32 -1.442695, %v6733_v27  ;;  %v6735_v13 = vadd.f32 %v6734_v38, %v6358_v56  ;;  %v6776_v17 = vadd.f32 %v6775_v46, %v6366_v18 }
 0x9c2   :  { %v6736_v33 = vpop.f32.mrf.mxu0  ;;  %v6777_v29 = vpop.f32.mrf.mxu1 }
 0x9c3   :  { %8630 = vpow2.f32 %v7723_v39  ;;  %v7724_v41 = vmul.f32 -1.442695, %v6735_v13  ;;  %v7725_v9 = vmul.f32 -1.442695, %v6776_v17 }
 0x9c4   :  { %v6737_v49 = vpop.f32.mrf.mxu0  ;;  %v6778_v14 = vpop.f32.mrf.mxu1 }
 0x9c5   :  { %8632 = vpow2.f32 %v7724_v41 }
 0x9c6   :  { %8634 = vpow2.f32 %v7725_v9 }
 0x9d0   :  { %v8631_v22 = vpop.eup %8630 }
 0x9d1   :  { %v6784_v36 = vadd.f32 1.0, %v8631_v22 }
 0x9d2   :  { %v8633_v43 = vpop.eup %8632 }
 0x9d3   :  { %8636 = vrcp.f32 %v6784_v36  ;;  %v6790_v57 = vadd.f32 1.0, %v8633_v43  ;;  %v8635_v34 = vpop.eup %8634 }
 0x9d4   :  { %8638 = vtanh.f32 %v6774_v20  ;;  %v6797_v0 = vadd.f32 1.0, %v8635_v34 }
 0x9d5   :  { %8640 = vrcp.f32 %v6790_v57 }
 0x9d6   :  { %8642 = vrcp.f32 %v6797_v0 }
 0x9e0   :  { %v8637_v40 = vpop.eup %8636 }
 0x9e1   :  { %v8639_v60 = vpop.eup %8638 }
 0x9e2   :  { %v8641_v35 = vpop.eup %8640  ;;  %v6801_v42 = vmul.f32 %v8639_v60, %v8637_v40 }
 0x9e3   :  { %v6800_v21 = vmul.f32 %v8641_v35, %v10507_v12  ;;  %v8643_v24 = vpop.eup %8642 }
 0x9e5   :  { %v6802_v25 = vadd.f32 %v6801_v42, %v6800_v21 }
 0x9e7   :  { %8644 = vtanh.f32 %v6802_v25 }
 0x9f4   :  { %v8645_v32 = vpop.eup %8644 }
 0x9f5   :  { %v6804_v26 = vmul.f32 %v8645_v32, %v8643_v24 }
 0x9f7   :  { %7785 = vmatpush3.xpose.msra.mxu0 %v6804_v26 }
 0x9fa   :  { %7787 = vmatmul.mubr.f32.vlgmr.msra.gmra.mxu0 %v6807_v2 }
 0xaba   :  { %v6874_v48 = vpop.f32.mrf.mxu0 }
 0xabb   :  { %v6888_v12 = vadd.f32 %v6887_v28, %v6874_v48 }
 0xabc   :  { %v7788_v63 = vpop.f32.mrf.mxu0 }
 0xabd   :  { %6890 = vst.msk [vmem:[#allocation18] sm:$0x1] %vm6889_vm3, %v6888_v12 }
 0xabe   :  { %8765 = shalt.err (!%p8762_p1)
}
 0xabf   :  { %6900 = dma.vmem_to_hbm [thread:$0]  %s6898_s7, 16, %s10535_s8, [#allocation11]  }
 0xac0   :  { %8780 = dma.done.wait [#allocation11], 16  }
 0xac1   :  { %8781 = vsyncadd [#allocation11], 4294967280 }
 0xac2   :  { %6904 = vsyncpa [#allocation10], 1 }
 0xac3   :  { %6905 = vsyncpa [#allocation13], 1 }
 0xac4   :  { %6906 = vsyncpa [#allocation16], 1 }
 0xac5   :  { %6907 = vsyncpa [#allocation11], 1 }

</bundles_post_ra>
